<compile_context>
chip_gen: v7x
topology: tpu7x:2x2x1
jax: 0.10.0
libtpu: 0.0.40
codegen_flags: <defaults>
</compile_context>

<pallas_src>
import functools
import math

import jax
import jax.numpy as jnp
import numpy as np
from jax import lax
from jax.experimental import pallas as pl
from jax.experimental.pallas import tpu as pltpu


def attention_block_kernel(
    x_ref,        # (B, N, C) f32  flattened input (b, h*w, c)
    gn_w_ref,     # (1, C)    f32  group-norm scale
    gn_b_ref,     # (1, C)    f32  group-norm bias
    mcg_ref,      # (C, G)    f32  channel -> group membership matrix
    mgc_ref,      # (G, C)    f32  group -> channel membership matrix
    wq_ref,       # (C, C)    bf16 fused (qkv-conv q-slice @ in_proj_q) * scale
    bq_ref,       # (1, C)    f32  fused q bias (scaled)
    wk_ref,       # (C, C)    bf16
    bk_ref,       # (1, C)    f32
    wv_ref,       # (C, C)    bf16
    bv_ref,       # (1, C)    f32
    wo_ref,       # (C, C)    bf16 out_proj weight, transposed
    bo_ref,       # (1, C)    f32
    o_ref,        # (B, N, C) f32
    *, num_groups, nhead, eps):
    x3 = x_ref[...]                                   # (B, N, C) f32
    B, N, C = x3.shape
    dh = C // nhead

    # ---------------- GroupNorm (per batch, per group over N x cg) -----------
    sum_c = jnp.sum(x3, axis=1)                       # (B, C)
    sumsq_c = jnp.sum(x3 * x3, axis=1)                # (B, C)
    stats = jnp.concatenate([sum_c, sumsq_c], axis=0)  # (2B, C)
    g_stats = jnp.dot(stats, mcg_ref[...],
                      preferred_element_type=jnp.float32)      # (2B, G)
    cnt = jnp.float32(N * (C // num_groups))
    g_mean = g_stats[:B] / cnt
    g_var = g_stats[B:] / cnt - g_mean * g_mean       # biased variance
    g_inv = lax.rsqrt(g_var + eps)
    cm = jnp.dot(jnp.concatenate([g_mean, g_inv], axis=0), mgc_ref[...],
                 preferred_element_type=jnp.float32)           # (2B, C)
    a = cm[B:] * gn_w_ref[...]                        # (B, C)  per-channel scale
    bsh = gn_b_ref[...] - cm[:B] * a                  # (B, C)  per-channel shift
    xn = x3 * a[:, None, :] + bsh[:, None, :]         # (B, N, C) single FMA pass
    xn2 = xn.reshape(B * N, C).astype(jnp.bfloat16)   # batch-merged, bf16 operand

    # -------- fused qkv_proj + MHA in-projection (single matmul each) --------
    qp = (jnp.dot(xn2, wq_ref[...], preferred_element_type=jnp.float32)
          + bq_ref[...]).astype(jnp.bfloat16)         # (B*N, C) scale pre-folded
    kp = (jnp.dot(xn2, wk_ref[...], preferred_element_type=jnp.float32)
          + bk_ref[...]).astype(jnp.bfloat16)
    vp = (jnp.dot(xn2, wv_ref[...], preferred_element_type=jnp.float32)
          + bv_ref[...]).astype(jnp.bfloat16)

    # -------- per-(batch, head) attention, accumulate out-projection ---------
    wo = wo_ref[...]                                  # (C, C) bf16
    bo = bo_ref[...]                                  # (1, C) f32
    for b in range(B):                                # static unroll, B small
        r0 = b * N
        acc = jnp.zeros((N, C), jnp.float32)
        for h in range(nhead):                        # static unroll, nhead small
            c0 = h * dh
            qh = qp[r0:r0 + N, c0:c0 + dh]            # (N, dh) bf16
            kh = kp[r0:r0 + N, c0:c0 + dh]
            vh = vp[r0:r0 + N, c0:c0 + dh]
            # q @ k^T without an explicit XLU transpose of k
            s = lax.dot_general(qh, kh, (((1,), (1,)), ((), ())),
                                preferred_element_type=jnp.float32)  # (N, N)
            s = s - jnp.max(s, axis=-1, keepdims=True)
            p = jnp.exp(s)
            p = p * pl.reciprocal(jnp.sum(p, axis=-1, keepdims=True), approx=True)
            ah = jnp.dot(p.astype(jnp.bfloat16), vh,
                         preferred_element_type=jnp.float32)         # (N, dh)
            # accumulate this head's out-projection contribution (no concat)
            acc = acc + jnp.dot(ah.astype(jnp.bfloat16), wo[c0:c0 + dh, :],
                                preferred_element_type=jnp.float32)  # (N, C)
        o_ref[b] = acc + bo + x3[b]                   # bias + residual


def attention_block(x, params, *, nhead=4, num_groups=4, eps=1e-6):
    """x: (B, C, H, W) float32 (NCHW, PyTorch convention). params: original
    (unfused) module weights; fusion / bf16 casting happens here."""
    B, C, H, W = x.shape
    N = H * W
    dh = C // nhead
    scale = 1.0 / math.sqrt(dh)

    # 'b c h w -> b (h w) c'
    xf = jnp.transpose(x, (0, 2, 3, 1)).reshape(B, N, C)

    # --- Algebraic fusion: 1x1-conv qkv slices composed with MHA in-proj -----
    wc_t, bc = params["wc_t"], params["bc"]
    wq_f = (wc_t[:, :C] @ params["wq_t"]) * scale                   # scale folded
    bq_f = (bc[:, :C] @ params["wq_t"] + params["bq"]) * scale
    wk_f = wc_t[:, C:2 * C] @ params["wk_t"]
    bk_f = bc[:, C:2 * C] @ params["wk_t"] + params["bk"]
    wv_f = wc_t[:, 2 * C:] @ params["wv_t"]
    bv_f = bc[:, 2 * C:] @ params["wv_t"] + params["bv"]

    # bf16 matmul operands (accumulation stays f32 in-kernel)
    wq_b = wq_f.astype(jnp.bfloat16)
    wk_b = wk_f.astype(jnp.bfloat16)
    wv_b = wv_f.astype(jnp.bfloat16)
    wo_b = params["wo_t"].astype(jnp.bfloat16)

    cg = C // num_groups
    mcg = jnp.asarray(np.arange(C)[:, None] // cg == np.arange(num_groups)[None, :],
                      dtype=jnp.float32)                             # (C, G)
    mgc = mcg.T                                                      # (G, C)

    kernel = functools.partial(attention_block_kernel,
                               num_groups=num_groups, nhead=nhead, eps=eps)
    full2 = lambda i: (0, 0)
    full3 = lambda i: (0, 0, 0)

    # Single kernel step: whole batch in one block (overhead-bound shape;
    # doubles matmul M to B*N and removes per-grid-step cost on v5e/v6e).
    # TODO(synk): on v7x with larger B, split the batch axis across the two
    # TensorCores (dimension_semantics=(pltpu.CORE_PARALLEL,)) instead.
    out = pl.pallas_call(
        kernel,
        out_shape=jax.ShapeDtypeStruct((B, N, C), jnp.float32),
        grid_spec=pltpu.PrefetchScalarGridSpec(
            num_scalar_prefetch=0,
            grid=(1,),
            in_specs=[
                pl.BlockSpec((B, N, C), full3),         # x
                pl.BlockSpec((1, C), full2),            # gn_w
                pl.BlockSpec((1, C), full2),            # gn_b
                pl.BlockSpec((C, num_groups), full2),   # mask C->G
                pl.BlockSpec((num_groups, C), full2),   # mask G->C
                pl.BlockSpec((C, C), full2),            # wq fused (bf16)
                pl.BlockSpec((1, C), full2),            # bq fused
                pl.BlockSpec((C, C), full2),            # wk fused (bf16)
                pl.BlockSpec((1, C), full2),            # bk fused
                pl.BlockSpec((C, C), full2),            # wv fused (bf16)
                pl.BlockSpec((1, C), full2),            # bv fused
                pl.BlockSpec((C, C), full2),            # wo (bf16)
                pl.BlockSpec((1, C), full2),            # bo
            ],
            out_specs=pl.BlockSpec((B, N, C), full3),
        ),
        compiler_params=pltpu.CompilerParams(
            dimension_semantics=("arbitrary",)),
    )(xf, params["gn_w"], params["gn_b"], mcg, mgc,
      wq_b, bq_f, wk_b, bk_f, wv_b, bv_f, wo_b, params["bo"])

    # 'b (h w) c -> b c h w'
    return jnp.transpose(out.reshape(B, H, W, C), (0, 3, 1, 2))


def reference(x, params, *, nhead=4, num_groups=4, eps=1e-6):
    """Pure-JAX f32 reference mirroring the PyTorch forward (unfused params)."""
    B, C, H, W = x.shape
    N = H * W
    dh = C // nhead
    xf = jnp.transpose(x, (0, 2, 3, 1)).reshape(B, N, C)
    xg = xf.reshape(B, N, num_groups, C // num_groups)
    mean = xg.mean(axis=(1, 3), keepdims=True)
    var = ((xg - mean) ** 2).mean(axis=(1, 3), keepdims=True)
    xn = ((xg - mean) / jnp.sqrt(var + eps)).reshape(B, N, C)
    xn = xn * params["gn_w"] + params["gn_b"]
    qkv = xn @ params["wc_t"] + params["bc"]
    q, k, v = jnp.split(qkv, 3, axis=-1)
    qp = q @ params["wq_t"] + params["bq"]
    kp = k @ params["wk_t"] + params["bk"]
    vp = v @ params["wv_t"] + params["bv"]
    qh = qp.reshape(B, N, nhead, dh).transpose(0, 2, 1, 3)
    kh = kp.reshape(B, N, nhead, dh).transpose(0, 2, 1, 3)
    vh = vp.reshape(B, N, nhead, dh).transpose(0, 2, 1, 3)
    s = jnp.einsum("bhnd,bhmd->bhnm", qh, kh) / jnp.sqrt(dh)
    p = jax.nn.softmax(s, axis=-1)
    o = jnp.einsum("bhnm,bhmd->bhnd", p, vh).transpose(0, 2, 1, 3).reshape(B, N, C)
    o = o @ params["wo_t"] + params["bo"]
    o = o + xf
    return jnp.transpose(o.reshape(B, H, W, C), (0, 3, 1, 2))


def make_params(key, dim):
    """Deterministic synthetic weights matching the PyTorch module shapes."""
    ks = jax.random.split(key, 6)
    scale = 0.05
    conv_w = scale * jax.random.normal(ks[0], (3 * dim, dim), jnp.float32)   # Conv2d(dim, 3*dim, 1)
    conv_b = scale * jax.random.normal(ks[1], (3 * dim,), jnp.float32)
    in_proj_w = scale * jax.random.normal(ks[2], (3 * dim, dim), jnp.float32)
    in_proj_b = scale * jax.random.normal(ks[3], (3 * dim,), jnp.float32)
    out_proj_w = scale * jax.random.normal(ks[4], (dim, dim), jnp.float32)
    out_proj_b = scale * jax.random.normal(ks[5], (dim,), jnp.float32)
    return {
        "gn_w": jnp.ones((1, dim), jnp.float32),    # GroupNorm2d init
        "gn_b": jnp.zeros((1, dim), jnp.float32),
        "wc_t": conv_w.T,                           # (dim, 3*dim)
        "bc": conv_b.reshape(1, 3 * dim),
        "wq_t": in_proj_w[:dim].T,                  # (dim, dim)
        "wk_t": in_proj_w[dim:2 * dim].T,
        "wv_t": in_proj_w[2 * dim:].T,
        "bq": in_proj_b[:dim].reshape(1, dim),
        "bk": in_proj_b[dim:2 * dim].reshape(1, dim),
        "bv": in_proj_b[2 * dim:].reshape(1, dim),
        "wo_t": out_proj_w.T,
        "bo": out_proj_b.reshape(1, dim),
    }


if __name__ == "__main__":
    B, C, H, W = 2, 32, 8, 8
    nhead, num_groups = 4, 4

    key = jax.random.PRNGKey(0)
    kx, kp = jax.random.split(key)
    x = jax.random.normal(kx, (B, C, H, W), jnp.float32)
    params = make_params(kp, C)

    out = attention_block(x, params, nhead=nhead, num_groups=num_groups)
    out = jax.block_until_ready(out)

    ref = reference(x, params, nhead=nhead, num_groups=num_groups)
    np.testing.assert_allclose(np.asarray(out), np.asarray(ref),
                               rtol=1e-2, atol=1e-2)

    assert out.shape == (B, C, H, W)
    print("KERNEL_OK")
</pallas_src>

<mosaic_0001>
module attributes {stable_mosaic.version = 11 : i64} {
  func.func @attention_block_kernel(%arg0: i32, %arg1: memref<2x64x32xf32, #tpu.memory_space<vmem>>, %arg2: memref<1x32xf32, #tpu.memory_space<vmem>>, %arg3: memref<1x32xf32, #tpu.memory_space<vmem>>, %arg4: memref<32x4xf32, #tpu.memory_space<vmem>>, %arg5: memref<4x32xf32, #tpu.memory_space<vmem>>, %arg6: memref<32x32xbf16, #tpu.memory_space<vmem>>, %arg7: memref<1x32xf32, #tpu.memory_space<vmem>>, %arg8: memref<32x32xbf16, #tpu.memory_space<vmem>>, %arg9: memref<1x32xf32, #tpu.memory_space<vmem>>, %arg10: memref<32x32xbf16, #tpu.memory_space<vmem>>, %arg11: memref<1x32xf32, #tpu.memory_space<vmem>>, %arg12: memref<32x32xbf16, #tpu.memory_space<vmem>>, %arg13: memref<1x32xf32, #tpu.memory_space<vmem>>, %arg14: memref<2x64x32xf32, #tpu.memory_space<vmem>>) attributes {dimension_semantics = [#tpu.dimension_semantics<arbitrary>], iteration_bounds = array<i64: 1>, scalar_prefetch = 0 : i64, scratch_operands = 0 : i64, tpu.core_type = #tpu.core_type<tc>, window_params = [{pipeline_mode = #tpu.pipeline_mode<synchronous>, transform_indices = @transform_0, window_bounds = array<i64: 2, 64, 32>}, {pipeline_mode = #tpu.pipeline_mode<synchronous>, transform_indices = @transform_1, window_bounds = array<i64: 1, 32>}, {pipeline_mode = #tpu.pipeline_mode<synchronous>, transform_indices = @transform_2, window_bounds = array<i64: 1, 32>}, {pipeline_mode = #tpu.pipeline_mode<synchronous>, transform_indices = @transform_3, window_bounds = array<i64: 32, 4>}, {pipeline_mode = #tpu.pipeline_mode<synchronous>, transform_indices = @transform_4, window_bounds = array<i64: 4, 32>}, {pipeline_mode = #tpu.pipeline_mode<synchronous>, transform_indices = @transform_5, window_bounds = array<i64: 32, 32>}, {pipeline_mode = #tpu.pipeline_mode<synchronous>, transform_indices = @transform_6, window_bounds = array<i64: 1, 32>}, {pipeline_mode = #tpu.pipeline_mode<synchronous>, transform_indices = @transform_7, window_bounds = array<i64: 32, 32>}, {pipeline_mode = #tpu.pipeline_mode<synchronous>, transform_indices = @transform_8, window_bounds = array<i64: 1, 32>}, {pipeline_mode = #tpu.pipeline_mode<synchronous>, transform_indices = @transform_9, window_bounds = array<i64: 32, 32>}, {pipeline_mode = #tpu.pipeline_mode<synchronous>, transform_indices = @transform_10, window_bounds = array<i64: 1, 32>}, {pipeline_mode = #tpu.pipeline_mode<synchronous>, transform_indices = @transform_11, window_bounds = array<i64: 32, 32>}, {pipeline_mode = #tpu.pipeline_mode<synchronous>, transform_indices = @transform_12, window_bounds = array<i64: 1, 32>}, {pipeline_mode = #tpu.pipeline_mode<synchronous>, transform_indices = @transform_13, window_bounds = array<i64: 2, 64, 32>}]} {
    %c0 = arith.constant 0 : index
    %c0_0 = arith.constant 0 : index
    %c0_1 = arith.constant 0 : index
    %0 = vector.load %arg1[%c0, %c0_0, %c0_1] : memref<2x64x32xf32, #tpu.memory_space<vmem>>, vector<2x64x32xf32>
    %cst = arith.constant dense<0.000000e+00> : vector<2x32xf32>
    %1 = vector.multi_reduction <add>, %0, %cst [1] : vector<2x64x32xf32> to vector<2x32xf32>
    %2 = arith.mulf %0, %0 : vector<2x64x32xf32>
    %cst_2 = arith.constant dense<0.000000e+00> : vector<2x32xf32>
    %3 = vector.multi_reduction <add>, %2, %cst_2 [1] : vector<2x64x32xf32> to vector<2x32xf32>
    %4 = tpu.concatenate %1, %3 in 0 : vector<2x32xf32>, vector<2x32xf32> -> vector<4x32xf32>
    %c0_3 = arith.constant 0 : index
    %c0_4 = arith.constant 0 : index
    %5 = vector.load %arg4[%c0_3, %c0_4] : memref<32x4xf32, #tpu.memory_space<vmem>>, vector<32x4xf32>
    %cst_5 = arith.constant dense<0.000000e+00> : vector<4x4xf32>
    %6 = tpu.matmul %4, %5, %cst_5 {dimension_numbers = #tpu.dot_dimension_numbers<[1], [0], [0], [1], [0, 0, 1, 1], [], []>} : vector<4x32xf32>, vector<32x4xf32>, vector<4x4xf32> -> vector<4x4xf32>
    %7 = vector.extract_strided_slice %6 {offsets = [0, 0], sizes = [2, 4], strides = [1, 1]} : vector<4x4xf32> to vector<2x4xf32>
    %cst_6 = arith.constant 5.120000e+02 : f32
    %8 = vector.broadcast %cst_6 : f32 to vector<2x4xf32>
    %9 = arith.divf %7, %8 : vector<2x4xf32>
    %10 = vector.extract_strided_slice %6 {offsets = [2, 0], sizes = [2, 4], strides = [1, 1]} : vector<4x4xf32> to vector<2x4xf32>
    %cst_7 = arith.constant 5.120000e+02 : f32
    %11 = vector.broadcast %cst_7 : f32 to vector<2x4xf32>
    %12 = arith.divf %10, %11 : vector<2x4xf32>
    %13 = arith.mulf %9, %9 : vector<2x4xf32>
    %14 = arith.subf %12, %13 : vector<2x4xf32>
    %cst_8 = arith.constant 9.99999997E-7 : f32
    %15 = vector.broadcast %cst_8 : f32 to vector<2x4xf32>
    %16 = arith.addf %14, %15 : vector<2x4xf32>
    %17 = math.rsqrt %16 : vector<2x4xf32>
    %18 = tpu.concatenate %9, %17 in 0 : vector<2x4xf32>, vector<2x4xf32> -> vector<4x4xf32>
    %c0_9 = arith.constant 0 : index
    %c0_10 = arith.constant 0 : index
    %19 = vector.load %arg5[%c0_9, %c0_10] : memref<4x32xf32, #tpu.memory_space<vmem>>, vector<4x32xf32>
    %cst_11 = arith.constant dense<0.000000e+00> : vector<4x32xf32>
    %20 = tpu.matmul %18, %19, %cst_11 {dimension_numbers = #tpu.dot_dimension_numbers<[1], [0], [0], [1], [0, 0, 1, 1], [], []>} : vector<4x4xf32>, vector<4x32xf32>, vector<4x32xf32> -> vector<4x32xf32>
    %21 = vector.extract_strided_slice %20 {offsets = [2, 0], sizes = [2, 32], strides = [1, 1]} : vector<4x32xf32> to vector<2x32xf32>
    %c0_12 = arith.constant 0 : index
    %c0_13 = arith.constant 0 : index
    %22 = vector.load %arg2[%c0_12, %c0_13] : memref<1x32xf32, #tpu.memory_space<vmem>>, vector<1x32xf32>
    %23 = vector.broadcast %22 : vector<1x32xf32> to vector<2x32xf32>
    %24 = arith.mulf %21, %23 : vector<2x32xf32>
    %c0_14 = arith.constant 0 : index
    %c0_15 = arith.constant 0 : index
    %25 = vector.load %arg3[%c0_14, %c0_15] : memref<1x32xf32, #tpu.memory_space<vmem>>, vector<1x32xf32>
    %26 = vector.extract_strided_slice %20 {offsets = [0, 0], sizes = [2, 32], strides = [1, 1]} : vector<4x32xf32> to vector<2x32xf32>
    %27 = arith.mulf %26, %24 : vector<2x32xf32>
    %28 = vector.broadcast %25 : vector<1x32xf32> to vector<2x32xf32>
    %29 = arith.subf %28, %27 : vector<2x32xf32>
    %30 = vector.shape_cast %24 : vector<2x32xf32> to vector<2x1x32xf32>
    %31 = vector.broadcast %30 : vector<2x1x32xf32> to vector<2x64x32xf32>
    %32 = arith.mulf %0, %31 : vector<2x64x32xf32>
    %33 = vector.shape_cast %29 : vector<2x32xf32> to vector<2x1x32xf32>
    %34 = vector.broadcast %33 : vector<2x1x32xf32> to vector<2x64x32xf32>
    %35 = arith.addf %32, %34 : vector<2x64x32xf32>
    %36 = vector.shape_cast %35 : vector<2x64x32xf32> to vector<128x32xf32>
    %37 = arith.truncf %36 : vector<128x32xf32> to vector<128x32xbf16>
    %c0_16 = arith.constant 0 : index
    %c0_17 = arith.constant 0 : index
    %38 = vector.load %arg6[%c0_16, %c0_17] : memref<32x32xbf16, #tpu.memory_space<vmem>>, vector<32x32xbf16>
    %cst_18 = arith.constant dense<0.000000e+00> : vector<128x32xf32>
    %39 = tpu.matmul %37, %38, %cst_18 {dimension_numbers = #tpu.dot_dimension_numbers<[1], [0], [0], [1], [0, 0, 1, 1], [], []>} : vector<128x32xbf16>, vector<32x32xbf16>, vector<128x32xf32> -> vector<128x32xf32>
    %c0_19 = arith.constant 0 : index
    %c0_20 = arith.constant 0 : index
    %40 = vector.load %arg7[%c0_19, %c0_20] : memref<1x32xf32, #tpu.memory_space<vmem>>, vector<1x32xf32>
    %41 = vector.broadcast %40 : vector<1x32xf32> to vector<128x32xf32>
    %42 = arith.addf %39, %41 : vector<128x32xf32>
    %43 = arith.truncf %42 : vector<128x32xf32> to vector<128x32xbf16>
    %c0_21 = arith.constant 0 : index
    %c0_22 = arith.constant 0 : index
    %44 = vector.load %arg8[%c0_21, %c0_22] : memref<32x32xbf16, #tpu.memory_space<vmem>>, vector<32x32xbf16>
    %cst_23 = arith.constant dense<0.000000e+00> : vector<128x32xf32>
    %45 = tpu.matmul %37, %44, %cst_23 {dimension_numbers = #tpu.dot_dimension_numbers<[1], [0], [0], [1], [0, 0, 1, 1], [], []>} : vector<128x32xbf16>, vector<32x32xbf16>, vector<128x32xf32> -> vector<128x32xf32>
    %c0_24 = arith.constant 0 : index
    %c0_25 = arith.constant 0 : index
    %46 = vector.load %arg9[%c0_24, %c0_25] : memref<1x32xf32, #tpu.memory_space<vmem>>, vector<1x32xf32>
    %47 = vector.broadcast %46 : vector<1x32xf32> to vector<128x32xf32>
    %48 = arith.addf %45, %47 : vector<128x32xf32>
    %49 = arith.truncf %48 : vector<128x32xf32> to vector<128x32xbf16>
    %c0_26 = arith.constant 0 : index
    %c0_27 = arith.constant 0 : index
    %50 = vector.load %arg10[%c0_26, %c0_27] : memref<32x32xbf16, #tpu.memory_space<vmem>>, vector<32x32xbf16>
    %cst_28 = arith.constant dense<0.000000e+00> : vector<128x32xf32>
    %51 = tpu.matmul %37, %50, %cst_28 {dimension_numbers = #tpu.dot_dimension_numbers<[1], [0], [0], [1], [0, 0, 1, 1], [], []>} : vector<128x32xbf16>, vector<32x32xbf16>, vector<128x32xf32> -> vector<128x32xf32>
    %c0_29 = arith.constant 0 : index
    %c0_30 = arith.constant 0 : index
    %52 = vector.load %arg11[%c0_29, %c0_30] : memref<1x32xf32, #tpu.memory_space<vmem>>, vector<1x32xf32>
    %53 = vector.broadcast %52 : vector<1x32xf32> to vector<128x32xf32>
    %54 = arith.addf %51, %53 : vector<128x32xf32>
    %55 = arith.truncf %54 : vector<128x32xf32> to vector<128x32xbf16>
    %c0_31 = arith.constant 0 : index
    %c0_32 = arith.constant 0 : index
    %56 = vector.load %arg12[%c0_31, %c0_32] : memref<32x32xbf16, #tpu.memory_space<vmem>>, vector<32x32xbf16>
    %c0_33 = arith.constant 0 : index
    %c0_34 = arith.constant 0 : index
    %57 = vector.load %arg13[%c0_33, %c0_34] : memref<1x32xf32, #tpu.memory_space<vmem>>, vector<1x32xf32>
    %cst_35 = arith.constant 0.000000e+00 : f32
    %58 = vector.broadcast %cst_35 : f32 to vector<64x32xf32>
    %59 = vector.extract_strided_slice %43 {offsets = [0, 0], sizes = [64, 8], strides = [1, 1]} : vector<128x32xbf16> to vector<64x8xbf16>
    %60 = vector.extract_strided_slice %49 {offsets = [0, 0], sizes = [64, 8], strides = [1, 1]} : vector<128x32xbf16> to vector<64x8xbf16>
    %61 = vector.extract_strided_slice %55 {offsets = [0, 0], sizes = [64, 8], strides = [1, 1]} : vector<128x32xbf16> to vector<64x8xbf16>
    %cst_36 = arith.constant dense<0.000000e+00> : vector<64x64xf32>
    %62 = tpu.matmul %59, %60, %cst_36 {dimension_numbers = #tpu.dot_dimension_numbers<[1], [1], [0], [0], [0, 0, 1, 0], [], []>} : vector<64x8xbf16>, vector<64x8xbf16>, vector<64x64xf32> -> vector<64x64xf32>
    %cst_37 = arith.constant dense<0xFF800000> : vector<64xf32>
    %63 = vector.multi_reduction <maximumf>, %62, %cst_37 [1] : vector<64x64xf32> to vector<64xf32>
    %64 = vector.shape_cast %63 : vector<64xf32> to vector<64x1xf32>
    %65 = vector.broadcast %64 : vector<64x1xf32> to vector<64x64xf32>
    %66 = arith.subf %62, %65 : vector<64x64xf32>
    %67 = math.exp %66 : vector<64x64xf32>
    %cst_38 = arith.constant dense<0.000000e+00> : vector<64xf32>
    %68 = vector.multi_reduction <add>, %67, %cst_38 [1] : vector<64x64xf32> to vector<64xf32>
    %69 = vector.shape_cast %68 : vector<64xf32> to vector<64x1xf32>
    %70 = tpu.reciprocal %69 {approx = true} : vector<64x1xf32> -> vector<64x1xf32>
    %71 = vector.broadcast %70 : vector<64x1xf32> to vector<64x64xf32>
    %72 = arith.mulf %67, %71 : vector<64x64xf32>
    %73 = arith.truncf %72 : vector<64x64xf32> to vector<64x64xbf16>
    %cst_39 = arith.constant dense<0.000000e+00> : vector<64x8xf32>
    %74 = tpu.matmul %73, %61, %cst_39 {dimension_numbers = #tpu.dot_dimension_numbers<[1], [0], [0], [1], [0, 0, 1, 1], [], []>} : vector<64x64xbf16>, vector<64x8xbf16>, vector<64x8xf32> -> vector<64x8xf32>
    %75 = arith.truncf %74 : vector<64x8xf32> to vector<64x8xbf16>
    %76 = vector.extract_strided_slice %56 {offsets = [0, 0], sizes = [8, 32], strides = [1, 1]} : vector<32x32xbf16> to vector<8x32xbf16>
    %cst_40 = arith.constant dense<0.000000e+00> : vector<64x32xf32>
    %77 = tpu.matmul %75, %76, %cst_40 {dimension_numbers = #tpu.dot_dimension_numbers<[1], [0], [0], [1], [0, 0, 1, 1], [], []>} : vector<64x8xbf16>, vector<8x32xbf16>, vector<64x32xf32> -> vector<64x32xf32>
    %78 = arith.addf %58, %77 : vector<64x32xf32>
    %79 = vector.extract_strided_slice %43 {offsets = [0, 8], sizes = [64, 8], strides = [1, 1]} : vector<128x32xbf16> to vector<64x8xbf16>
    %80 = vector.extract_strided_slice %49 {offsets = [0, 8], sizes = [64, 8], strides = [1, 1]} : vector<128x32xbf16> to vector<64x8xbf16>
    %81 = vector.extract_strided_slice %55 {offsets = [0, 8], sizes = [64, 8], strides = [1, 1]} : vector<128x32xbf16> to vector<64x8xbf16>
    %cst_41 = arith.constant dense<0.000000e+00> : vector<64x64xf32>
    %82 = tpu.matmul %79, %80, %cst_41 {dimension_numbers = #tpu.dot_dimension_numbers<[1], [1], [0], [0], [0, 0, 1, 0], [], []>} : vector<64x8xbf16>, vector<64x8xbf16>, vector<64x64xf32> -> vector<64x64xf32>
    %cst_42 = arith.constant dense<0xFF800000> : vector<64xf32>
    %83 = vector.multi_reduction <maximumf>, %82, %cst_42 [1] : vector<64x64xf32> to vector<64xf32>
    %84 = vector.shape_cast %83 : vector<64xf32> to vector<64x1xf32>
    %85 = vector.broadcast %84 : vector<64x1xf32> to vector<64x64xf32>
    %86 = arith.subf %82, %85 : vector<64x64xf32>
    %87 = math.exp %86 : vector<64x64xf32>
    %cst_43 = arith.constant dense<0.000000e+00> : vector<64xf32>
    %88 = vector.multi_reduction <add>, %87, %cst_43 [1] : vector<64x64xf32> to vector<64xf32>
    %89 = vector.shape_cast %88 : vector<64xf32> to vector<64x1xf32>
    %90 = tpu.reciprocal %89 {approx = true} : vector<64x1xf32> -> vector<64x1xf32>
    %91 = vector.broadcast %90 : vector<64x1xf32> to vector<64x64xf32>
    %92 = arith.mulf %87, %91 : vector<64x64xf32>
    %93 = arith.truncf %92 : vector<64x64xf32> to vector<64x64xbf16>
    %cst_44 = arith.constant dense<0.000000e+00> : vector<64x8xf32>
    %94 = tpu.matmul %93, %81, %cst_44 {dimension_numbers = #tpu.dot_dimension_numbers<[1], [0], [0], [1], [0, 0, 1, 1], [], []>} : vector<64x64xbf16>, vector<64x8xbf16>, vector<64x8xf32> -> vector<64x8xf32>
    %95 = arith.truncf %94 : vector<64x8xf32> to vector<64x8xbf16>
    %96 = vector.extract_strided_slice %56 {offsets = [8, 0], sizes = [8, 32], strides = [1, 1]} : vector<32x32xbf16> to vector<8x32xbf16>
    %cst_45 = arith.constant dense<0.000000e+00> : vector<64x32xf32>
    %97 = tpu.matmul %95, %96, %cst_45 {dimension_numbers = #tpu.dot_dimension_numbers<[1], [0], [0], [1], [0, 0, 1, 1], [], []>} : vector<64x8xbf16>, vector<8x32xbf16>, vector<64x32xf32> -> vector<64x32xf32>
    %98 = arith.addf %78, %97 : vector<64x32xf32>
    %99 = vector.extract_strided_slice %43 {offsets = [0, 16], sizes = [64, 8], strides = [1, 1]} : vector<128x32xbf16> to vector<64x8xbf16>
    %100 = vector.extract_strided_slice %49 {offsets = [0, 16], sizes = [64, 8], strides = [1, 1]} : vector<128x32xbf16> to vector<64x8xbf16>
    %101 = vector.extract_strided_slice %55 {offsets = [0, 16], sizes = [64, 8], strides = [1, 1]} : vector<128x32xbf16> to vector<64x8xbf16>
    %cst_46 = arith.constant dense<0.000000e+00> : vector<64x64xf32>
    %102 = tpu.matmul %99, %100, %cst_46 {dimension_numbers = #tpu.dot_dimension_numbers<[1], [1], [0], [0], [0, 0, 1, 0], [], []>} : vector<64x8xbf16>, vector<64x8xbf16>, vector<64x64xf32> -> vector<64x64xf32>
    %cst_47 = arith.constant dense<0xFF800000> : vector<64xf32>
    %103 = vector.multi_reduction <maximumf>, %102, %cst_47 [1] : vector<64x64xf32> to vector<64xf32>
    %104 = vector.shape_cast %103 : vector<64xf32> to vector<64x1xf32>
    %105 = vector.broadcast %104 : vector<64x1xf32> to vector<64x64xf32>
    %106 = arith.subf %102, %105 : vector<64x64xf32>
    %107 = math.exp %106 : vector<64x64xf32>
    %cst_48 = arith.constant dense<0.000000e+00> : vector<64xf32>
    %108 = vector.multi_reduction <add>, %107, %cst_48 [1] : vector<64x64xf32> to vector<64xf32>
    %109 = vector.shape_cast %108 : vector<64xf32> to vector<64x1xf32>
    %110 = tpu.reciprocal %109 {approx = true} : vector<64x1xf32> -> vector<64x1xf32>
    %111 = vector.broadcast %110 : vector<64x1xf32> to vector<64x64xf32>
    %112 = arith.mulf %107, %111 : vector<64x64xf32>
    %113 = arith.truncf %112 : vector<64x64xf32> to vector<64x64xbf16>
    %cst_49 = arith.constant dense<0.000000e+00> : vector<64x8xf32>
    %114 = tpu.matmul %113, %101, %cst_49 {dimension_numbers = #tpu.dot_dimension_numbers<[1], [0], [0], [1], [0, 0, 1, 1], [], []>} : vector<64x64xbf16>, vector<64x8xbf16>, vector<64x8xf32> -> vector<64x8xf32>
    %115 = arith.truncf %114 : vector<64x8xf32> to vector<64x8xbf16>
    %116 = vector.extract_strided_slice %56 {offsets = [16, 0], sizes = [8, 32], strides = [1, 1]} : vector<32x32xbf16> to vector<8x32xbf16>
    %cst_50 = arith.constant dense<0.000000e+00> : vector<64x32xf32>
    %117 = tpu.matmul %115, %116, %cst_50 {dimension_numbers = #tpu.dot_dimension_numbers<[1], [0], [0], [1], [0, 0, 1, 1], [], []>} : vector<64x8xbf16>, vector<8x32xbf16>, vector<64x32xf32> -> vector<64x32xf32>
    %118 = arith.addf %98, %117 : vector<64x32xf32>
    %119 = vector.extract_strided_slice %43 {offsets = [0, 24], sizes = [64, 8], strides = [1, 1]} : vector<128x32xbf16> to vector<64x8xbf16>
    %120 = vector.extract_strided_slice %49 {offsets = [0, 24], sizes = [64, 8], strides = [1, 1]} : vector<128x32xbf16> to vector<64x8xbf16>
    %121 = vector.extract_strided_slice %55 {offsets = [0, 24], sizes = [64, 8], strides = [1, 1]} : vector<128x32xbf16> to vector<64x8xbf16>
    %cst_51 = arith.constant dense<0.000000e+00> : vector<64x64xf32>
    %122 = tpu.matmul %119, %120, %cst_51 {dimension_numbers = #tpu.dot_dimension_numbers<[1], [1], [0], [0], [0, 0, 1, 0], [], []>} : vector<64x8xbf16>, vector<64x8xbf16>, vector<64x64xf32> -> vector<64x64xf32>
    %cst_52 = arith.constant dense<0xFF800000> : vector<64xf32>
    %123 = vector.multi_reduction <maximumf>, %122, %cst_52 [1] : vector<64x64xf32> to vector<64xf32>
    %124 = vector.shape_cast %123 : vector<64xf32> to vector<64x1xf32>
    %125 = vector.broadcast %124 : vector<64x1xf32> to vector<64x64xf32>
    %126 = arith.subf %122, %125 : vector<64x64xf32>
    %127 = math.exp %126 : vector<64x64xf32>
    %cst_53 = arith.constant dense<0.000000e+00> : vector<64xf32>
    %128 = vector.multi_reduction <add>, %127, %cst_53 [1] : vector<64x64xf32> to vector<64xf32>
    %129 = vector.shape_cast %128 : vector<64xf32> to vector<64x1xf32>
    %130 = tpu.reciprocal %129 {approx = true} : vector<64x1xf32> -> vector<64x1xf32>
    %131 = vector.broadcast %130 : vector<64x1xf32> to vector<64x64xf32>
    %132 = arith.mulf %127, %131 : vector<64x64xf32>
    %133 = arith.truncf %132 : vector<64x64xf32> to vector<64x64xbf16>
    %cst_54 = arith.constant dense<0.000000e+00> : vector<64x8xf32>
    %134 = tpu.matmul %133, %121, %cst_54 {dimension_numbers = #tpu.dot_dimension_numbers<[1], [0], [0], [1], [0, 0, 1, 1], [], []>} : vector<64x64xbf16>, vector<64x8xbf16>, vector<64x8xf32> -> vector<64x8xf32>
    %135 = arith.truncf %134 : vector<64x8xf32> to vector<64x8xbf16>
    %136 = vector.extract_strided_slice %56 {offsets = [24, 0], sizes = [8, 32], strides = [1, 1]} : vector<32x32xbf16> to vector<8x32xbf16>
    %cst_55 = arith.constant dense<0.000000e+00> : vector<64x32xf32>
    %137 = tpu.matmul %135, %136, %cst_55 {dimension_numbers = #tpu.dot_dimension_numbers<[1], [0], [0], [1], [0, 0, 1, 1], [], []>} : vector<64x8xbf16>, vector<8x32xbf16>, vector<64x32xf32> -> vector<64x32xf32>
    %138 = arith.addf %118, %137 : vector<64x32xf32>
    %139 = vector.broadcast %57 : vector<1x32xf32> to vector<64x32xf32>
    %140 = arith.addf %138, %139 : vector<64x32xf32>
    %141 = vector.extract_strided_slice %0 {offsets = [0, 0, 0], sizes = [1, 64, 32], strides = [1, 1, 1]} : vector<2x64x32xf32> to vector<1x64x32xf32>
    %142 = vector.shape_cast %141 : vector<1x64x32xf32> to vector<64x32xf32>
    %143 = arith.addf %140, %142 : vector<64x32xf32>
    %c0_56 = arith.constant 0 : index
    %c0_57 = arith.constant 0 : index
    %c0_58 = arith.constant 0 : index
    %144 = vector.load %arg14[%c0_56, %c0_57, %c0_58] : memref<2x64x32xf32, #tpu.memory_space<vmem>>, vector<1x64x32xf32>
    %145 = vector.shape_cast %144 : vector<1x64x32xf32> to vector<64x32xf32>
    %146 = vector.shape_cast %143 : vector<64x32xf32> to vector<1x64x32xf32>
    tpu.vector_store %arg14[%c0_56, %c0_57, %c0_58], %146 {strides = array<i32>} : memref<2x64x32xf32, #tpu.memory_space<vmem>>, vector<1x64x32xf32>,
    %cst_59 = arith.constant 0.000000e+00 : f32
    %147 = vector.broadcast %cst_59 : f32 to vector<64x32xf32>
    %148 = vector.extract_strided_slice %43 {offsets = [64, 0], sizes = [64, 8], strides = [1, 1]} : vector<128x32xbf16> to vector<64x8xbf16>
    %149 = vector.extract_strided_slice %49 {offsets = [64, 0], sizes = [64, 8], strides = [1, 1]} : vector<128x32xbf16> to vector<64x8xbf16>
    %150 = vector.extract_strided_slice %55 {offsets = [64, 0], sizes = [64, 8], strides = [1, 1]} : vector<128x32xbf16> to vector<64x8xbf16>
    %cst_60 = arith.constant dense<0.000000e+00> : vector<64x64xf32>
    %151 = tpu.matmul %148, %149, %cst_60 {dimension_numbers = #tpu.dot_dimension_numbers<[1], [1], [0], [0], [0, 0, 1, 0], [], []>} : vector<64x8xbf16>, vector<64x8xbf16>, vector<64x64xf32> -> vector<64x64xf32>
    %cst_61 = arith.constant dense<0xFF800000> : vector<64xf32>
    %152 = vector.multi_reduction <maximumf>, %151, %cst_61 [1] : vector<64x64xf32> to vector<64xf32>
    %153 = vector.shape_cast %152 : vector<64xf32> to vector<64x1xf32>
    %154 = vector.broadcast %153 : vector<64x1xf32> to vector<64x64xf32>
    %155 = arith.subf %151, %154 : vector<64x64xf32>
    %156 = math.exp %155 : vector<64x64xf32>
    %cst_62 = arith.constant dense<0.000000e+00> : vector<64xf32>
    %157 = vector.multi_reduction <add>, %156, %cst_62 [1] : vector<64x64xf32> to vector<64xf32>
    %158 = vector.shape_cast %157 : vector<64xf32> to vector<64x1xf32>
    %159 = tpu.reciprocal %158 {approx = true} : vector<64x1xf32> -> vector<64x1xf32>
    %160 = vector.broadcast %159 : vector<64x1xf32> to vector<64x64xf32>
    %161 = arith.mulf %156, %160 : vector<64x64xf32>
    %162 = arith.truncf %161 : vector<64x64xf32> to vector<64x64xbf16>
    %cst_63 = arith.constant dense<0.000000e+00> : vector<64x8xf32>
    %163 = tpu.matmul %162, %150, %cst_63 {dimension_numbers = #tpu.dot_dimension_numbers<[1], [0], [0], [1], [0, 0, 1, 1], [], []>} : vector<64x64xbf16>, vector<64x8xbf16>, vector<64x8xf32> -> vector<64x8xf32>
    %164 = arith.truncf %163 : vector<64x8xf32> to vector<64x8xbf16>
    %165 = vector.extract_strided_slice %56 {offsets = [0, 0], sizes = [8, 32], strides = [1, 1]} : vector<32x32xbf16> to vector<8x32xbf16>
    %cst_64 = arith.constant dense<0.000000e+00> : vector<64x32xf32>
    %166 = tpu.matmul %164, %165, %cst_64 {dimension_numbers = #tpu.dot_dimension_numbers<[1], [0], [0], [1], [0, 0, 1, 1], [], []>} : vector<64x8xbf16>, vector<8x32xbf16>, vector<64x32xf32> -> vector<64x32xf32>
    %167 = arith.addf %147, %166 : vector<64x32xf32>
    %168 = vector.extract_strided_slice %43 {offsets = [64, 8], sizes = [64, 8], strides = [1, 1]} : vector<128x32xbf16> to vector<64x8xbf16>
    %169 = vector.extract_strided_slice %49 {offsets = [64, 8], sizes = [64, 8], strides = [1, 1]} : vector<128x32xbf16> to vector<64x8xbf16>
    %170 = vector.extract_strided_slice %55 {offsets = [64, 8], sizes = [64, 8], strides = [1, 1]} : vector<128x32xbf16> to vector<64x8xbf16>
    %cst_65 = arith.constant dense<0.000000e+00> : vector<64x64xf32>
    %171 = tpu.matmul %168, %169, %cst_65 {dimension_numbers = #tpu.dot_dimension_numbers<[1], [1], [0], [0], [0, 0, 1, 0], [], []>} : vector<64x8xbf16>, vector<64x8xbf16>, vector<64x64xf32> -> vector<64x64xf32>
    %cst_66 = arith.constant dense<0xFF800000> : vector<64xf32>
    %172 = vector.multi_reduction <maximumf>, %171, %cst_66 [1] : vector<64x64xf32> to vector<64xf32>
    %173 = vector.shape_cast %172 : vector<64xf32> to vector<64x1xf32>
    %174 = vector.broadcast %173 : vector<64x1xf32> to vector<64x64xf32>
    %175 = arith.subf %171, %174 : vector<64x64xf32>
    %176 = math.exp %175 : vector<64x64xf32>
    %cst_67 = arith.constant dense<0.000000e+00> : vector<64xf32>
    %177 = vector.multi_reduction <add>, %176, %cst_67 [1] : vector<64x64xf32> to vector<64xf32>
    %178 = vector.shape_cast %177 : vector<64xf32> to vector<64x1xf32>
    %179 = tpu.reciprocal %178 {approx = true} : vector<64x1xf32> -> vector<64x1xf32>
    %180 = vector.broadcast %179 : vector<64x1xf32> to vector<64x64xf32>
    %181 = arith.mulf %176, %180 : vector<64x64xf32>
    %182 = arith.truncf %181 : vector<64x64xf32> to vector<64x64xbf16>
    %cst_68 = arith.constant dense<0.000000e+00> : vector<64x8xf32>
    %183 = tpu.matmul %182, %170, %cst_68 {dimension_numbers = #tpu.dot_dimension_numbers<[1], [0], [0], [1], [0, 0, 1, 1], [], []>} : vector<64x64xbf16>, vector<64x8xbf16>, vector<64x8xf32> -> vector<64x8xf32>
    %184 = arith.truncf %183 : vector<64x8xf32> to vector<64x8xbf16>
    %185 = vector.extract_strided_slice %56 {offsets = [8, 0], sizes = [8, 32], strides = [1, 1]} : vector<32x32xbf16> to vector<8x32xbf16>
    %cst_69 = arith.constant dense<0.000000e+00> : vector<64x32xf32>
    %186 = tpu.matmul %184, %185, %cst_69 {dimension_numbers = #tpu.dot_dimension_numbers<[1], [0], [0], [1], [0, 0, 1, 1], [], []>} : vector<64x8xbf16>, vector<8x32xbf16>, vector<64x32xf32> -> vector<64x32xf32>
    %187 = arith.addf %167, %186 : vector<64x32xf32>
    %188 = vector.extract_strided_slice %43 {offsets = [64, 16], sizes = [64, 8], strides = [1, 1]} : vector<128x32xbf16> to vector<64x8xbf16>
    %189 = vector.extract_strided_slice %49 {offsets = [64, 16], sizes = [64, 8], strides = [1, 1]} : vector<128x32xbf16> to vector<64x8xbf16>
    %190 = vector.extract_strided_slice %55 {offsets = [64, 16], sizes = [64, 8], strides = [1, 1]} : vector<128x32xbf16> to vector<64x8xbf16>
    %cst_70 = arith.constant dense<0.000000e+00> : vector<64x64xf32>
    %191 = tpu.matmul %188, %189, %cst_70 {dimension_numbers = #tpu.dot_dimension_numbers<[1], [1], [0], [0], [0, 0, 1, 0], [], []>} : vector<64x8xbf16>, vector<64x8xbf16>, vector<64x64xf32> -> vector<64x64xf32>
    %cst_71 = arith.constant dense<0xFF800000> : vector<64xf32>
    %192 = vector.multi_reduction <maximumf>, %191, %cst_71 [1] : vector<64x64xf32> to vector<64xf32>
    %193 = vector.shape_cast %192 : vector<64xf32> to vector<64x1xf32>
    %194 = vector.broadcast %193 : vector<64x1xf32> to vector<64x64xf32>
    %195 = arith.subf %191, %194 : vector<64x64xf32>
    %196 = math.exp %195 : vector<64x64xf32>
    %cst_72 = arith.constant dense<0.000000e+00> : vector<64xf32>
    %197 = vector.multi_reduction <add>, %196, %cst_72 [1] : vector<64x64xf32> to vector<64xf32>
    %198 = vector.shape_cast %197 : vector<64xf32> to vector<64x1xf32>
    %199 = tpu.reciprocal %198 {approx = true} : vector<64x1xf32> -> vector<64x1xf32>
    %200 = vector.broadcast %199 : vector<64x1xf32> to vector<64x64xf32>
    %201 = arith.mulf %196, %200 : vector<64x64xf32>
    %202 = arith.truncf %201 : vector<64x64xf32> to vector<64x64xbf16>
    %cst_73 = arith.constant dense<0.000000e+00> : vector<64x8xf32>
    %203 = tpu.matmul %202, %190, %cst_73 {dimension_numbers = #tpu.dot_dimension_numbers<[1], [0], [0], [1], [0, 0, 1, 1], [], []>} : vector<64x64xbf16>, vector<64x8xbf16>, vector<64x8xf32> -> vector<64x8xf32>
    %204 = arith.truncf %203 : vector<64x8xf32> to vector<64x8xbf16>
    %205 = vector.extract_strided_slice %56 {offsets = [16, 0], sizes = [8, 32], strides = [1, 1]} : vector<32x32xbf16> to vector<8x32xbf16>
    %cst_74 = arith.constant dense<0.000000e+00> : vector<64x32xf32>
    %206 = tpu.matmul %204, %205, %cst_74 {dimension_numbers = #tpu.dot_dimension_numbers<[1], [0], [0], [1], [0, 0, 1, 1], [], []>} : vector<64x8xbf16>, vector<8x32xbf16>, vector<64x32xf32> -> vector<64x32xf32>
    %207 = arith.addf %187, %206 : vector<64x32xf32>
    %208 = vector.extract_strided_slice %43 {offsets = [64, 24], sizes = [64, 8], strides = [1, 1]} : vector<128x32xbf16> to vector<64x8xbf16>
    %209 = vector.extract_strided_slice %49 {offsets = [64, 24], sizes = [64, 8], strides = [1, 1]} : vector<128x32xbf16> to vector<64x8xbf16>
    %210 = vector.extract_strided_slice %55 {offsets = [64, 24], sizes = [64, 8], strides = [1, 1]} : vector<128x32xbf16> to vector<64x8xbf16>
    %cst_75 = arith.constant dense<0.000000e+00> : vector<64x64xf32>
    %211 = tpu.matmul %208, %209, %cst_75 {dimension_numbers = #tpu.dot_dimension_numbers<[1], [1], [0], [0], [0, 0, 1, 0], [], []>} : vector<64x8xbf16>, vector<64x8xbf16>, vector<64x64xf32> -> vector<64x64xf32>
    %cst_76 = arith.constant dense<0xFF800000> : vector<64xf32>
    %212 = vector.multi_reduction <maximumf>, %211, %cst_76 [1] : vector<64x64xf32> to vector<64xf32>
    %213 = vector.shape_cast %212 : vector<64xf32> to vector<64x1xf32>
    %214 = vector.broadcast %213 : vector<64x1xf32> to vector<64x64xf32>
    %215 = arith.subf %211, %214 : vector<64x64xf32>
    %216 = math.exp %215 : vector<64x64xf32>
    %cst_77 = arith.constant dense<0.000000e+00> : vector<64xf32>
    %217 = vector.multi_reduction <add>, %216, %cst_77 [1] : vector<64x64xf32> to vector<64xf32>
    %218 = vector.shape_cast %217 : vector<64xf32> to vector<64x1xf32>
    %219 = tpu.reciprocal %218 {approx = true} : vector<64x1xf32> -> vector<64x1xf32>
    %220 = vector.broadcast %219 : vector<64x1xf32> to vector<64x64xf32>
    %221 = arith.mulf %216, %220 : vector<64x64xf32>
    %222 = arith.truncf %221 : vector<64x64xf32> to vector<64x64xbf16>
    %cst_78 = arith.constant dense<0.000000e+00> : vector<64x8xf32>
    %223 = tpu.matmul %222, %210, %cst_78 {dimension_numbers = #tpu.dot_dimension_numbers<[1], [0], [0], [1], [0, 0, 1, 1], [], []>} : vector<64x64xbf16>, vector<64x8xbf16>, vector<64x8xf32> -> vector<64x8xf32>
    %224 = arith.truncf %223 : vector<64x8xf32> to vector<64x8xbf16>
    %225 = vector.extract_strided_slice %56 {offsets = [24, 0], sizes = [8, 32], strides = [1, 1]} : vector<32x32xbf16> to vector<8x32xbf16>
    %cst_79 = arith.constant dense<0.000000e+00> : vector<64x32xf32>
    %226 = tpu.matmul %224, %225, %cst_79 {dimension_numbers = #tpu.dot_dimension_numbers<[1], [0], [0], [1], [0, 0, 1, 1], [], []>} : vector<64x8xbf16>, vector<8x32xbf16>, vector<64x32xf32> -> vector<64x32xf32>
    %227 = arith.addf %207, %226 : vector<64x32xf32>
    %228 = vector.broadcast %57 : vector<1x32xf32> to vector<64x32xf32>
    %229 = arith.addf %227, %228 : vector<64x32xf32>
    %230 = vector.extract_strided_slice %0 {offsets = [1, 0, 0], sizes = [1, 64, 32], strides = [1, 1, 1]} : vector<2x64x32xf32> to vector<1x64x32xf32>
    %231 = vector.shape_cast %230 : vector<1x64x32xf32> to vector<64x32xf32>
    %232 = arith.addf %229, %231 : vector<64x32xf32>
    %c1 = arith.constant 1 : index
    %c0_80 = arith.constant 0 : index
    %c0_81 = arith.constant 0 : index
    %233 = vector.load %arg14[%c1, %c0_80, %c0_81] : memref<2x64x32xf32, #tpu.memory_space<vmem>>, vector<1x64x32xf32>
    %234 = vector.shape_cast %233 : vector<1x64x32xf32> to vector<64x32xf32>
    %235 = vector.shape_cast %232 : vector<64x32xf32> to vector<1x64x32xf32>
    tpu.vector_store %arg14[%c1, %c0_80, %c0_81], %235 {strides = array<i32>} : memref<2x64x32xf32, #tpu.memory_space<vmem>>, vector<1x64x32xf32>,
    return
  }
  func.func @transform_0(%arg0: i32) -> (i32, i32, i32) {
    %c0_i32 = arith.constant 0 : i32
    %c0_i32_0 = arith.constant 0 : i32
    %c0_i32_1 = arith.constant 0 : i32
    %c0_i32_2 = arith.constant 0 : i32
    return %c0_i32, %c0_i32_0, %c0_i32_1 : i32, i32, i32
  }
  func.func @transform_1(%arg0: i32) -> (i32, i32) {
    %c0_i32 = arith.constant 0 : i32
    %c0_i32_0 = arith.constant 0 : i32
    %c0_i32_1 = arith.constant 0 : i32
    return %c0_i32, %c0_i32_0 : i32, i32
  }
  func.func @transform_2(%arg0: i32) -> (i32, i32) {
    %c0_i32 = arith.constant 0 : i32
    %c0_i32_0 = arith.constant 0 : i32
    %c0_i32_1 = arith.constant 0 : i32
    return %c0_i32, %c0_i32_0 : i32, i32
  }
  func.func @transform_3(%arg0: i32) -> (i32, i32) {
    %c0_i32 = arith.constant 0 : i32
    %c0_i32_0 = arith.constant 0 : i32
    %c0_i32_1 = arith.constant 0 : i32
    return %c0_i32, %c0_i32_0 : i32, i32
  }
  func.func @transform_4(%arg0: i32) -> (i32, i32) {
    %c0_i32 = arith.constant 0 : i32
    %c0_i32_0 = arith.constant 0 : i32
    %c0_i32_1 = arith.constant 0 : i32
    return %c0_i32, %c0_i32_0 : i32, i32
  }
  func.func @transform_5(%arg0: i32) -> (i32, i32) {
    %c0_i32 = arith.constant 0 : i32
    %c0_i32_0 = arith.constant 0 : i32
    %c0_i32_1 = arith.constant 0 : i32
    return %c0_i32, %c0_i32_0 : i32, i32
  }
  func.func @transform_6(%arg0: i32) -> (i32, i32) {
    %c0_i32 = arith.constant 0 : i32
    %c0_i32_0 = arith.constant 0 : i32
    %c0_i32_1 = arith.constant 0 : i32
    return %c0_i32, %c0_i32_0 : i32, i32
  }
  func.func @transform_7(%arg0: i32) -> (i32, i32) {
    %c0_i32 = arith.constant 0 : i32
    %c0_i32_0 = arith.constant 0 : i32
    %c0_i32_1 = arith.constant 0 : i32
    return %c0_i32, %c0_i32_0 : i32, i32
  }
  func.func @transform_8(%arg0: i32) -> (i32, i32) {
    %c0_i32 = arith.constant 0 : i32
    %c0_i32_0 = arith.constant 0 : i32
    %c0_i32_1 = arith.constant 0 : i32
    return %c0_i32, %c0_i32_0 : i32, i32
  }
  func.func @transform_9(%arg0: i32) -> (i32, i32) {
    %c0_i32 = arith.constant 0 : i32
    %c0_i32_0 = arith.constant 0 : i32
    %c0_i32_1 = arith.constant 0 : i32
    return %c0_i32, %c0_i32_0 : i32, i32
  }
  func.func @transform_10(%arg0: i32) -> (i32, i32) {
    %c0_i32 = arith.constant 0 : i32
    %c0_i32_0 = arith.constant 0 : i32
    %c0_i32_1 = arith.constant 0 : i32
    return %c0_i32, %c0_i32_0 : i32, i32
  }
  func.func @transform_11(%arg0: i32) -> (i32, i32) {
    %c0_i32 = arith.constant 0 : i32
    %c0_i32_0 = arith.constant 0 : i32
    %c0_i32_1 = arith.constant 0 : i32
    return %c0_i32, %c0_i32_0 : i32, i32
  }
  func.func @transform_12(%arg0: i32) -> (i32, i32) {
    %c0_i32 = arith.constant 0 : i32
    %c0_i32_0 = arith.constant 0 : i32
    %c0_i32_1 = arith.constant 0 : i32
    return %c0_i32, %c0_i32_0 : i32, i32
  }
  func.func @transform_13(%arg0: i32) -> (i32, i32, i32) {
    %c0_i32 = arith.constant 0 : i32
    %c0_i32_0 = arith.constant 0 : i32
    %c0_i32_1 = arith.constant 0 : i32
    %c0_i32_2 = arith.constant 0 : i32
    return %c0_i32, %c0_i32_0, %c0_i32_1 : i32, i32, i32
  }
}

</mosaic_0001>

<bundles_post_ra>
// kernel: tpu_custom_call.1
= control target key start
LH: loop header
LB: loop body
LE: loop exit
PB: predicated region body
PF: predicated region fallthrough
CT: control target
= control target key end

     0   :  { %vm61_vm0 = vcmask 261120   ;;  %v5034_v0 = vmov 0.0|0.0   ;;  %vm5035_vm1 = vmmov 0   ;;  %v5036_v4 = vmov 0.0   ;;  %s5040_s28 = smov 104   ;;  %s6609_s3 = inlined_call_operand.vmem [shape: f32[32,4], index: 3, kind: input, shape index: {}]   ;;  %s6610_s0 = inlined_call_operand.vmem [shape: f32[2,64,32], index: 0, kind: input, shape index: {}]   ;;  %s6611_s4 = inlined_call_operand.vmem [shape: f32[4,32], index: 4, kind: input, shape index: {}]   ;;  %s6612_s5 = inlined_call_operand.vmem [shape: bf16[32,32], index: 5, kind: input, shape index: {}]   ;;  %s6613_s7 = inlined_call_operand.vmem [shape: bf16[32,32], index: 7, kind: input, shape index: {}]   ;;  %s6614_s9 = inlined_call_operand.vmem [shape: bf16[32,32], index: 9, kind: input, shape index: {}]   ;;  %s6615_s1 = inlined_call_operand.vmem [shape: f32[1,32], index: 1, kind: input, shape index: {}]   ;;  %s6616_s2 = inlined_call_operand.vmem [shape: f32[1,32], index: 2, kind: input, shape index: {}]   ;;  %s6617_s6 = inlined_call_operand.vmem [shape: f32[1,32], index: 6, kind: input, shape index: {}]   ;;  %s6618_s8 = inlined_call_operand.vmem [shape: f32[1,32], index: 8, kind: input, shape index: {}]   ;;  %s6619_s10 = inlined_call_operand.vmem [shape: f32[1,32], index: 10, kind: input, shape index: {}]   ;;  %s6620_s11 = inlined_call_operand.vmem [shape: bf16[32,32], index: 11, kind: input, shape index: {}]   ;;  %s6621_s12 = inlined_call_operand.vmem [shape: f32[1,32], index: 12, kind: input, shape index: {}]   ;;  %s6622_s13 = inlined_call_operand.vmem [shape: f32[2,64,32], index: 13, kind: output, shape index: {}]  }
   0x1   :  { %4649 = vmatprep.subr.bf16.mxu0 %v5034_v0  ;;  %v174_v1 = vld [vmem:[%s6609_s3] sm:$0xff]  ;;  %v175_v2 = vld [vmem:[%s6609_s3 + $0x8] sm:$0xff]  ;;  %v176_v3 = vld [vmem:[%s6609_s3 + $0x10] sm:$0xff]  ;;  %4245 = vmatprep.mubr.msk.f32.mxu0 %vm5035_vm1, %v5036_v4  ;;  %vm164_vm2 = vcmask 1041409   ;;  %vm169_vm3 = vcmask 1043459   ;;  %vm172_vm4 = vcmask 1041408  }
   0x2   :  { %v4650_v5 = vpack.c.bf16 %v175_v2, %v174_v1  ;;  %v177_v6 = vld [vmem:[%s6609_s3 + $0x18] sm:$0xff]  ;;  %v5126_v7 = vld [vmem:[%s6610_s0] sm:$0xff]  ;;  %v5131_v8 = vld [vmem:[%s6610_s0 + $0x8] sm:$0xff]  ;;  %4248 = vmatprep.subr.mxu1 %v5036_v4  ;;  %4250 = vmatprep.mubr.msk.f32.mxu1 %vm5035_vm1, %v5036_v4  ;;  %vm266_vm5 = vcmask 1043456   ;;  %vm262_vm6 = vcmask 31744   ;;  %vm880_vm7 = vcmask 64512  }
   0x3   :  { %v5136_v9 = vld [vmem:[%s6610_s0 + $0x10] sm:$0xff]  ;;  %v62_v10 = vsel %vm61_vm0, %v5126_v7, 0.0  ;;  %v63_v11 = vsel %vm61_vm0, %v5131_v8, 0.0  ;;  %v4653_v12 = vpack.c.bf16 %v177_v6, %v176_v3  ;;  %v5145_v13 = vld [vmem:[%s6610_s0 + $0x18] sm:$0xff]  ;;  %v5152_v16 = vld [vmem:[%s6610_s0 + $0x40] sm:$0xff]  ;;  %v104_v34 = vmul.f32 %v5126_v7, %v5126_v7 }
   0x4   :  { %4651 = vmatpush3.bf16.msra.mxu0 %v4650_v5  ;;  %v64_v14 = vadd.f32 %v63_v11, %v62_v10  ;;  %v65_v15 = vsel %vm61_vm0, %v5136_v9, 0.0  ;;  %v5157_v17 = vld [vmem:[%s6610_s0 + $0x48] sm:$0xff]  ;;  %v5162_v18 = vld [vmem:[%s6610_s0 + $0x50] sm:$0xff]  ;;  %v67_v19 = vsel %vm61_vm0, %v5145_v13, 0.0  ;;  %v5169_v20 = vld [vmem:[%s6610_s0 + $0x20] sm:$0xff]  ;;  %v83_v22 = vsel %vm61_vm0, %v5152_v16, 0.0 }
   0x5   :  { %4652 = vmatprep.subr.bf16.mxu0 %v5034_v0  ;;  %v84_v23 = vsel %vm61_vm0, %v5157_v17, 0.0  ;;  %v86_v24 = vsel %vm61_vm0, %v5162_v18, 0.0  ;;  %v5180_v25 = vld [vmem:[%s6610_s0 + $0x28] sm:$0xff]  ;;  %v5185_v26 = vld [vmem:[%s6610_s0 + $0x58] sm:$0xff]  ;;  %v69_v27 = vsel %vm61_vm0, %v5169_v20, 0.0  ;;  %v5192_v29 = vld [vmem:[%s6610_s0 + $0x30] sm:$0xff]  ;;  %v105_v40 = vmul.f32 %v5131_v8, %v5131_v8 }
   0x6   :  { %v66_v21 = vadd.f32 %v65_v15, %v64_v14  ;;  %v85_v28 = vadd.f32 %v84_v23, %v83_v22  ;;  %v5197_v30 = vld [vmem:[%s6610_s0 + $0x38] sm:$0xff]  ;;  %v71_v32 = vsel %vm61_vm0, %v5180_v25, 0.0  ;;  %v88_v33 = vsel %vm61_vm0, %v5185_v26, 0.0  ;;  %v5208_v35 = vld [vmem:[%s6610_s0 + $0x60] sm:$0xff]  ;;  %v5213_v36 = vld [vmem:[%s6610_s0 + $0x68] sm:$0xff] }
   0x7   :  { %v73_v37 = vsel %vm61_vm0, %v5192_v29, 0.0  ;;  %v75_v38 = vsel %vm61_vm0, %v5197_v30, 0.0  ;;  %v5224_v41 = vld [vmem:[%s6610_s0 + $0x70] sm:$0xff]  ;;  %v5229_v42 = vld [vmem:[%s6610_s0 + $0x78] sm:$0xff]  ;;  %v90_v44 = vsel %vm61_vm0, %v5208_v35, 0.0  ;;  %v92_v45 = vsel %vm61_vm0, %v5213_v36, 0.0 }
   0x8   :  { %4654 = vmatpush3.bf16.msra.mxu0 %v4653_v12  ;;  %v68_v31 = vadd.f32 %v67_v19, %v66_v21  ;;  %v87_v39 = vadd.f32 %v86_v24, %v85_v28  ;;  %v106_v46 = vmul.f32 %v5136_v9, %v5136_v9  ;;  %v94_v48 = vsel %vm61_vm0, %v5224_v41, 0.0 }
   0x9   :  { %v96_v49 = vsel %vm61_vm0, %v5229_v42, 0.0  ;;  %v107_v50 = vmul.f32 %v5145_v13, %v5145_v13  ;;  %v108_v52 = vmul.f32 %v5169_v20, %v5169_v20  ;;  %v112_v53 = vmul.f32 %v5152_v16, %v5152_v16 }
   0xa   :  { %v70_v43 = vadd.f32 %v69_v27, %v68_v31  ;;  %v89_v47 = vadd.f32 %v88_v33, %v87_v39  ;;  %v113_v54 = vmul.f32 %v5157_v17, %v5157_v17  ;;  %v114_v56 = vmul.f32 %v5162_v18, %v5162_v18 }
   0xb   :  { %v120_v57 = vsel %vm61_vm0, %v104_v34, 0.0  ;;  %v121_v58 = vsel %vm61_vm0, %v105_v40, 0.0  ;;  %v109_v60 = vmul.f32 %v5180_v25, %v5180_v25  ;;  %v123_v62 = vsel %vm61_vm0, %v106_v46, 0.0 }
   0xc   :  { %v72_v51 = vadd.f32 %v71_v32, %v70_v43  ;;  %v91_v55 = vadd.f32 %v90_v44, %v89_v47  ;;  %v122_v61 = vadd.f32 %v121_v58, %v120_v57  ;;  %v110_v0 = vmul.f32 %v5192_v29, %v5192_v29 }
   0xd   :  { %v115_v1 = vmul.f32 %v5185_v26, %v5185_v26  ;;  %v125_v2 = vsel %vm61_vm0, %v107_v50, 0.0  ;;  %v116_v4 = vmul.f32 %v5208_v35, %v5208_v35  ;;  %v141_v6 = vsel %vm61_vm0, %v112_v53, 0.0 }
   0xe   :  { %v74_v59 = vadd.f32 %v73_v37, %v72_v51  ;;  %v93_v63 = vadd.f32 %v92_v45, %v91_v55  ;;  %v124_v5 = vadd.f32 %v123_v62, %v122_v61  ;;  %v127_v11 = vsel %vm61_vm0, %v108_v52, 0.0 }
   0xf   :  { %v142_v12 = vsel %vm61_vm0, %v113_v54, 0.0  ;;  %v144_v14 = vsel %vm61_vm0, %v114_v56, 0.0  ;;  %v111_v19 = vmul.f32 %v5197_v30, %v5197_v30  ;;  %v117_v24 = vmul.f32 %v5213_v36, %v5213_v36 }
  0x10   :  { %v76_v3 = vadd.f32 %v75_v38, %v74_v59  ;;  %v95_v10 = vadd.f32 %v94_v48, %v93_v63  ;;  %v126_v21 = vadd.f32 %v125_v2, %v124_v5  ;;  %v143_v22 = vadd.f32 %v142_v12, %v141_v6 }
  0x11   :  { %v129_v27 = vsel %vm61_vm0, %v109_v60, 0.0  ;;  %v146_v28 = vsel %vm61_vm0, %v115_v1, 0.0  ;;  %v118_v34 = vmul.f32 %v5224_v41, %v5224_v41  ;;  %v131_v37 = vsel %vm61_vm0, %v110_v0, 0.0 }
  0x12   :  { %v77_v15 = vrot.slane %v76_v3, 4  ;;  %v97_v23 = vadd.f32 %v96_v49, %v95_v10  ;;  %v128_v31 = vadd.f32 %v127_v11, %v126_v21  ;;  %v145_v32 = vadd.f32 %v144_v14, %v143_v22 }
  0x13   :  { %v148_v38 = vsel %vm61_vm0, %v116_v4, 0.0  ;;  %v119_v45 = vmul.f32 %v5229_v42, %v5229_v42  ;;  %v133_v46 = vsel %vm61_vm0, %v111_v19, 0.0  ;;  %v150_v47 = vsel %vm61_vm0, %v117_v24, 0.0 }
  0x14   :  { %v98_v33 = vrot.slane %v97_v23, 4  ;;  %v78_v39 = vadd.f32 %v77_v15, %v76_v3  ;;  %v130_v40 = vadd.f32 %v129_v27, %v128_v31  ;;  %v147_v43 = vadd.f32 %v146_v28, %v145_v32 }
  0x15   :  { %v152_v50 = vsel %vm61_vm0, %v118_v34, 0.0  ;;  %v154_v55 = vsel %vm61_vm0, %v119_v45, 0.0  ;;  %v4754_v45 = vld [vmem:[%s6614_s9] sm:$0xff]   ;;  %vm970_vm8 = vcmask 523264  }
  0x16   :  { %v99_v44 = vadd.f32 %v98_v33, %v97_v23  ;;  %v132_v48 = vadd.f32 %v131_v37, %v130_v40  ;;  %v149_v49 = vadd.f32 %v148_v38, %v147_v43  ;;  %v79_v51 = vrot.slane %v78_v39, 2  ;;  %v261_v23 = vld [vmem:[%s6611_s4] sm:$0xf]  ;;  %v4752_v43 = vld [vmem:[%s6612_s5 + $0x8] sm:$0xff]  }
  0x17   :  { %4249 = vmatpush3.msk.msra.mxu1 %vm266_vm5, %v261_v23  ;;  %v4751_v40 = vld [vmem:[%s6613_s7] sm:$0xff]  }
  0x18   :  { %v100_v52 = vrot.slane %v99_v44, 2  ;;  %v134_v53 = vadd.f32 %v133_v46, %v132_v48  ;;  %v151_v54 = vadd.f32 %v150_v47, %v149_v49  ;;  %v80_v58 = vadd.f32 %v79_v51, %v78_v39  ;;  %v4750_v39 = vld [vmem:[%s6612_s5] sm:$0xff]   ;;  %4273 = vmatprep.subr.bf16.mxu0 %v4751_v40 }
  0x19   :  { %4253 = vmatprep.subr.bf16.mxu1 %v4750_v39  ;;  %v5037_v46 = vmov 1966171168   ;;  %v363_v48 = vlaneseq  ;;  %v3892_v51 = vld [vmem:[%s6615_s1] ss:$0 sm:$0xff] }
  0x1a   :  { %v135_v56 = vrot.slane %v134_v53, 4  ;;  %v153_v57 = vadd.f32 %v152_v50, %v151_v54  ;;  %v101_v59 = vadd.f32 %v100_v52, %v99_v44  ;;  %v81_v0 = vrot.slane %v80_v58, 1  ;;  %v4753_v44 = vld [vmem:[%s6613_s7 + $0x8] sm:$0xff]  }
  0x1b   :  { %v361_v47 = vunpack.c.l.s4 %v5037_v46  ;;  %v364_v50 = vshrl.u32 %v363_v48, 7 }
  0x1c   :  { %v136_v60 = vadd.f32 %v135_v56, %v134_v53  ;;  %v155_v61 = vadd.f32 %v154_v55, %v153_v57  ;;  %v102_v1 = vrot.slane %v101_v59, 1  ;;  %v82_v6 = vadd.f32 %v81_v0, %v80_v58  ;;  %v3893_v58 = vld [vmem:[%s6616_s2] ss:$0 sm:$0xff] }
  0x1d   :  { %v362_v49 = vunpack.c.0.s8 %v361_v47 }
  0x1e   :  { %v137_v62 = vrot.slane %v136_v60, 2  ;;  %v156_v63 = vrot.slane %v155_v61, 4  ;;  %v103_v10 = vadd.f32 %v102_v1, %v101_v59 }
  0x1f   :  { %v365_v52 = vsub.s32 %v362_v49, %v364_v50 }
  0x20   :  { %v138_v2 = vadd.f32 %v137_v62, %v136_v60  ;;  %v157_v3 = vadd.f32 %v156_v63, %v155_v61  ;;  %v165_v19 = vsel %vm164_vm2, %v103_v10, %v82_v6  ;;  %v386_v62 = vsub.s32 0, %v364_v50 }
  0x22   :  { %v139_v4 = vrot.slane %v138_v2, 1  ;;  %v158_v5 = vrot.slane %v157_v3, 2 }
  0x24   :  { %v159_v11 = vadd.f32 %v158_v5, %v157_v3  ;;  %v140_v12 = vadd.f32 %v139_v4, %v138_v2 }
  0x26   :  { %v160_v14 = vrot.slane %v159_v11, 1 }
  0x28   :  { %v161_v15 = vadd.f32 %v160_v14, %v159_v11 }
  0x2a   :  { %v170_v21 = vsel %vm169_vm3, %v161_v15, %v140_v12 }
  0x2b   :  { %v173_v22 = vsel %vm172_vm4, %v165_v19, %v170_v21 }
  0x2c   :  { %4246 = vmatmul.mubr.msk.f32.vlgmr.msra.gmra.mrb[0].mxu0 %vm61_vm0, %v173_v22 }
  0x2d   :  { %4274 = vmatpush3.bf16.msra.mxu0 %v4751_v40 }
  0x2e   :  { %4275 = vmatprep.subr.bf16.mxu0 %v4753_v44 }
  0x31   :  { %4276 = vmatpush3.bf16.msra.mxu0 %v4753_v44 }
  0xff   :  { %v247_v24 = vpop.f32.mrb[0].mxu0 }
 0x100   :  { %v252_v27 = vmul.f32 0.001953125, %v247_v24  ;;  %v4247_v28 = vpop.f32.mrb[1].mxu0 }
 0x102   :  { %v253_v31 = vmul.f32 %v252_v27, %v252_v27 }
 0x104   :  { %v255_v32 = vrot.slane %v253_v31, 6 }
 0x106   :  { %v257_v33 = vsub.f32 %v252_v27, %v255_v32 }
 0x108   :  { %v258_v34 = vadd.f32 1e-06, %v257_v33 }
 0x10a   :  { %4756 = vrsqrt.f32 %v258_v34 }
 0x114   :  { %v4757_v37 = vpop.eup %4756 }
 0x115   :  { %v260_v38 = vsel %vm172_vm4, %v252_v27, %v4757_v37 }
 0x116   :  { %4251 = vmatmul.mubr.msk.f32.vlgmr.msra.gmra.mrb[0].mxu1 %vm262_vm6, %v260_v38 }
 0x117   :  { %4254 = vmatpush3.bf16.msra.mxu1 %v4750_v39 }
 0x118   :  { %4255 = vmatprep.subr.bf16.mxu1 %v4752_v43 }
 0x11b   :  { %4256 = vmatpush3.bf16.msra.mxu1 %v4752_v43 }
 0x11c   :  { %4293 = vmatprep.subr.bf16.mxu1 %v4754_v45 }
 0x1e9   :  { %v336_v53 = vpop.f32.mrb[0].mxu1 }
 0x1ea   :  { %v347_v54 = vmul.f32 %v3892_v51, %v336_v53  ;;  %v4252_v55 = vpop.f32.mrb[1].mxu1 }
 0x1eb   :  { %v5362_v55 = vld [vmem:[%s6618_s8] ss:$0 sm:$0xff] }
 0x1ec   :  { %v350_v56 = vrot.slane %v347_v54, 2  ;;  %v366_v57 = vrot.slane %v347_v54, %v365_v52 }
 0x1ee   :  { %v352_v59 = vmul.f32 %v350_v56, %v336_v53  ;;  %v367_v60 = vcombine.high %v366_v57, %v366_v57  ;;  %v374_v61 = vrot.slane %v366_v57, %v365_v52 }
 0x1f0   :  { %v359_v63 = vsub.f32 %v3893_v58, %v352_v59  ;;  %v382_v0 = vcombine.high %v374_v61, %v374_v61  ;;  %v381_v1 = vrot.slane %v367_v60, %v365_v52 }
 0x1f2   :  { %v387_v2 = vrot.slane %v382_v0, %v386_v62  ;;  %v417_v3 = vrot.slane %v359_v63, %v365_v52  ;;  %v383_v6 = vcombine.high %v381_v1, %v381_v1 }
 0x1f4   :  { %v418_v4 = vcombine.high %v417_v3, %v417_v3  ;;  %v425_v5 = vrot.slane %v417_v3, %v365_v52  ;;  %v394_v11 = vmul.f32 %v387_v2, %v5126_v7  ;;  %v395_v12 = vmul.f32 %v387_v2, %v5131_v8 }
 0x1f5   :  { %v396_v14 = vmul.f32 %v387_v2, %v5136_v9  ;;  %v397_v15 = vmul.f32 %v387_v2, %v5145_v13  ;;  %v398_v19 = vmul.f32 %v387_v2, %v5169_v20  ;;  %v399_v21 = vmul.f32 %v387_v2, %v5180_v25  ;;  %v4755_v9 = vld [vmem:[%s6614_s9 + $0x8] sm:$0xff]  }
 0x1f6   :  { %v436_v10 = vrot.slane %v425_v5, %v386_v62  ;;  %v432_v22 = vrot.slane %v418_v4, %v365_v52  ;;  %v391_v33 = vrot.slane %v383_v6, %v386_v62  ;;  %v400_v13 = vmul.f32 %v387_v2, %v5192_v29 }
 0x1f7   :  { %v401_v20 = vmul.f32 %v387_v2, %v5197_v30 }
 0x1f8   :  { %v443_v23 = vadd.f32 %v436_v10, %v394_v11  ;;  %v444_v24 = vadd.f32 %v436_v10, %v395_v12  ;;  %v445_v27 = vadd.f32 %v436_v10, %v396_v14  ;;  %v446_v28 = vadd.f32 %v436_v10, %v397_v15 }
 0x1f9   :  { %v447_v31 = vadd.f32 %v436_v10, %v398_v19  ;;  %v448_v32 = vadd.f32 %v436_v10, %v399_v21  ;;  %v440_v37 = vrot.slane %v432_v22, %v386_v62  ;;  %v402_v25 = vmul.f32 %v391_v33, %v5152_v16 }
 0x1fa   :  { %v459_v34 = vpack.c.bf16 %v444_v24, %v443_v23  ;;  %v460_v7 = vpack.c.bf16 %v446_v28, %v445_v27  ;;  %v403_v38 = vmul.f32 %v391_v33, %v5157_v17  ;;  %v449_v39 = vadd.f32 %v436_v10, %v400_v13 }
 0x1fb   :  { %v461_v8 = vpack.c.bf16 %v448_v32, %v447_v31  ;;  %v450_v40 = vadd.f32 %v436_v10, %v401_v20  ;;  %v451_v43 = vadd.f32 %v440_v37, %v402_v25  ;;  %v404_v29 = vmul.f32 %v391_v33, %v5162_v18 }
 0x1fc   :  { %4257 = vmatprep.mubr.msk.bf16.mxu1 %vm61_vm0, %v459_v34  ;;  %4277 = vmatprep.mubr.msk.bf16.mxu0 %vm61_vm0, %v459_v34  ;;  %v452_v44 = vadd.f32 %v440_v37, %v403_v38  ;;  %v405_v30 = vmul.f32 %v391_v33, %v5185_v26  ;;  %v406_v16 = vmul.f32 %v391_v33, %v5208_v35 }
 0x1fd   :  { %4258 = vmatmul.mubr.msk.bf16.vlgmr.msra.gmra.mrb[4].mxu1 %vm61_vm0, %v460_v7  ;;  %4278 = vmatmul.mubr.msk.bf16.vlgmr.msra.gmra.mrb[4].mxu0 %vm61_vm0, %v460_v7  ;;  %v462_v46 = vpack.c.bf16 %v450_v40, %v449_v39  ;;  %v407_v17 = vmul.f32 %v391_v33, %v5213_v36  ;;  %v408_v18 = vmul.f32 %v391_v33, %v5224_v41 }
 0x1fe   :  { %4261 = vmatprep.mubr.msk.bf16.mxu1 %vm61_vm0, %v461_v8  ;;  %4281 = vmatprep.mubr.msk.bf16.mxu0 %vm61_vm0, %v461_v8  ;;  %v463_v47 = vpack.c.bf16 %v452_v44, %v451_v43  ;;  %v454_v48 = vadd.f32 %v440_v37, %v405_v30  ;;  %v455_v49 = vadd.f32 %v440_v37, %v406_v16 }
 0x1ff   :  { %4294 = vmatpush3.bf16.msra.mxu1 %v4754_v45  ;;  %v453_v45 = vadd.f32 %v440_v37, %v404_v29  ;;  %v456_v50 = vadd.f32 %v440_v37, %v407_v17  ;;  %v409_v26 = vmul.f32 %v391_v33, %v5229_v42  ;;  %v457_v35 = vadd.f32 %v440_v37, %v408_v18  ;;  %v5357_v42 = vld [vmem:[%s6617_s6] ss:$0 sm:$0xff]  ;;  %s5038_s6 = smov 120  }
 0x200   :  { %4295 = vmatprep.subr.bf16.mxu1 %v4755_v9 }
 0x201   :  { %v464_v51 = vpack.c.bf16 %v454_v48, %v453_v45  ;;  %v465_v52 = vpack.c.bf16 %v456_v50, %v455_v49  ;;  %v458_v36 = vadd.f32 %v440_v37, %v409_v26 }
 0x203   :  { %4296 = vmatpush3.bf16.msra.mxu1 %v4755_v9  ;;  %v466_v53 = vpack.c.bf16 %v458_v36, %v457_v35 }
 0x205   :  { %4262 = vmatmul.mubr.msk.bf16.gmra.mrb[8].mxu1 %vm61_vm0, %v462_v46  ;;  %4282 = vmatmul.mubr.msk.bf16.gmra.mrb[8].mxu0 %vm61_vm0, %v462_v46 }
 0x206   :  { %4265 = vmatprep.mubr.msk.bf16.mxu1 %vm61_vm0, %v463_v47  ;;  %4285 = vmatprep.mubr.msk.bf16.mxu0 %vm61_vm0, %v463_v47 }
 0x20d   :  { %4266 = vmatmul.mubr.msk.bf16.gmra.mrb[12].mxu1 %vm61_vm0, %v464_v51  ;;  %4286 = vmatmul.mubr.msk.bf16.gmra.mrb[12].mxu0 %vm61_vm0, %v464_v51 }
 0x20e   :  { %4269 = vmatprep.mubr.msk.bf16.mxu1 %vm61_vm0, %v465_v52  ;;  %4289 = vmatprep.mubr.msk.bf16.mxu0 %vm61_vm0, %v465_v52 }
 0x215   :  { %4270 = vmatmul.mubr.msk.bf16.gmra.mrb[16].mxu1 %vm61_vm0, %v466_v53  ;;  %4290 = vmatmul.mubr.msk.bf16.gmra.mrb[16].mxu0 %vm61_vm0, %v466_v53 }
 0x216   :  { %4297 = vmatprep.mubr.msk.bf16.mxu1 %vm61_vm0, %v459_v34 }
 0x21d   :  { %4298 = vmatmul.mubr.msk.bf16.vlgmr.msra.gmra.mrb[20].mxu1 %vm61_vm0, %v460_v7 }
 0x21e   :  { %4301 = vmatprep.mubr.msk.bf16.mxu1 %vm61_vm0, %v461_v8 }
 0x225   :  { %4302 = vmatmul.mubr.msk.bf16.gmra.mrb[24].mxu1 %vm61_vm0, %v462_v46 }
 0x226   :  { %4305 = vmatprep.mubr.msk.bf16.mxu1 %vm61_vm0, %v463_v47 }
 0x22d   :  { %4306 = vmatmul.mubr.msk.bf16.gmra.mrb[28].mxu1 %vm61_vm0, %v464_v51 }
 0x22e   :  { %4309 = vmatprep.mubr.msk.bf16.mxu1 %vm61_vm0, %v465_v52 }
 0x235   :  { %4310 = vmatmul.mubr.msk.bf16.gmra.mrb[32].mxu1 %vm61_vm0, %v466_v53 }
 0x2d0   :  { %v4259_v41 = vpop.f32.mrb[4].mxu1  ;;  %v4279_v54 = vpop.f32.mrb[4].mxu0 }
 0x2d1   :  { %v548_v56 = vpop.f32.mrb[5].mxu1  ;;  %v676_v57 = vpop.f32.mrb[5].mxu0  ;;  %v557_v60 = vadd.f32 %v4259_v41, %v5357_v42  ;;  %v685_v61 = vadd.f32 %v4279_v54, %v5362_v55 }
 0x2d2   :  { %v4260_v58 = vpop.f32.mrb[6].mxu1  ;;  %v4280_v59 = vpop.f32.mrb[6].mxu0  ;;  %v549_v2 = vadd.f32 %v5357_v42, %v548_v56  ;;  %v677_v3 = vadd.f32 %v5362_v55, %v676_v57 }
 0x2d3   :  { %v560_v62 = vadd.f32 %v4260_v58, %v5357_v42  ;;  %v688_v63 = vadd.f32 %v4280_v59, %v5362_v55  ;;  %v551_v0 = vpop.f32.mrb[7].mxu1  ;;  %v679_v1 = vpop.f32.mrb[7].mxu0 }
 0x2d4   :  { %v552_v4 = vadd.f32 %v5357_v42, %v551_v0  ;;  %v680_v5 = vadd.f32 %v5362_v55, %v679_v1 }
 0x2d5   :  { %v5372_v6 = vpack.c.bf16 %v560_v62, %v557_v60  ;;  %v5374_v10 = vpack.c.bf16 %v688_v63, %v685_v61 }
 0x2d6   :  { %v5376_v11 = vpack.c.bf16 %v552_v4, %v549_v2  ;;  %v5378_v12 = vpack.c.bf16 %v680_v5, %v677_v3 }
 0x2d7   :  { %v897_v29 = vsel %vm880_vm7, %v5374_v10, 0 }
 0x2d8   :  { %v4263_v14 = vpop.f32.mrb[8].mxu1  ;;  %v4283_v15 = vpop.f32.mrb[8].mxu0  ;;  %4321 = vmatprep.mubr.msk.bf16.mxu0 %vm880_vm7, %v5376_v11  ;;  %1160 = vrot.lane.b32.xlu0 %v5378_v12, %s5038_s6  ;;  %v894_v19 = vsel %vm880_vm7, %v5378_v12, 0 }
 0x2d9   :  { %4703 = vmatprep.subr.msk.bf16.mxu0 %vm880_vm7, %v5378_v12  ;;  %v564_v21 = vpop.f32.mrb[9].mxu1  ;;  %v692_v22 = vpop.f32.mrb[9].mxu0  ;;  %v573_v27 = vadd.f32 %v4263_v14, %v5357_v42  ;;  %v701_v28 = vadd.f32 %v4283_v15, %v5362_v55 }
 0x2da   :  { %4314 = vmatpush3.bf16.xpose.msra.mxu0 %v894_v19  ;;  %v4264_v23 = vpop.f32.mrb[10].mxu1  ;;  %v4284_v24 = vpop.f32.mrb[10].mxu0  ;;  %v565_v7 = vadd.f32 %v5357_v42, %v564_v21  ;;  %v693_v37 = vadd.f32 %v5362_v55, %v692_v22 }
 0x2db   :  { %v576_v31 = vadd.f32 %v4264_v23, %v5357_v42  ;;  %v704_v32 = vadd.f32 %v4284_v24, %v5362_v55  ;;  %4704 = vmatprep.subr.msk.bf16.mxu0 %vm880_vm7, %v5374_v10  ;;  %v567_v33 = vpop.f32.mrb[11].mxu1  ;;  %v695_v34 = vpop.f32.mrb[11].mxu0  ;;  %v3916_v24 = vld [vmem:[%s6619_s10] ss:$0 sm:$0xff]  ;;  %s5039_s10 = smov 112  }
 0x2dc   :  { %v568_v8 = vadd.f32 %v5357_v42, %v567_v33  ;;  %v696_v9 = vadd.f32 %v5362_v55, %v695_v34  ;;  %1162 = vrot.lane.b32.xlu0 %v5374_v10, %s5038_s6 }
 0x2dd   :  { %v5400_v13 = vpack.c.bf16 %v576_v31, %v573_v27  ;;  %v5402_v20 = vpack.c.bf16 %v704_v32, %v701_v28 }
 0x2de   :  { %v5404_v25 = vpack.c.bf16 %v568_v8, %v565_v7  ;;  %v5406_v38 = vpack.c.bf16 %v696_v9, %v693_v37 }
 0x2e0   :  { %v4267_v39 = vpop.f32.mrb[12].mxu1  ;;  %v4287_v40 = vpop.f32.mrb[12].mxu0  ;;  %1164 = vrot.lane.b32.xlu1 %v5406_v38, %s5038_s6  ;;  %1148 = vrot.lane.b32.xlu0 %v5376_v11, %s5038_s6  ;;  %v900_v60 = vsel %vm880_vm7, %v5406_v38, 0 }
 0x2e1   :  { %v589_v43 = vadd.f32 %v4267_v39, %v5357_v42  ;;  %v717_v44 = vadd.f32 %v4287_v40, %v5362_v55  ;;  %v580_v46 = vpop.f32.mrb[13].mxu1  ;;  %v708_v47 = vpop.f32.mrb[13].mxu0 }
 0x2e2   :  { %v581_v30 = vadd.f32 %v5357_v42, %v580_v46  ;;  %v709_v16 = vadd.f32 %v5362_v55, %v708_v47  ;;  %4316 = vmatpush3.bf16.xpose.msra.mxu0 %v897_v29  ;;  %v4268_v17 = vpop.f32.mrb[14].mxu1  ;;  %v4288_v45 = vpop.f32.mrb[14].mxu0 }
 0x2e3   :  { %v592_v48 = vadd.f32 %v4268_v17, %v5357_v42  ;;  %v720_v49 = vadd.f32 %v4288_v45, %v5362_v55  ;;  %4705 = vmatprep.subr.msk.bf16.mxu0 %vm880_vm7, %v5406_v38  ;;  %v583_v50 = vpop.f32.mrb[15].mxu1  ;;  %v711_v51 = vpop.f32.mrb[15].mxu0 }
 0x2e4   :  { %v584_v52 = vadd.f32 %v5357_v42, %v583_v50  ;;  %v712_v18 = vadd.f32 %v5362_v55, %v711_v51  ;;  %1166 = vrot.lane.b32.xlu1 %v5402_v20, %s5038_s6  ;;  %1152 = vrot.lane.b32.xlu0 %v5404_v25, %s5038_s6 }
 0x2e5   :  { %v5428_v26 = vpack.c.bf16 %v592_v48, %v589_v43  ;;  %v5430_v35 = vpack.c.bf16 %v720_v49, %v717_v44 }
 0x2e6   :  { %v5432_v36 = vpack.c.bf16 %v584_v52, %v581_v30  ;;  %v5434_v53 = vpack.c.bf16 %v712_v18, %v709_v16 }
 0x2e8   :  { %v4271_v41 = vpop.f32.mrb[16].mxu1  ;;  %v4291_v54 = vpop.f32.mrb[16].mxu0  ;;  %1150 = vrot.lane.b32.xlu1 %v5372_v6, %s5038_s6 }
 0x2e9   :  { %v605_v56 = vadd.f32 %v4271_v41, %v5357_v42  ;;  %v733_v57 = vadd.f32 %v4291_v54, %v5362_v55  ;;  %v596_v58 = vpop.f32.mrb[17].mxu1  ;;  %v724_v59 = vpop.f32.mrb[17].mxu0 }
 0x2ea   :  { %v597_v61 = vadd.f32 %v5357_v42, %v596_v58  ;;  %v725_v62 = vadd.f32 %v5362_v55, %v724_v59  ;;  %4318 = vmatpush3.bf16.xpose.msra.mxu0 %v900_v60  ;;  %v4272_v63 = vpop.f32.mrb[18].mxu1  ;;  %v4292_v0 = vpop.f32.mrb[18].mxu0 }
 0x2eb   :  { %v608_v1 = vadd.f32 %v4272_v63, %v5357_v42  ;;  %v736_v2 = vadd.f32 %v4292_v0, %v5362_v55  ;;  %4706 = vmatprep.subr.msk.bf16.mxu0 %vm880_vm7, %v5402_v20  ;;  %v599_v3 = vpop.f32.mrb[19].mxu1  ;;  %v727_v4 = vpop.f32.mrb[19].mxu0 }
 0x2ec   :  { %v600_v5 = vadd.f32 %v5357_v42, %v599_v3  ;;  %v728_v14 = vadd.f32 %v5362_v55, %v727_v4  ;;  %1154 = vrot.lane.b32.xlu1 %v5400_v13, %s5038_s6  ;;  %v903_v42 = vsel %vm880_vm7, %v5402_v20, 0 }
 0x2ed   :  { %v5452_v15 = vpack.c.bf16 %v608_v1, %v605_v56  ;;  %v5454_v19 = vpack.c.bf16 %v736_v2, %v733_v57 }
 0x2ee   :  { %v5456_v21 = vpack.c.bf16 %v600_v5, %v597_v61  ;;  %v5458_v22 = vpack.c.bf16 %v728_v14, %v725_v62 }
 0x2f0   :  { %v4299_v23 = vpop.f32.mrb[20].mxu1 }
 0x2f1   :  { %v804_v27 = vpop.f32.mrb[21].mxu1  ;;  %v813_v28 = vadd.f32 %v4299_v23, %v3916_v24 }
 0x2f2   :  { %4320 = vmatpush3.bf16.xpose.msra.mxu0 %v903_v42  ;;  %v4300_v55 = vpop.f32.mrb[22].mxu1  ;;  %v805_v33 = vadd.f32 %v3916_v24, %v804_v27 }
 0x2f3   :  { %v816_v31 = vadd.f32 %v4300_v55, %v3916_v24  ;;  %v807_v32 = vpop.f32.mrb[23].mxu1 }
 0x2f4   :  { %v808_v34 = vadd.f32 %v3916_v24, %v807_v32 }
 0x2f5   :  { %v5465_v7 = vpack.c.bf16 %v816_v31, %v813_v28 }
 0x2f6   :  { %v5467_v37 = vpack.c.bf16 %v808_v34, %v805_v33 }
 0x2f8   :  { %v4303_v8 = vpop.f32.mrb[24].mxu1  ;;  %4329 = vmatprep.subr.bf16.mxu0 %v5467_v37 }
 0x2f9   :  { %4322 = vmatmul.mubr.msk.bf16.vlgmr.msra.gmra.mrb[20].mxu0 %vm880_vm7, %v5372_v6  ;;  %v820_v9 = vpop.f32.mrb[25].mxu1  ;;  %v829_v40 = vadd.f32 %v4303_v8, %v3916_v24 }
 0x2fa   :  { %4325 = vmatprep.mubr.msk.bf16.mxu0 %vm880_vm7, %v5404_v25  ;;  %4330 = vmatpush3.bf16.msra.mxu0 %v5467_v37  ;;  %v4304_v39 = vpop.f32.mrb[26].mxu1  ;;  %v821_v46 = vadd.f32 %v3916_v24, %v820_v9 }
 0x2fb   :  { %v832_v43 = vadd.f32 %v4304_v39, %v3916_v24  ;;  %4331 = vmatprep.subr.bf16.mxu0 %v5465_v7  ;;  %v823_v44 = vpop.f32.mrb[27].mxu1 }
 0x2fc   :  { %v824_v47 = vadd.f32 %v3916_v24, %v823_v44 }
 0x2fd   :  { %v5476_v29 = vpack.c.bf16 %v832_v43, %v829_v40 }
 0x2fe   :  { %v5478_v30 = vpack.c.bf16 %v824_v47, %v821_v46  ;;  %4332 = vmatpush3.bf16.msra.mxu0 %v5465_v7 }
 0x300   :  { %v4307_v16 = vpop.f32.mrb[28].mxu1  ;;  %4333 = vmatprep.subr.bf16.mxu0 %v5478_v30 }
 0x301   :  { %v845_v17 = vadd.f32 %v4307_v16, %v3916_v24  ;;  %4326 = vmatmul.mubr.msk.bf16.gmra.mrb[24].mxu0 %vm880_vm7, %v5400_v13  ;;  %v836_v45 = vpop.f32.mrb[29].mxu1 }
 0x302   :  { %v837_v48 = vadd.f32 %v3916_v24, %v836_v45  ;;  %4334 = vmatpush3.bf16.msra.mxu0 %v5478_v30  ;;  %v4308_v49 = vpop.f32.mrb[30].mxu1 }
 0x303   :  { %v848_v50 = vadd.f32 %v4308_v49, %v3916_v24  ;;  %4335 = vmatprep.subr.bf16.mxu0 %v5476_v29  ;;  %v839_v51 = vpop.f32.mrb[31].mxu1 }
 0x304   :  { %v840_v52 = vadd.f32 %v3916_v24, %v839_v51 }
 0x305   :  { %v5486_v18 = vpack.c.bf16 %v848_v50, %v845_v17 }
 0x306   :  { %v5488_v41 = vpack.c.bf16 %v840_v52, %v837_v48  ;;  %4336 = vmatpush3.bf16.msra.mxu0 %v5476_v29 }
 0x308   :  { %v4311_v54 = vpop.f32.mrb[32].mxu1 }
 0x309   :  { %v861_v56 = vadd.f32 %v4311_v54, %v3916_v24  ;;  %v852_v57 = vpop.f32.mrb[33].mxu1 }
 0x30a   :  { %v853_v58 = vadd.f32 %v3916_v24, %v852_v57  ;;  %v4312_v59 = vpop.f32.mrb[34].mxu1 }
 0x30b   :  { %v864_v60 = vadd.f32 %v4312_v59, %v3916_v24  ;;  %v855_v61 = vpop.f32.mrb[35].mxu1 }
 0x30c   :  { %v856_v62 = vadd.f32 %v3916_v24, %v855_v61 }
 0x30d   :  { %v5491_v63 = vpack.c.bf16 %v864_v60, %v861_v56 }
 0x30e   :  { %v5493_v0 = vpack.c.bf16 %v856_v62, %v853_v58 }
 0x34a   :  { %v1161_v1 = vpop.permute.xlu0 %1160 }
 0x34b   :  { %4707 = vmatprep.subr.msk.bf16.mxu1 %vm880_vm7, %v1161_v1  ;;  %v1181_v2 = vsel %vm880_vm7, %v1161_v1, 0 }
 0x34c   :  { %4346 = vmatpush3.bf16.xpose.msra.mxu1 %v1181_v2 }
 0x34e   :  { %v1163_v3 = vpop.permute.xlu0 %1162 }
 0x34f   :  { %4708 = vmatprep.subr.msk.bf16.mxu1 %vm880_vm7, %v1163_v3  ;;  %v1184_v5 = vsel %vm880_vm7, %v1163_v3, 0 }
 0x352   :  { %v1149_v4 = vpop.permute.xlu0 %1148  ;;  %v1165_v14 = vpop.permute.xlu1 %1164 }
 0x353   :  { %4353 = vmatprep.mubr.msk.bf16.mxu1 %vm880_vm7, %v1149_v4  ;;  %v1187_v23 = vsel %vm880_vm7, %v1165_v14, 0 }
 0x354   :  { %4348 = vmatpush3.bf16.xpose.msra.mxu1 %v1184_v5 }
 0x355   :  { %4709 = vmatprep.subr.msk.bf16.mxu1 %vm880_vm7, %v1165_v14 }
 0x356   :  { %v1167_v24 = vpop.permute.xlu1 %1166  ;;  %v1153_v55 = vpop.permute.xlu0 %1152 }
 0x357   :  { %v1190_v27 = vsel %vm880_vm7, %v1167_v24, 0 }
 0x35a   :  { %v1151_v42 = vpop.permute.xlu1 %1150 }
 0x35c   :  { %4350 = vmatpush3.bf16.xpose.msra.mxu1 %v1187_v23 }
 0x35d   :  { %4710 = vmatprep.subr.msk.bf16.mxu1 %vm880_vm7, %v1167_v24 }
 0x35e   :  { %v1155_v28 = vpop.permute.xlu1 %1154 }
 0x364   :  { %4352 = vmatpush3.bf16.xpose.msra.mxu1 %v1190_v27 }
 0x36b   :  { %4354 = vmatmul.mubr.msk.bf16.vlgmr.msra.gmra.mrb[36].mxu1 %vm880_vm7, %v1151_v42 }
 0x36c   :  { %4357 = vmatprep.mubr.msk.bf16.mxu1 %vm880_vm7, %v1153_v55 }
 0x373   :  { %4358 = vmatmul.mubr.msk.bf16.gmra.mrb[40].mxu1 %vm880_vm7, %v1155_v28 }
 0x3cc   :  { %v4323_v31 = vpop.f32.mrb[20].mxu0 }
 0x3cd   :  { %v939_v32 = vpop.f32.mrb[21].mxu0  ;;  %v977_v33 = vsel %vm970_vm8, %v4323_v31, -inf }
 0x3ce   :  { %978 = vmax.xlane.f32.xlu0 %v977_v33  ;;  %v4324_v34 = vpop.f32.mrb[22].mxu0  ;;  %v971_v39 = vsel %vm970_vm8, %v939_v32, -inf }
 0x3cf   :  { %v942_v8 = vpop.f32.mrb[23].mxu0  ;;  %v980_v44 = vsel %vm970_vm8, %v4324_v34, -inf }
 0x3d0   :  { %v974_v9 = vsel %vm970_vm8, %v942_v8, -inf }
 0x3d1   :  { %975 = vmax.xlane.f32.xlu1 %v974_v9 }
 0x3d2   :  { %972 = vmax.xlane.f32.xlu0 %v971_v39 }
 0x3d4   :  { %v4327_v40 = vpop.f32.mrb[24].mxu0 }
 0x3d5   :  { %v5510_v43 = vpop.f32.mrb[25].mxu0  ;;  %v989_v46 = vsel %vm970_vm8, %v4327_v40, -inf }
 0x3d6   :  { %981 = vmax.xlane.f32.xlu0 %v980_v44  ;;  %990 = vmax.xlane.f32.xlu1 %v989_v46  ;;  %v4328_v47 = vpop.f32.mrb[26].mxu0  ;;  %v983_v17 = vsel %vm970_vm8, %v5510_v43, -inf }
 0x3d7   :  { %v5514_v16 = vpop.f32.mrb[27].mxu0  ;;  %v992_v45 = vsel %vm970_vm8, %v4328_v47, -inf }
 0x3d8   :  { %v986_v48 = vsel %vm970_vm8, %v5514_v16, -inf }
 0x3da   :  { %984 = vmax.xlane.f32.xlu1 %v983_v17  ;;  %993 = vmax.xlane.f32.xlu0 %v992_v45 }
 0x3de   :  { %987 = vmax.xlane.f32.xlu0 %v986_v48 }
 0x43e   :  { %v5521_v49 = vpop.f32.mrb[36].mxu1 }
 0x43f   :  { %v5523_v50 = vpop.f32.mrb[37].mxu1  ;;  %v1263_v51 = vsel %vm970_vm8, %v5521_v49, -inf }
 0x440   :  { %v5527_v52 = vpop.f32.mrb[38].mxu1  ;;  %1264 = vmax.xlane.f32.xlu1 %v1263_v51  ;;  %v1257_v57 = vsel %vm970_vm8, %v5523_v50, -inf }
 0x441   :  { %v5529_v54 = vpop.f32.mrb[39].mxu1  ;;  %v1266_v56 = vsel %vm970_vm8, %v5527_v52, -inf }
 0x442   :  { %1267 = vmax.xlane.f32.xlu0 %v1266_v56  ;;  %v1260_v58 = vsel %vm970_vm8, %v5529_v54, -inf }
 0x444   :  { %1258 = vmax.xlane.f32.xlu1 %v1257_v57 }
 0x446   :  { %v5537_v59 = vpop.f32.mrb[40].mxu1  ;;  %1261 = vmax.xlane.f32.xlu0 %v1260_v58 }
 0x447   :  { %v5539_v60 = vpop.f32.mrb[41].mxu1  ;;  %v1275_v61 = vsel %vm970_vm8, %v5537_v59, -inf }
 0x448   :  { %v5543_v62 = vpop.f32.mrb[42].mxu1  ;;  %1276 = vmax.xlane.f32.xlu1 %v1275_v61  ;;  %v1269_v3 = vsel %vm970_vm8, %v5539_v60, -inf }
 0x449   :  { %v5545_v1 = vpop.f32.mrb[43].mxu1  ;;  %v1278_v2 = vsel %vm970_vm8, %v5543_v62, -inf }
 0x44a   :  { %1279 = vmax.xlane.f32.xlu0 %v1278_v2  ;;  %v1272_v4 = vsel %vm970_vm8, %v5545_v1, -inf }
 0x44c   :  { %1270 = vmax.xlane.f32.xlu1 %v1269_v3 }
 0x44e   :  { %1273 = vmax.xlane.f32.xlu0 %v1272_v4 }
 0x45b   :  { %v979_v5 = vpop.xlane.xlu0 %978 }
 0x45c   :  { %v997_v27 = vsub.f32 %v4323_v31, %v979_v5 }
 0x45d   :  { %1353 = vrot.lane.b32.xlu1 %v5467_v37, %s5038_s6 }
 0x45e   :  { %v976_v23 = vpop.xlane.xlu1 %975  ;;  %v1007_v28 = vmul.f32 1.442695, %v997_v27 }
 0x45f   :  { %v973_v14 = vpop.xlane.xlu0 %972  ;;  %v996_v39 = vsub.f32 %v942_v8, %v976_v23 }
 0x460   :  { %v995_v33 = vsub.f32 %v939_v32, %v973_v14  ;;  %4758 = vpow2.f32 %v1007_v28 }
 0x461   :  { %v1005_v48 = vmul.f32 1.442695, %v996_v39 }
 0x462   :  { %v1003_v46 = vmul.f32 1.442695, %v995_v33 }
 0x463   :  { %v982_v24 = vpop.xlane.xlu0 %981  ;;  %v991_v55 = vpop.xlane.xlu1 %990 }
 0x464   :  { %1355 = vrot.lane.b32.xlu0 %v5465_v7, %s5038_s6  ;;  %v998_v42 = vsub.f32 %v4324_v34, %v982_v24  ;;  %v1001_v17 = vsub.f32 %v4327_v40, %v991_v55 }
 0x466   :  { %v1009_v44 = vmul.f32 1.442695, %v998_v42  ;;  %v1015_v57 = vmul.f32 1.442695, %v1001_v17 }
 0x467   :  { %v994_v9 = vpop.xlane.xlu0 %993  ;;  %v985_v45 = vpop.xlane.xlu1 %984 }
 0x468   :  { %4760 = vpow2.f32 %v1009_v44  ;;  %v1002_v51 = vsub.f32 %v4328_v47, %v994_v9  ;;  %v999_v58 = vsub.f32 %v5510_v43, %v985_v45 }
 0x469   :  { %4762 = vpow2.f32 %v1003_v46 }
 0x46a   :  { %4764 = vpow2.f32 %v1005_v48  ;;  %v1017_v31 = vmul.f32 1.442695, %v1002_v51  ;;  %v1011_v32 = vmul.f32 1.442695, %v999_v58  ;;  %v5559_v8 = vpop.eup %4758 }
 0x46b   :  { %v988_v56 = vpop.xlane.xlu0 %987  ;;  %4766 = vpow2.f32 %v1015_v57  ;;  %v1025_v47 = vsel %vm970_vm8, %v5559_v8, 0.0 }
 0x46c   :  { %v1000_v34 = vsub.f32 %v5514_v16, %v988_v56  ;;  %4768 = vpow2.f32 %v1017_v31 }
 0x46d   :  { %4770 = vpow2.f32 %v1011_v32 }
 0x46e   :  { %v1013_v61 = vmul.f32 1.442695, %v1000_v34 }
 0x470   :  { %4772 = vpow2.f32 %v1013_v61 }
 0x472   :  { %v5561_v40 = vpop.eup %4760 }
 0x473   :  { %v5565_v2 = vpop.eup %4762  ;;  %v1028_v43 = vsel %vm970_vm8, %v5561_v40, 0.0 }
 0x474   :  { %v5569_v16 = vpop.eup %4764  ;;  %v1019_v3 = vsel %vm970_vm8, %v5565_v2, 0.0 }
 0x475   :  { %v5573_v4 = vpop.eup %4766  ;;  %v1022_v5 = vsel %vm970_vm8, %v5569_v16, 0.0 }
 0x476   :  { %v5577_v14 = vpop.eup %4768  ;;  %v1037_v23 = vsel %vm970_vm8, %v5573_v4, 0.0 }
 0x477   :  { %v5581_v24 = vpop.eup %4770  ;;  %v1040_v27 = vsel %vm970_vm8, %v5577_v14, 0.0 }
 0x478   :  { %v1031_v55 = vsel %vm970_vm8, %v5581_v24, 0.0 }
 0x47a   :  { %v5585_v42 = vpop.eup %4772 }
 0x47b   :  { %v1034_v28 = vsel %vm970_vm8, %v5585_v42, 0.0 }
 0x481   :  { %1026 = vadd.xlane.f32.xlu1 %v1025_v47 }
 0x483   :  { %1029 = vadd.xlane.f32.xlu0 %v1028_v43 }
 0x485   :  { %1020 = vadd.xlane.f32.xlu1 %v1019_v3 }
 0x487   :  { %1023 = vadd.xlane.f32.xlu0 %v1022_v5 }
 0x489   :  { %1038 = vadd.xlane.f32.xlu1 %v1037_v23 }
 0x48b   :  { %1041 = vadd.xlane.f32.xlu0 %v1040_v27 }
 0x48d   :  { %1032 = vadd.xlane.f32.xlu1 %v1031_v55 }
 0x48f   :  { %1035 = vadd.xlane.f32.xlu0 %v1034_v28 }
 0x4cd   :  { %v1265_v33 = vpop.xlane.xlu1 %1264 }
 0x4ce   :  { %v1283_v9 = vsub.f32 %v5521_v49, %v1265_v33 }
 0x4cf   :  { %v1268_v39 = vpop.xlane.xlu0 %1267 }
 0x4d0   :  { %v1293_v44 = vmul.f32 1.442695, %v1283_v9  ;;  %v1284_v46 = vsub.f32 %v5527_v52, %v1268_v39 }
 0x4d1   :  { %v1259_v17 = vpop.xlane.xlu1 %1258 }
 0x4d2   :  { %4774 = vpow2.f32 %v1293_v44  ;;  %v1295_v45 = vmul.f32 1.442695, %v1284_v46  ;;  %v1281_v48 = vsub.f32 %v5523_v50, %v1259_v17 }
 0x4d3   :  { %v1262_v51 = vpop.xlane.xlu0 %1261 }
 0x4d4   :  { %4776 = vpow2.f32 %v1295_v45  ;;  %v1289_v56 = vmul.f32 1.442695, %v1281_v48  ;;  %v1282_v57 = vsub.f32 %v5529_v54, %v1262_v51 }
 0x4d5   :  { %v1277_v58 = vpop.xlane.xlu1 %1276 }
 0x4d6   :  { %4778 = vpow2.f32 %v1289_v56  ;;  %v1291_v31 = vmul.f32 1.442695, %v1282_v57  ;;  %v1287_v34 = vsub.f32 %v5537_v59, %v1277_v58 }
 0x4d7   :  { %v1280_v49 = vpop.xlane.xlu0 %1279 }
 0x4d8   :  { %4780 = vpow2.f32 %v1291_v31  ;;  %v1301_v32 = vmul.f32 1.442695, %v1287_v34  ;;  %v1288_v46 = vsub.f32 %v5543_v62, %v1280_v49 }
 0x4d9   :  { %v1271_v61 = vpop.xlane.xlu1 %1270 }
 0x4da   :  { %4782 = vpow2.f32 %v1301_v32  ;;  %v1285_v44 = vsub.f32 %v5539_v60, %v1271_v61  ;;  %v1303_v45 = vmul.f32 1.442695, %v1288_v46 }
 0x4db   :  { %v1274_v52 = vpop.xlane.xlu0 %1273 }
 0x4dc   :  { %v5596_v47 = vpop.eup %4774  ;;  %v1286_v50 = vsub.f32 %v5545_v1, %v1274_v52  ;;  %v1297_v17 = vmul.f32 1.442695, %v1285_v44 }
 0x4dd   :  { %v5599_v43 = vpop.permute.xlu1 %1353  ;;  %v1311_v54 = vsel %vm970_vm8, %v5596_v47, 0.0 }
 0x4de   :  { %v5603_v3 = vpop.eup %4776  ;;  %v1299_v5 = vmul.f32 1.442695, %v1286_v50  ;;  %1312 = vadd.xlane.f32.xlu1 %v1311_v54  ;;  %4361 = vmatprep.subr.bf16.mxu0 %v5599_v43 }
 0x4df   :  { %v1314_v59 = vsel %vm970_vm8, %v5603_v3, 0.0  ;;  %v1356_v48 = vpop.permute.xlu0 %1355 }
 0x4e0   :  { %v5608_v23 = vpop.eup %4778  ;;  %4784 = vpow2.f32 %v1299_v5  ;;  %1315 = vadd.xlane.f32.xlu0 %v1314_v59 }
 0x4e1   :  { %v1305_v1 = vsel %vm970_vm8, %v5608_v23, 0.0  ;;  %4786 = vpow2.f32 %v1297_v17 }
 0x4e2   :  { %v5612_v27 = vpop.eup %4780  ;;  %1306 = vadd.xlane.f32.xlu1 %v1305_v1  ;;  %4788 = vpow2.f32 %v1303_v45 }
 0x4e3   :  { %v1308_v55 = vsel %vm970_vm8, %v5612_v27, 0.0 }
 0x4e4   :  { %v5616_v28 = vpop.eup %4782  ;;  %1309 = vadd.xlane.f32.xlu0 %v1308_v55 }
 0x4e5   :  { %v1323_v33 = vsel %vm970_vm8, %v5616_v28, 0.0 }
 0x4e8   :  { %1324 = vadd.xlane.f32.xlu0 %v1323_v33 }
 0x4ea   :  { %v5620_v9 = vpop.eup %4784 }
 0x4eb   :  { %v1320_v39 = vsel %vm970_vm8, %v5620_v9, 0.0  ;;  %v5638_v62 = vpop.eup %4786 }
 0x4ec   :  { %1321 = vadd.xlane.f32.xlu0 %v1320_v39  ;;  %v1317_v31 = vsel %vm970_vm8, %v5638_v62, 0.0  ;;  %v5644_v34 = vpop.eup %4788 }
 0x4ed   :  { %v1326_v61 = vsel %vm970_vm8, %v5644_v34, 0.0 }
 0x4f3   :  { %1357 = vrot.lane.b32.xlu1 %v5478_v30, %s5038_s6 }
 0x502   :  { %1359 = vrot.lane.b32.xlu0 %v5476_v29, %s5038_s6 }
 0x506   :  { %1618 = vrot.lane.b32.xlu0 %v5406_v38, %s5039_s10 }
 0x50a   :  { %1606 = vrot.lane.b32.xlu0 %v5376_v11, %s5039_s10 }
 0x50e   :  { %v1027_v51 = vpop.xlane.xlu1 %1026  ;;  %1610 = vrot.lane.b32.xlu0 %v5404_v25, %s5039_s10 }
 0x510   :  { %v1030_v60 = vpop.xlane.xlu0 %1029 }
 0x511   :  { %4790 = vrcp.f32 %v1030_v60 }
 0x512   :  { %v1021_v56 = vpop.xlane.xlu1 %1020  ;;  %1992 = vrot.lane.b32.xlu0 %v5378_v12, %s5040_s28 }
 0x513   :  { %4792 = vrcp.f32 %v1021_v56 }
 0x514   :  { %4794 = vrcp.f32 %v1027_v51  ;;  %v1024_v57 = vpop.xlane.xlu0 %1023 }
 0x515   :  { %4796 = vrcp.f32 %v1024_v57 }
 0x516   :  { %v1039_v58 = vpop.xlane.xlu1 %1038  ;;  %1996 = vrot.lane.b32.xlu0 %v5406_v38, %s5040_s28 }
 0x517   :  { %1318 = vadd.xlane.f32.xlu1 %v1317_v31 }
 0x518   :  { %v1042_v49 = vpop.xlane.xlu0 %1041 }
 0x519   :  { %4798 = vrcp.f32 %v1042_v49  ;;  %v876_v49 = vld [vmem:[%s6620_s11 + $0x4] sm:$0xf] }
 0x51a   :  { %v1033_v32 = vpop.xlane.xlu1 %1032  ;;  %1984 = vrot.lane.b32.xlu0 %v5376_v11, %s5040_s28 }
 0x51b   :  { %4800 = vrcp.f32 %v1033_v32  ;;  %1327 = vadd.xlane.f32.xlu1 %v1326_v61  ;;  %v4791_v52 = vpop.eup %4790 }
 0x51c   :  { %4802 = vrcp.f32 %v1039_v58  ;;  %v1036_v38 = vpop.xlane.xlu0 %1035  ;;  %v1054_v59 = vmul.f32 %v4791_v52, %v5561_v40 }
 0x51d   :  { %v4793_v50 = vpop.eup %4792  ;;  %4804 = vrcp.f32 %v1036_v38 }
 0x51e   :  { %v4795_v54 = vpop.eup %4794  ;;  %1988 = vrot.lane.b32.xlu0 %v5404_v25, %s5040_s28  ;;  %v1051_v1 = vmul.f32 %v4793_v50, %v5565_v2 }
 0x51f   :  { %v4797_v5 = vpop.eup %4796  ;;  %v1053_v55 = vmul.f32 %v4795_v54, %v5559_v8 }
 0x520   :  { %v1052_v11 = vmul.f32 %v4797_v5, %v5569_v16 }
 0x521   :  { %v1060_v39 = vpack.c.bf16 %v1054_v59, %v1053_v55 }
 0x522   :  { %v1059_v33 = vpack.c.bf16 %v1052_v11, %v1051_v1 }
 0x523   :  { %v4799_v44 = vpop.eup %4798 }
 0x524   :  { %4337 = vmatprep.mubr.msk.bf16.mxu0 %vm970_vm8, %v1059_v33  ;;  %v1058_v40 = vmul.f32 %v4799_v44, %v5577_v14 }
 0x525   :  { %v4801_v46 = vpop.eup %4800  ;;  %4338 = vmatmul.mubr.msk.bf16.vlgmr.msra.gmra.mrb[28].mxu0 %vm970_vm8, %v1060_v39 }
 0x526   :  { %v4803_v17 = vpop.eup %4802  ;;  %4362 = vmatpush3.bf16.msra.mxu0 %v5599_v43  ;;  %v1055_v2 = vmul.f32 %v4801_v46, %v5581_v24 }
 0x527   :  { %v4805_v25 = vpop.eup %4804  ;;  %4363 = vmatprep.subr.bf16.mxu0 %v1356_v48  ;;  %v1057_v8 = vmul.f32 %v4803_v17, %v5573_v4 }
 0x528   :  { %v1056_v16 = vmul.f32 %v4805_v25, %v5585_v42 }
 0x529   :  { %v1062_v51 = vpack.c.bf16 %v1058_v40, %v1057_v8 }
 0x52a   :  { %4364 = vmatpush3.bf16.msra.mxu0 %v1356_v48  ;;  %v1061_v45 = vpack.c.bf16 %v1056_v16, %v1055_v2 }
 0x52c   :  { %1614 = vrot.lane.b32.xlu1 %v5378_v12, %s5039_s10  ;;  %4341 = vmatprep.mubr.msk.bf16.mxu0 %vm970_vm8, %v1061_v45 }
 0x52d   :  { %4342 = vmatmul.mubr.msk.bf16.gmra.mrb[32].mxu0 %vm970_vm8, %v1062_v51 }
 0x530   :  { %1616 = vrot.lane.b32.xlu1 %v5374_v10, %s5039_s10 }
 0x534   :  { %1620 = vrot.lane.b32.xlu1 %v5402_v20, %s5039_s10 }
 0x538   :  { %1608 = vrot.lane.b32.xlu1 %v5372_v6, %s5039_s10 }
 0x53c   :  { %1612 = vrot.lane.b32.xlu1 %v5400_v13, %s5039_s10 }
 0x540   :  { %1994 = vrot.lane.b32.xlu1 %v5374_v10, %s5040_s28 }
 0x544   :  { %1998 = vrot.lane.b32.xlu1 %v5402_v20, %s5040_s28 }
 0x548   :  { %1986 = vrot.lane.b32.xlu1 %v5372_v6, %s5040_s28 }
 0x54c   :  { %1990 = vrot.lane.b32.xlu1 %v5400_v13, %s5040_s28  ;;  %v875_v13 = vld [vmem:[%s6620_s11] sm:$0xf] }
 0x54d   :  { %4712 = vmatprep.subr.msk.bf16.mxu1 %vm266_vm5, %v875_v13  ;;  %v5694_v32 = vsel %vm266_vm5, %v875_v13, 0 }
 0x54e   :  { %6624 = vst [vmem:[#allocation2_spill] sm:$0xff] %v5694_v32  ;;  %4388 = vmatpush3.bf16.msra.mxu1 %v5694_v32 }
 0x56b   :  { %v1313_v12 = vpop.xlane.xlu1 %1312 }
 0x56d   :  { %v1316_v4 = vpop.xlane.xlu0 %1315 }
 0x56e   :  { %4806 = vrcp.f32 %v1316_v4 }
 0x56f   :  { %v1307_v14 = vpop.xlane.xlu1 %1306 }
 0x570   :  { %4808 = vrcp.f32 %v1307_v14 }
 0x571   :  { %4810 = vrcp.f32 %v1313_v12  ;;  %v1310_v24 = vpop.xlane.xlu0 %1309 }
 0x572   :  { %4812 = vrcp.f32 %v1310_v24 }
 0x573   :  { %v1358_v42 = vpop.permute.xlu1 %1357 }
 0x574   :  { %4365 = vmatprep.subr.bf16.mxu0 %v1358_v42 }
 0x575   :  { %4366 = vmatpush3.bf16.msra.mxu0 %v1358_v42  ;;  %v1325_v10 = vpop.xlane.xlu0 %1324 }
 0x578   :  { %v4807_v43 = vpop.eup %4806 }
 0x579   :  { %v1322_v20 = vpop.xlane.xlu0 %1321  ;;  %v1340_v56 = vmul.f32 %v4807_v43, %v5603_v3 }
 0x57a   :  { %v4809_v48 = vpop.eup %4808  ;;  %4814 = vrcp.f32 %v1322_v20 }
 0x57b   :  { %v4811_v60 = vpop.eup %4810  ;;  %v1337_v58 = vmul.f32 %v4809_v48, %v5608_v23  ;;  %v5700_v23 = vsel %vm266_vm5, %v876_v49, 0 }
 0x57c   :  { %v4813_v6 = vpop.eup %4812  ;;  %v1339_v3 = vmul.f32 %v4811_v60, %v5596_v47 }
 0x57d   :  { %v1360_v57 = vpop.permute.xlu0 %1359  ;;  %v1338_v31 = vmul.f32 %v4813_v6, %v5612_v27 }
 0x57e   :  { %4367 = vmatprep.subr.bf16.mxu0 %v1360_v57  ;;  %v1346_v52 = vpack.c.bf16 %v1340_v56, %v1339_v3 }
 0x57f   :  { %4368 = vmatpush3.bf16.msra.mxu0 %v1360_v57  ;;  %v1345_v61 = vpack.c.bf16 %v1338_v31, %v1337_v58 }
 0x580   :  { %4711 = vmatprep.subr.msk.bf16.mxu0 %vm266_vm5, %v876_v49 }
 0x581   :  { %4369 = vmatprep.mubr.msk.bf16.mxu0 %vm970_vm8, %v1345_v61  ;;  %v1619_v20 = vpop.permute.xlu0 %1618 }
 0x582   :  { %4370 = vmatmul.mubr.msk.bf16.vlgmr.msra.gmra.mrb[36].mxu0 %vm970_vm8, %v1346_v52  ;;  %v1641_v6 = vsel %vm880_vm7, %v1619_v20, 0 }
 0x583   :  { %4378 = vmatpush3.bf16.msra.mxu0 %v5700_v23 }
 0x584   :  { %v4815_v50 = vpop.eup %4814 }
 0x585   :  { %v1342_v59 = vmul.f32 %v4815_v50, %v5620_v9  ;;  %v1607_v60 = vpop.permute.xlu0 %1606 }
 0x589   :  { %v1611_v13 = vpop.permute.xlu0 %1610 }
 0x58d   :  { %v1993_v58 = vpop.permute.xlu0 %1992 }
 0x58e   :  { %v2013_v50 = vsel %vm880_vm7, %v1993_v58, 0 }
 0x5a4   :  { %v1319_v27 = vpop.xlane.xlu1 %1318 }
 0x5a5   :  { %4816 = vrcp.f32 %v1319_v27 }
 0x5a6   :  { %4818 = vrcp.f32 %v1325_v10 }
 0x5a8   :  { %v1328_v47 = vpop.xlane.xlu1 %1327 }
 0x5a9   :  { %4820 = vrcp.f32 %v1328_v47 }
 0x5ac   :  { %v1615_v38 = vpop.permute.xlu1 %1614 }
 0x5ad   :  { %4713 = vmatprep.subr.msk.bf16.mxu0 %vm880_vm7, %v1615_v38  ;;  %v1635_v10 = vsel %vm880_vm7, %v1615_v38, 0 }
 0x5af   :  { %v4817_v54 = vpop.eup %4816 }
 0x5b0   :  { %v1341_v5 = vmul.f32 %v4817_v54, %v5638_v62  ;;  %v4819_v1 = vpop.eup %4818  ;;  %v1617_v43 = vpop.permute.xlu1 %1616 }
 0x5b1   :  { %v1343_v33 = vmul.f32 %v4819_v1, %v5616_v28  ;;  %v1638_v48 = vsel %vm880_vm7, %v1617_v43, 0 }
 0x5b2   :  { %v1347_v11 = vpack.c.bf16 %v1342_v59, %v1341_v5  ;;  %v1997_v5 = vpop.permute.xlu0 %1996 }
 0x5b3   :  { %v4821_v55 = vpop.eup %4820 }
 0x5b4   :  { %4373 = vmatprep.mubr.msk.bf16.mxu0 %vm970_vm8, %v1347_v11  ;;  %v1344_v39 = vmul.f32 %v4821_v55, %v5644_v34  ;;  %v1621_v56 = vpop.permute.xlu1 %1620  ;;  %v2019_v11 = vsel %vm880_vm7, %v1997_v5, 0 }
 0x5b5   :  { %v1644_v57 = vsel %vm880_vm7, %v1621_v56, 0 }
 0x5b6   :  { %v1348_v44 = vpack.c.bf16 %v1344_v39, %v1343_v33  ;;  %v1985_v59 = vpop.permute.xlu0 %1984 }
 0x5b8   :  { %4374 = vmatmul.mubr.msk.bf16.gmra.mrb[40].mxu0 %vm970_vm8, %v1348_v44  ;;  %v1609_v27 = vpop.permute.xlu1 %1608 }
 0x5ba   :  { %v1989_v44 = vpop.permute.xlu0 %1988 }
 0x5bc   :  { %v1613_v38 = vpop.permute.xlu1 %1612 }
 0x5c0   :  { %v1995_v54 = vpop.permute.xlu1 %1994 }
 0x5c1   :  { %v2016_v1 = vsel %vm880_vm7, %v1995_v54, 0 }
 0x5c4   :  { %v1999_v55 = vpop.permute.xlu1 %1998 }
 0x5c5   :  { %v2022_v33 = vsel %vm880_vm7, %v1999_v55, 0 }
 0x5c8   :  { %v1987_v39 = vpop.permute.xlu1 %1986 }
 0x5f8   :  { %v4339_v46 = vpop.f32.mrb[28].mxu0 }
 0x5f9   :  { %v1109_v17 = vpop.f32.mrb[29].mxu0 }
 0x5fa   :  { %v4340_v25 = vpop.f32.mrb[30].mxu0 }
 0x5fb   :  { %v1141_v40 = vpack.c.bf16 %v4340_v25, %v4339_v46  ;;  %v1112_v2 = vpop.f32.mrb[31].mxu0  ;;  %v2405_v46 = vsel %vm880_vm7, %v5434_v53, 0  ;;  %v2408_v25 = vsel %vm880_vm7, %v5430_v35, 0 }
 0x5fc   :  { %v1140_v62 = vpack.c.bf16 %v1112_v2, %v1109_v17  ;;  %v1991_v17 = vpop.permute.xlu1 %1990  ;;  %v2414_v2 = vsel %vm880_vm7, %v5454_v19, 0 }
 0x5fe   :  { %4389 = vmatprep.mubr.msk.bf16.mxu1 %vm880_vm7, %v1140_v62 }
 0x5ff   :  { %4390 = vmatmul.mubr.msk.bf16.vlgmr.msra.gmra.mrb[44].mxu1 %vm880_vm7, %v1141_v40  ;;  %v2411_v40 = vsel %vm880_vm7, %v5458_v22, 0 }
 0x600   :  { %v4343_v9 = vpop.f32.mrb[32].mxu0 }
 0x601   :  { %v1125_v16 = vpop.f32.mrb[33].mxu0 }
 0x602   :  { %v4344_v8 = vpop.f32.mrb[34].mxu0 }
 0x603   :  { %v1143_v45 = vpack.c.bf16 %v4344_v8, %v4343_v9  ;;  %v1128_v28 = vpop.f32.mrb[35].mxu0 }
 0x604   :  { %v1142_v51 = vpack.c.bf16 %v1128_v28, %v1125_v16 }
 0x606   :  { %4393 = vmatprep.mubr.msk.bf16.mxu1 %vm880_vm7, %v1142_v51 }
 0x607   :  { %4394 = vmatmul.mubr.msk.bf16.gmra.mrb[48].mxu1 %vm880_vm7, %v1143_v45 }
 0x655   :  { %v4371_v34 = vpop.f32.mrb[36].mxu0 }
 0x656   :  { %v1411_v12 = vpop.f32.mrb[37].mxu0 }
 0x657   :  { %v4372_v4 = vpop.f32.mrb[38].mxu0 }
 0x658   :  { %v1443_v14 = vpack.c.bf16 %v4372_v4, %v4371_v34  ;;  %v1414_v24 = vpop.f32.mrb[39].mxu0 }
 0x659   :  { %v1442_v42 = vpack.c.bf16 %v1414_v24, %v1411_v12 }
 0x65b   :  { %4379 = vmatprep.mubr.msk.bf16.mxu0 %vm880_vm7, %v1442_v42 }
 0x65c   :  { %4380 = vmatmul.mubr.msk.bf16.vlgmr.msra.gmra.mrb[44].mxu0 %vm880_vm7, %v1443_v14 }
 0x65d   :  { %4398 = vmatpush3.bf16.xpose.msra.mxu0 %v1635_v10 }
 0x65e   :  { %4714 = vmatprep.subr.msk.bf16.mxu0 %vm880_vm7, %v1617_v43 }
 0x665   :  { %4400 = vmatpush3.bf16.xpose.msra.mxu0 %v1638_v48 }
 0x666   :  { %4715 = vmatprep.subr.msk.bf16.mxu0 %vm880_vm7, %v1619_v20 }
 0x66d   :  { %4402 = vmatpush3.bf16.xpose.msra.mxu0 %v1641_v6 }
 0x66e   :  { %4716 = vmatprep.subr.msk.bf16.mxu0 %vm880_vm7, %v1621_v56 }
 0x675   :  { %4404 = vmatpush3.bf16.xpose.msra.mxu0 %v1644_v57 }
 0x676   :  { %4718 = vmatprep.subr.msk.bf16.mxu0 %vm880_vm7, %v1993_v58 }
 0x68b   :  { %v4375_v31 = vpop.f32.mrb[40].mxu0 }
 0x68c   :  { %v1427_v49 = vpop.f32.mrb[41].mxu0 }
 0x68d   :  { %v4376_v3 = vpop.f32.mrb[42].mxu0 }
 0x68e   :  { %v1445_v61 = vpack.c.bf16 %v4376_v3, %v4375_v31  ;;  %v1430_v52 = vpop.f32.mrb[43].mxu0 }
 0x68f   :  { %v1444_v47 = vpack.c.bf16 %v1430_v52, %v1427_v49 }
 0x691   :  { %4383 = vmatprep.mubr.msk.bf16.mxu0 %vm880_vm7, %v1444_v47 }
 0x692   :  { %4384 = vmatmul.mubr.msk.bf16.gmra.mrb[48].mxu0 %vm880_vm7, %v1445_v61 }
 0x693   :  { %4405 = vmatprep.mubr.msk.bf16.mxu0 %vm880_vm7, %v1607_v60 }
 0x69a   :  { %4406 = vmatmul.mubr.msk.bf16.vlgmr.msra.gmra.mrb[52].mxu0 %vm880_vm7, %v1609_v27 }
 0x69b   :  { %4440 = vmatpush3.bf16.xpose.msra.mxu0 %v2013_v50  ;;  %4409 = vmatprep.mubr.msk.bf16.mxu0 %vm880_vm7, %v1611_v13 }
 0x69c   :  { %4719 = vmatprep.subr.msk.bf16.mxu0 %vm880_vm7, %v1995_v54 }
 0x6a2   :  { %4410 = vmatmul.mubr.msk.bf16.gmra.mrb[56].mxu0 %vm880_vm7, %v1613_v38 }
 0x6a3   :  { %4442 = vmatpush3.bf16.xpose.msra.mxu0 %v2016_v1  ;;  %4447 = vmatprep.mubr.msk.bf16.mxu0 %vm880_vm7, %v1985_v59 }
 0x6a4   :  { %4720 = vmatprep.subr.msk.bf16.mxu0 %vm880_vm7, %v1997_v5 }
 0x6ab   :  { %4444 = vmatpush3.bf16.xpose.msra.mxu0 %v2019_v11 }
 0x6ac   :  { %4721 = vmatprep.subr.msk.bf16.mxu0 %vm880_vm7, %v1999_v55 }
 0x6b3   :  { %4446 = vmatpush3.bf16.xpose.msra.mxu0 %v2022_v33 }
 0x6b4   :  { %4723 = vmatprep.subr.msk.bf16.mxu0 %vm880_vm7, %v5434_v53 }
 0x6ba   :  { %4448 = vmatmul.mubr.msk.bf16.vlgmr.msra.gmra.mrb[60].mxu0 %vm880_vm7, %v1987_v39 }
 0x6bb   :  { %4451 = vmatprep.mubr.msk.bf16.mxu0 %vm880_vm7, %v1989_v44  ;;  %4482 = vmatpush3.bf16.xpose.msra.mxu0 %v2405_v46 }
 0x6bc   :  { %4724 = vmatprep.subr.msk.bf16.mxu0 %vm880_vm7, %v5430_v35 }
 0x6c2   :  { %4452 = vmatmul.mubr.msk.bf16.gmra.mrb[64].mxu0 %vm880_vm7, %v1991_v17 }
 0x6c3   :  { %4484 = vmatpush3.bf16.xpose.msra.mxu0 %v2408_v25  ;;  %4489 = vmatprep.mubr.msk.bf16.mxu0 %vm880_vm7, %v5432_v36 }
 0x6c4   :  { %4725 = vmatprep.subr.msk.bf16.mxu0 %vm880_vm7, %v5458_v22 }
 0x6cb   :  { %4486 = vmatpush3.bf16.xpose.msra.mxu0 %v2411_v40 }
 0x6cc   :  { %4726 = vmatprep.subr.msk.bf16.mxu0 %vm880_vm7, %v5454_v19 }
 0x6d3   :  { %4488 = vmatpush3.bf16.xpose.msra.mxu0 %v2414_v2 }
 0x6da   :  { %4490 = vmatmul.mubr.msk.bf16.vlgmr.msra.gmra.mrb[68].mxu0 %vm880_vm7, %v5428_v26 }
 0x6db   :  { %4493 = vmatprep.mubr.msk.bf16.mxu0 %vm880_vm7, %v5456_v21 }
 0x6e2   :  { %4494 = vmatmul.mubr.msk.bf16.gmra.mrb[72].mxu0 %vm880_vm7, %v5452_v15 }
 0x72f   :  { %v5767_v62 = vpop.f32.mrb[44].mxu0 }
 0x730   :  { %v5769_v9 = vpop.f32.mrb[45].mxu0 }
 0x731   :  { %v5771_v16 = vpop.f32.mrb[46].mxu0 }
 0x732   :  { %v5773_v8 = vpop.f32.mrb[47].mxu0 }
 0x765   :  { %v5775_v45 = vpop.f32.mrb[48].mxu0 }
 0x766   :  { %v5777_v28 = vpop.f32.mrb[49].mxu0 }
 0x767   :  { %6625 = vst [vmem:[#allocation3_spill] sm:$0xff] %v5777_v28  ;;  %v5779_v51 = vpop.f32.mrb[50].mxu0 }
 0x768   :  { %6626 = vst [vmem:[#allocation4_spill] sm:$0xff] %v5779_v51  ;;  %v5781_v34 = vpop.f32.mrb[51].mxu0 }
 0x769   :  { %6627 = vst [vmem:[#allocation5_spill] sm:$0xff] %v5781_v34 }
 0x76d   :  { %v4407_v12 = vpop.f32.mrb[52].mxu0 }
 0x76e   :  { %v1680_v4 = vpop.f32.mrb[53].mxu0  ;;  %v1717_v43 = vsel %vm970_vm8, %v4407_v12, -inf }
 0x76f   :  { %v4408_v14 = vpop.f32.mrb[54].mxu0  ;;  %v1711_v24 = vsel %vm970_vm8, %v1680_v4, -inf }
 0x770   :  { %1712 = vmax.xlane.f32.xlu0 %v1711_v24  ;;  %v1683_v42 = vpop.f32.mrb[55].mxu0  ;;  %v1720_v6 = vsel %vm970_vm8, %v4408_v14, -inf }
 0x771   :  { %v1714_v10 = vsel %vm970_vm8, %v1683_v42, -inf }
 0x772   :  { %1715 = vmax.xlane.f32.xlu1 %v1714_v10 }
 0x774   :  { %1718 = vmax.xlane.f32.xlu0 %v1717_v43 }
 0x775   :  { %v4411_v20 = vpop.f32.mrb[56].mxu0 }
 0x776   :  { %v1696_v48 = vpop.f32.mrb[57].mxu0  ;;  %v1729_v57 = vsel %vm970_vm8, %v4411_v20, -inf }
 0x777   :  { %v4412_v60 = vpop.f32.mrb[58].mxu0  ;;  %v1723_v56 = vsel %vm970_vm8, %v1696_v48, -inf }
 0x778   :  { %1721 = vmax.xlane.f32.xlu0 %v1720_v6  ;;  %1724 = vmax.xlane.f32.xlu1 %v1723_v56  ;;  %v1699_v13 = vpop.f32.mrb[59].mxu0  ;;  %v1732_v31 = vsel %vm970_vm8, %v4412_v60, -inf }
 0x779   :  { %v1726_v58 = vsel %vm970_vm8, %v1699_v13, -inf }
 0x77c   :  { %1730 = vmax.xlane.f32.xlu1 %v1729_v57  ;;  %1727 = vmax.xlane.f32.xlu0 %v1726_v58 }
 0x780   :  { %1733 = vmax.xlane.f32.xlu0 %v1732_v31 }
 0x78d   :  { %v5791_v49 = vpop.f32.mrb[60].mxu0  ;;  %1803 = vrot.lane.b32.xlu1 %v5467_v37, %s5039_s10 }
 0x78e   :  { %v5795_v3 = vpop.f32.mrb[61].mxu0 }
 0x78f   :  { %v5797_v61 = vpop.f32.mrb[62].mxu0 }
 0x790   :  { %v5799_v52 = vpop.f32.mrb[63].mxu0 }
 0x795   :  { %v5801_v27 = vpop.f32.mrb[64].mxu0 }
 0x796   :  { %v5803_v47 = vpop.f32.mrb[65].mxu0 }
 0x797   :  { %v5805_v38 = vpop.f32.mrb[66].mxu0 }
 0x798   :  { %v5807_v50 = vpop.f32.mrb[67].mxu0 }
 0x7ad   :  { %v5809_v54 = vpop.f32.mrb[68].mxu0 }
 0x7ae   :  { %v5811_v5 = vpop.f32.mrb[69].mxu0 }
 0x7af   :  { %v5813_v59 = vpop.f32.mrb[70].mxu0 }
 0x7b0   :  { %v5815_v1 = vpop.f32.mrb[71].mxu0 }
 0x7b5   :  { %v5817_v11 = vpop.f32.mrb[72].mxu0 }
 0x7b6   :  { %v5819_v55 = vpop.f32.mrb[73].mxu0 }
 0x7b7   :  { %v5821_v33 = vpop.f32.mrb[74].mxu0 }
 0x7b8   :  { %v5823_v39 = vpop.f32.mrb[75].mxu0 }
 0x7fd   :  { %v1713_v44 = vpop.xlane.xlu0 %1712 }
 0x7fe   :  { %v1735_v46 = vsub.f32 %v1680_v4, %v1713_v44 }
 0x7ff   :  { %v1716_v17 = vpop.xlane.xlu1 %1715 }
 0x800   :  { %v1743_v2 = vmul.f32 1.442695, %v1735_v46  ;;  %v1736_v10 = vsub.f32 %v1683_v42, %v1716_v17 }
 0x801   :  { %v1719_v25 = vpop.xlane.xlu0 %1718 }
 0x802   :  { %v1737_v40 = vsub.f32 %v4407_v12, %v1719_v25  ;;  %v1745_v31 = vmul.f32 1.442695, %v1736_v10 }
 0x804   :  { %v1747_v24 = vmul.f32 1.442695, %v1737_v40 }
 0x805   :  { %v1725_v43 = vpop.xlane.xlu1 %1724  ;;  %v1722_v6 = vpop.xlane.xlu0 %1721 }
 0x806   :  { %4822 = vpow2.f32 %v1747_v24  ;;  %v1738_v56 = vsub.f32 %v4408_v14, %v1722_v6  ;;  %v1739_v57 = vsub.f32 %v1696_v48, %v1725_v43 }
 0x807   :  { %4824 = vpow2.f32 %v1743_v2 }
 0x808   :  { %v1749_v58 = vmul.f32 1.442695, %v1738_v56  ;;  %v1751_v28 = vmul.f32 1.442695, %v1739_v57  ;;  %v2092_v57 = vsel %vm970_vm8, %v5799_v52, -inf }
 0x809   :  { %v1731_v32 = vpop.xlane.xlu1 %1730  ;;  %v1728_v34 = vpop.xlane.xlu0 %1727 }
 0x80a   :  { %v1741_v51 = vsub.f32 %v4411_v20, %v1731_v32  ;;  %4826 = vpow2.f32 %v1749_v58  ;;  %v1740_v44 = vsub.f32 %v1699_v13, %v1728_v34  ;;  %v2089_v58 = vsel %vm970_vm8, %v5795_v3, -inf }
 0x80b   :  { %4828 = vpow2.f32 %v1745_v31  ;;  %v2101_v31 = vsel %vm970_vm8, %v5803_v47, -inf }
 0x80c   :  { %v1755_v4 = vmul.f32 1.442695, %v1741_v51  ;;  %v1753_v48 = vmul.f32 1.442695, %v1740_v44  ;;  %v2107_v44 = vsel %vm970_vm8, %v5801_v27, -inf }
 0x80d   :  { %v1804_v12 = vpop.permute.xlu1 %1803  ;;  %v1734_v46 = vpop.xlane.xlu0 %1733 }
 0x80e   :  { %4830 = vpow2.f32 %v1755_v4  ;;  %v1742_v42 = vsub.f32 %v4412_v60, %v1734_v46  ;;  %4413 = vmatprep.subr.bf16.mxu1 %v1804_v12  ;;  %v2095_v4 = vsel %vm970_vm8, %v5791_v49, -inf  ;;  %v2104_v46 = vsel %vm970_vm8, %v5807_v50, -inf }
 0x80f   :  { %4414 = vmatpush3.bf16.msra.mxu1 %v1804_v12  ;;  %4832 = vpow2.f32 %v1751_v28  ;;  %v2098_v12 = vsel %vm970_vm8, %v5797_v61, -inf }
 0x810   :  { %v5825_v17 = vpop.eup %4822  ;;  %v1757_v14 = vmul.f32 1.442695, %v1742_v42  ;;  %v2110_v42 = vsel %vm970_vm8, %v5805_v38, -inf }
 0x811   :  { %v1765_v25 = vsel %vm970_vm8, %v5825_v17, 0.0  ;;  %v5829_v32 = vpop.eup %4824 }
 0x812   :  { %4834 = vpow2.f32 %v1757_v14  ;;  %1766 = vadd.xlane.f32.xlu1 %v1765_v25  ;;  %v1759_v34 = vsel %vm970_vm8, %v5829_v32, 0.0 }
 0x813   :  { %4836 = vpow2.f32 %v1753_v48 }
 0x814   :  { %v5831_v51 = vpop.eup %4826 }
 0x815   :  { %v1768_v20 = vsel %vm970_vm8, %v5831_v51, 0.0  ;;  %v5837_v28 = vpop.eup %4828 }
 0x816   :  { %1760 = vadd.xlane.f32.xlu1 %v1759_v34  ;;  %1769 = vadd.xlane.f32.xlu0 %v1768_v20  ;;  %v1762_v2 = vsel %vm970_vm8, %v5837_v28, 0.0 }
 0x818   :  { %v5839_v60 = vpop.eup %4830 }
 0x819   :  { %v1777_v13 = vsel %vm970_vm8, %v5839_v60, 0.0  ;;  %v5843_v40 = vpop.eup %4832 }
 0x81a   :  { %1778 = vadd.xlane.f32.xlu1 %v1777_v13  ;;  %1763 = vadd.xlane.f32.xlu0 %v1762_v2  ;;  %v1771_v10 = vsel %vm970_vm8, %v5843_v40, 0.0 }
 0x81c   :  { %v5847_v24 = vpop.eup %4834 }
 0x81d   :  { %v1780_v43 = vsel %vm970_vm8, %v5847_v24, 0.0  ;;  %v5853_v6 = vpop.eup %4836 }
 0x81e   :  { %1772 = vadd.xlane.f32.xlu1 %v1771_v10  ;;  %1781 = vadd.xlane.f32.xlu0 %v1780_v43  ;;  %v1774_v56 = vsel %vm970_vm8, %v5853_v6, 0.0 }
 0x822   :  { %1775 = vadd.xlane.f32.xlu0 %v1774_v56 }
 0x82f   :  { %1807 = vrot.lane.b32.xlu1 %v5478_v30, %s5039_s10 }
 0x833   :  { %1809 = vrot.lane.b32.xlu1 %v5476_v29, %s5039_s10 }
 0x837   :  { %2672 = vrot.lane.b32.xlu1 %v5430_v35, %s5038_s6 }
 0x838   :  { %1805 = vrot.lane.b32.xlu0 %v5465_v7, %s5039_s10 }
 0x83b   :  { %2676 = vrot.lane.b32.xlu1 %v5454_v19, %s5038_s6 }
 0x83c   :  { %2670 = vrot.lane.b32.xlu0 %v5434_v53, %s5038_s6 }
 0x83f   :  { %2660 = vrot.lane.b32.xlu1 %v5428_v26, %s5038_s6 }
 0x840   :  { %2674 = vrot.lane.b32.xlu0 %v5458_v22, %s5038_s6 }
 0x843   :  { %2664 = vrot.lane.b32.xlu1 %v5452_v15, %s5038_s6 }
 0x844   :  { %2658 = vrot.lane.b32.xlu0 %v5432_v36, %s5038_s6 }
 0x848   :  { %2662 = vrot.lane.b32.xlu0 %v5456_v21, %s5038_s6 }
 0x867   :  { %2093 = vmax.xlane.f32.xlu1 %v2092_v57  ;;  %2090 = vmax.xlane.f32.xlu0 %v2089_v58 }
 0x86b   :  { %2102 = vmax.xlane.f32.xlu1 %v2101_v31  ;;  %2096 = vmax.xlane.f32.xlu0 %v2095_v4 }
 0x86f   :  { %2108 = vmax.xlane.f32.xlu1 %v2107_v44  ;;  %2099 = vmax.xlane.f32.xlu0 %v2098_v12 }
 0x873   :  { %2105 = vmax.xlane.f32.xlu0 %v2104_v46 }
 0x877   :  { %2111 = vmax.xlane.f32.xlu0 %v2110_v42 }
 0x880   :  { %2181 = vrot.lane.b32.xlu1 %v5467_v37, %s5040_s28 }
 0x89f   :  { %v1767_v14 = vpop.xlane.xlu1 %1766 }
 0x8a3   :  { %v1761_v48 = vpop.xlane.xlu1 %1760  ;;  %v1770_v25 = vpop.xlane.xlu0 %1769 }
 0x8a4   :  { %4838 = vrcp.f32 %v1761_v48 }
 0x8a7   :  { %v1779_v34 = vpop.xlane.xlu1 %1778  ;;  %v1764_v20 = vpop.xlane.xlu0 %1763 }
 0x8a8   :  { %4840 = vrcp.f32 %v1764_v20 }
 0x8a9   :  { %4842 = vrcp.f32 %v1770_v25 }
 0x8aa   :  { %4844 = vrcp.f32 %v1767_v14 }
 0x8ab   :  { %v1773_v13 = vpop.xlane.xlu1 %1772  ;;  %v1782_v2 = vpop.xlane.xlu0 %1781 }
 0x8ac   :  { %4846 = vrcp.f32 %v1773_v13  ;;  %v877_v13 = vld [vmem:[%s6620_s11 + $0x8] sm:$0xf] }
 0x8ae   :  { %v4839_v56 = vpop.eup %4838 }
 0x8af   :  { %v1808_v10 = vpop.permute.xlu1 %1807  ;;  %v1776_v43 = vpop.xlane.xlu0 %1775  ;;  %v1791_v37 = vmul.f32 %v4839_v56, %v5829_v32 }
 0x8b0   :  { %4848 = vrcp.f32 %v1776_v43 }
 0x8b1   :  { %4850 = vrcp.f32 %v1782_v2 }
 0x8b2   :  { %v4841_v57 = vpop.eup %4840  ;;  %4852 = vrcp.f32 %v1779_v34 }
 0x8b3   :  { %v1810_v58 = vpop.permute.xlu1 %1809  ;;  %v1806_v31 = vpop.permute.xlu0 %1805  ;;  %v1792_v4 = vmul.f32 %v4841_v57, %v5837_v28 }
 0x8b4   :  { %4415 = vmatprep.subr.bf16.mxu1 %v1806_v31  ;;  %v4843_v12 = vpop.eup %4842 }
 0x8b5   :  { %4416 = vmatpush3.bf16.msra.mxu1 %v1806_v31  ;;  %v1799_v44 = vpack.c.bf16 %v1792_v4, %v1791_v37  ;;  %v4845_v42 = vpop.eup %4844  ;;  %v1794_v28 = vmul.f32 %v4843_v12, %v5831_v51  ;;  %v5912_v31 = vsel %vm266_vm5, %v877_v13, 0 }
 0x8b6   :  { %4417 = vmatprep.subr.bf16.mxu1 %v1808_v10  ;;  %v4847_v48 = vpop.eup %4846  ;;  %v1793_v2 = vmul.f32 %v4845_v42, %v5825_v17 }
 0x8b7   :  { %4421 = vmatprep.mubr.msk.bf16.mxu1 %vm970_vm8, %v1799_v44  ;;  %v2671_v46 = vpop.permute.xlu0 %2670  ;;  %v2673_v25 = vpop.permute.xlu1 %2672  ;;  %v1795_v43 = vmul.f32 %v4847_v48, %v5843_v40 }
 0x8b8   :  { %4727 = vmatprep.subr.msk.bf16.mxu0 %vm880_vm7, %v2671_v46  ;;  %v2691_v14 = vsel %vm880_vm7, %v2671_v46, 0 }
 0x8b9   :  { %4418 = vmatpush3.bf16.msra.mxu1 %v1808_v10  ;;  %4514 = vmatpush3.bf16.xpose.msra.mxu0 %v2691_v14  ;;  %v1800_v10 = vpack.c.bf16 %v1794_v28, %v1793_v2 }
 0x8ba   :  { %v4849_v32 = vpop.eup %4848  ;;  %4419 = vmatprep.subr.bf16.mxu1 %v1810_v58  ;;  %4728 = vmatprep.subr.msk.bf16.mxu0 %vm880_vm7, %v2673_v25 }
 0x8bb   :  { %v2675_v20 = vpop.permute.xlu0 %2674  ;;  %v1796_v34 = vmul.f32 %v4849_v32, %v5853_v6  ;;  %v4851_v56 = vpop.eup %4850  ;;  %v2694_v6 = vsel %vm880_vm7, %v2673_v25, 0 }
 0x8bc   :  { %v4853_v37 = vpop.eup %4852  ;;  %v1798_v17 = vmul.f32 %v4851_v56, %v5847_v24  ;;  %v2697_v4 = vsel %vm880_vm7, %v2675_v20, 0  ;;  %v2677_v44 = vpop.permute.xlu1 %2676 }
 0x8bd   :  { %4420 = vmatpush3.bf16.msra.mxu1 %v1810_v58  ;;  %v1801_v57 = vpack.c.bf16 %v1796_v34, %v1795_v43  ;;  %v1797_v40 = vmul.f32 %v4853_v37, %v5839_v60  ;;  %v2700_v12 = vsel %vm880_vm7, %v2677_v44, 0 }
 0x8be   :  { %4717 = vmatprep.subr.msk.bf16.mxu1 %vm266_vm5, %v877_v13 }
 0x8bf   :  { %v2659_v51 = vpop.permute.xlu0 %2658  ;;  %v1802_v58 = vpack.c.bf16 %v1798_v17, %v1797_v40 }
 0x8c0   :  { %4422 = vmatmul.mubr.msk.bf16.vlgmr.msra.gmra.mrb[52].mxu1 %vm970_vm8, %v1800_v10  ;;  %4521 = vmatprep.mubr.msk.bf16.mxu0 %vm880_vm7, %v2659_v51  ;;  %v2661_v46 = vpop.permute.xlu1 %2660 }
 0x8c1   :  { %4425 = vmatprep.mubr.msk.bf16.mxu1 %vm970_vm8, %v1801_v57  ;;  %4516 = vmatpush3.bf16.xpose.msra.mxu0 %v2694_v6 }
 0x8c2   :  { %4729 = vmatprep.subr.msk.bf16.mxu0 %vm880_vm7, %v2675_v20  ;;  %4430 = vmatpush3.bf16.msra.mxu1 %v5912_v31 }
 0x8c3   :  { %v2663_v42 = vpop.permute.xlu0 %2662 }
 0x8c4   :  { %v2665_v24 = vpop.permute.xlu1 %2664 }
 0x8c8   :  { %4426 = vmatmul.mubr.msk.bf16.gmra.mrb[56].mxu1 %vm970_vm8, %v1802_v58 }
 0x8c9   :  { %4518 = vmatpush3.bf16.xpose.msra.mxu0 %v2697_v4 }
 0x8ca   :  { %4730 = vmatprep.subr.msk.bf16.mxu0 %vm880_vm7, %v2677_v44 }
 0x8d1   :  { %4520 = vmatpush3.bf16.xpose.msra.mxu0 %v2700_v12 }
 0x8d8   :  { %4522 = vmatmul.mubr.msk.bf16.vlgmr.msra.gmra.mrb[76].mxu0 %vm880_vm7, %v2661_v46 }
 0x8d9   :  { %4525 = vmatprep.mubr.msk.bf16.mxu0 %vm880_vm7, %v2663_v42 }
 0x8e0   :  { %4526 = vmatmul.mubr.msk.bf16.gmra.mrb[80].mxu0 %vm880_vm7, %v2665_v24 }
 0x8f4   :  { %v2094_v60 = vpop.xlane.xlu1 %2093  ;;  %v2091_v14 = vpop.xlane.xlu0 %2090 }
 0x8f5   :  { %v2113_v48 = vsub.f32 %v5795_v3, %v2091_v14  ;;  %v2114_v20 = vsub.f32 %v5799_v52, %v2094_v60 }
 0x8f7   :  { %v2121_v34 = vmul.f32 1.442695, %v2113_v48  ;;  %v2123_v51 = vmul.f32 1.442695, %v2114_v20 }
 0x8f8   :  { %v2103_v25 = vpop.xlane.xlu1 %2102  ;;  %v2097_v32 = vpop.xlane.xlu0 %2096 }
 0x8f9   :  { %v2115_v28 = vsub.f32 %v5791_v49, %v2097_v32  ;;  %v2117_v57 = vsub.f32 %v5803_v47, %v2103_v25 }
 0x8fb   :  { %v2125_v13 = vmul.f32 1.442695, %v2115_v28  ;;  %v2129_v52 = vmul.f32 1.442695, %v2117_v57 }
 0x8fc   :  { %v2109_v2 = vpop.xlane.xlu1 %2108  ;;  %v2100_v10 = vpop.xlane.xlu0 %2099 }
 0x8fd   :  { %v2119_v43 = vsub.f32 %v5801_v27, %v2109_v2  ;;  %4854 = vpow2.f32 %v2125_v13  ;;  %v2116_v56 = vsub.f32 %v5797_v61, %v2100_v10  ;;  %v2493_v13 = vsel %vm970_vm8, %v5819_v55, -inf }
 0x8fe   :  { %4856 = vpow2.f32 %v2121_v34  ;;  %v2490_v34 = vsel %vm970_vm8, %v5813_v59, -inf  ;;  %v2496_v2 = vsel %vm970_vm8, %v5823_v39, -inf  ;;  %v2502_v10 = vsel %vm970_vm8, %v5821_v33, -inf }
 0x8ff   :  { %v2133_v3 = vmul.f32 1.442695, %v2119_v43  ;;  %v2127_v6 = vmul.f32 1.442695, %v2116_v56  ;;  %v2499_v43 = vsel %vm970_vm8, %v5817_v11, -inf }
 0x900   :  { %v5935_v37 = vpop.permute.xlu1 %2181  ;;  %v2106_v49 = vpop.xlane.xlu0 %2105 }
 0x901   :  { %4455 = vmatprep.subr.bf16.mxu1 %v5935_v37  ;;  %4858 = vpow2.f32 %v2127_v6  ;;  %v2118_v27 = vsub.f32 %v5807_v50, %v2106_v49 }
 0x902   :  { %4860 = vpow2.f32 %v2123_v51 }
 0x903   :  { %4862 = vpow2.f32 %v2133_v3  ;;  %v2131_v47 = vmul.f32 1.442695, %v2118_v27 }
 0x904   :  { %v2112_v17 = vpop.xlane.xlu0 %2111  ;;  %4864 = vpow2.f32 %v2129_v52 }
 0x905   :  { %v2120_v61 = vsub.f32 %v5805_v38, %v2112_v17 }
 0x907   :  { %v5940_v40 = vpop.eup %4854  ;;  %v2135_v58 = vmul.f32 1.442695, %v2120_v61 }
 0x908   :  { %v2143_v4 = vsel %vm970_vm8, %v5940_v40, 0.0  ;;  %v5944_v44 = vpop.eup %4856 }
 0x909   :  { %4866 = vpow2.f32 %v2135_v58  ;;  %2144 = vadd.xlane.f32.xlu1 %v2143_v4  ;;  %v2137_v38 = vsel %vm970_vm8, %v5944_v44, 0.0 }
 0x90a   :  { %4868 = vpow2.f32 %v2131_v47 }
 0x90b   :  { %v5946_v12 = vpop.eup %4858 }
 0x90c   :  { %v5948_v46 = vpop.eup %4860  ;;  %v2146_v50 = vsel %vm970_vm8, %v5946_v12, 0.0 }
 0x90d   :  { %v5954_v42 = vpop.eup %4862  ;;  %2138 = vadd.xlane.f32.xlu1 %v2137_v38  ;;  %2147 = vadd.xlane.f32.xlu0 %v2146_v50  ;;  %v2140_v60 = vsel %vm970_vm8, %v5948_v46, 0.0 }
 0x90e   :  { %v2155_v24 = vsel %vm970_vm8, %v5954_v42, 0.0  ;;  %v5960_v14 = vpop.eup %4864 }
 0x90f   :  { %v2149_v25 = vsel %vm970_vm8, %v5960_v14, 0.0 }
 0x911   :  { %2156 = vadd.xlane.f32.xlu1 %v2155_v24  ;;  %2141 = vadd.xlane.f32.xlu0 %v2140_v60 }
 0x913   :  { %v5962_v48 = vpop.eup %4866 }
 0x914   :  { %v2158_v32 = vsel %vm970_vm8, %v5962_v48, 0.0  ;;  %v5968_v28 = vpop.eup %4868 }
 0x915   :  { %2150 = vadd.xlane.f32.xlu1 %v2149_v25  ;;  %2159 = vadd.xlane.f32.xlu0 %v2158_v32  ;;  %v2152_v20 = vsel %vm970_vm8, %v5968_v28, 0.0 }
 0x919   :  { %2153 = vadd.xlane.f32.xlu0 %v2152_v20 }
 0x926   :  { %2185 = vrot.lane.b32.xlu1 %v5478_v30, %s5040_s28  ;;  %v2484_v30 = vsel %vm970_vm8, %v5815_v1, -inf }
 0x92a   :  { %2187 = vrot.lane.b32.xlu1 %v5476_v29, %s5040_s28  ;;  %v2487_v29 = vsel %vm970_vm8, %v5809_v54, -inf }
 0x92e   :  { %3120 = vrot.lane.b32.xlu1 %v5430_v35, %s5039_s10 }
 0x92f   :  { %2183 = vrot.lane.b32.xlu0 %v5465_v7, %s5040_s28  ;;  %v2481_v7 = vsel %vm970_vm8, %v5811_v5, -inf }
 0x932   :  { %3124 = vrot.lane.b32.xlu1 %v5454_v19, %s5039_s10 }
 0x933   :  { %3118 = vrot.lane.b32.xlu0 %v5434_v53, %s5039_s10 }
 0x936   :  { %3112 = vrot.lane.b32.xlu1 %v5428_v26, %s5039_s10 }
 0x937   :  { %3122 = vrot.lane.b32.xlu0 %v5458_v22, %s5039_s10 }
 0x93b   :  { %3110 = vrot.lane.b32.xlu0 %v5432_v36, %s5039_s10 }
 0x93f   :  { %3114 = vrot.lane.b32.xlu0 %v5456_v21, %s5039_s10 }
 0x95a   :  { %2482 = vmax.xlane.f32.xlu1 %v2481_v7 }
 0x95e   :  { %2488 = vmax.xlane.f32.xlu1 %v2487_v29  ;;  %2485 = vmax.xlane.f32.xlu0 %v2484_v30 }
 0x962   :  { %2491 = vmax.xlane.f32.xlu1 %v2490_v34 }
 0x966   :  { %2494 = vmax.xlane.f32.xlu1 %v2493_v13 }
 0x96a   :  { %2497 = vmax.xlane.f32.xlu1 %v2496_v2 }
 0x96e   :  { %2500 = vmax.xlane.f32.xlu1 %v2499_v43 }
 0x972   :  { %2503 = vmax.xlane.f32.xlu1 %v2502_v10 }
 0x974   :  { %3116 = vrot.lane.b32.xlu0 %v5452_v15, %s5039_s10 }
 0x993   :  { %v4423_v56 = vpop.f32.mrb[52].mxu1 }
 0x994   :  { %v1861_v51 = vpop.f32.mrb[53].mxu1 }
 0x995   :  { %v4424_v57 = vpop.f32.mrb[54].mxu1 }
 0x996   :  { %v1893_v3 = vpack.c.bf16 %v4424_v57, %v4423_v56  ;;  %v1864_v6 = vpop.f32.mrb[55].mxu1  ;;  %v2145_v49 = vpop.xlane.xlu1 %2144 }
 0x997   :  { %v1892_v52 = vpack.c.bf16 %v1864_v6, %v1861_v51 }
 0x999   :  { %4431 = vmatprep.mubr.msk.bf16.mxu1 %vm880_vm7, %v1892_v52 }
 0x99a   :  { %4432 = vmatmul.mubr.msk.bf16.vlgmr.msra.gmra.mrb[44].mxu1 %vm880_vm7, %v1893_v3  ;;  %v2139_v27 = vpop.xlane.xlu1 %2138  ;;  %v2148_v17 = vpop.xlane.xlu0 %2147 }
 0x99b   :  { %4456 = vmatpush3.bf16.msra.mxu1 %v5935_v37  ;;  %v4427_v61 = vpop.f32.mrb[56].mxu1  ;;  %4870 = vrcp.f32 %v2139_v27 }
 0x99c   :  { %v1877_v47 = vpop.f32.mrb[57].mxu1 }
 0x99d   :  { %v4428_v58 = vpop.f32.mrb[58].mxu1 }
 0x99e   :  { %v1895_v4 = vpack.c.bf16 %v4428_v58, %v4427_v61  ;;  %v1880_v38 = vpop.f32.mrb[59].mxu1  ;;  %v2157_v50 = vpop.xlane.xlu1 %2156 }
 0x99f   :  { %v1894_v24 = vpack.c.bf16 %v1880_v38, %v1877_v47  ;;  %v2142_v60 = vpop.xlane.xlu0 %2141 }
 0x9a0   :  { %4872 = vrcp.f32 %v2142_v60 }
 0x9a1   :  { %4435 = vmatprep.mubr.msk.bf16.mxu1 %vm880_vm7, %v1894_v24  ;;  %4874 = vrcp.f32 %v2148_v17 }
 0x9a2   :  { %4436 = vmatmul.mubr.msk.bf16.gmra.mrb[48].mxu1 %vm880_vm7, %v1895_v4  ;;  %v2151_v25 = vpop.xlane.xlu1 %2150  ;;  %4876 = vrcp.f32 %v2145_v49 }
 0x9a3   :  { %v2160_v32 = vpop.xlane.xlu0 %2159  ;;  %4878 = vrcp.f32 %v2151_v25 }
 0x9a5   :  { %v4871_v7 = vpop.eup %4870 }
 0x9a6   :  { %v2186_v20 = vpop.permute.xlu1 %2185  ;;  %v2169_v2 = vmul.f32 %v4871_v7, %v5944_v44 }
 0x9a7   :  { %v2154_v37 = vpop.xlane.xlu0 %2153 }
 0x9a8   :  { %4880 = vrcp.f32 %v2154_v37 }
 0x9a9   :  { %4882 = vrcp.f32 %v2160_v32 }
 0x9aa   :  { %v4873_v29 = vpop.eup %4872  ;;  %v2188_v30 = vpop.permute.xlu1 %2187  ;;  %4884 = vrcp.f32 %v2157_v50  ;;  %v878_v50 = vld [vmem:[%s6620_s11 + $0xc] sm:$0xf] }
 0x9ab   :  { %v2184_v34 = vpop.permute.xlu0 %2183  ;;  %v6015_v13 = vpop.f32.mrb[76].mxu0  ;;  %v2170_v43 = vmul.f32 %v4873_v29, %v5948_v46 }
 0x9ac   :  { %4457 = vmatprep.subr.bf16.mxu1 %v2184_v34  ;;  %v6019_v10 = vpop.f32.mrb[77].mxu0  ;;  %v4875_v6 = vpop.eup %4874  ;;  %v2773_v38 = vsel %vm970_vm8, %v6015_v13, -inf }
 0x9ad   :  { %4458 = vmatpush3.bf16.msra.mxu1 %v2184_v34  ;;  %v6021_v56 = vpop.f32.mrb[78].mxu0  ;;  %v2767_v51 = vsel %vm970_vm8, %v6019_v10, -inf  ;;  %v2177_v57 = vpack.c.bf16 %v2170_v43, %v2169_v2  ;;  %v4877_v49 = vpop.eup %4876  ;;  %v2172_v47 = vmul.f32 %v4875_v6, %v5946_v12 }
 0x9ae   :  { %4459 = vmatprep.subr.bf16.mxu1 %v2186_v20  ;;  %v6025_v3 = vpop.f32.mrb[79].mxu0  ;;  %2768 = vmax.xlane.f32.xlu0 %v2767_v51  ;;  %v4879_v27 = vpop.eup %4878  ;;  %v2171_v60 = vmul.f32 %v4877_v49, %v5940_v40  ;;  %v2776_v40 = vsel %vm970_vm8, %v6021_v56, -inf }
 0x9af   :  { %4463 = vmatprep.mubr.msk.bf16.mxu1 %vm970_vm8, %v2177_v57  ;;  %v3119_v44 = vpop.permute.xlu0 %3118  ;;  %v2770_v46 = vsel %vm970_vm8, %v6025_v3, -inf  ;;  %v3121_v17 = vpop.permute.xlu1 %3120  ;;  %v2173_v32 = vmul.f32 %v4879_v27, %v5960_v14 }
 0x9b0   :  { %v3139_v52 = vsel %vm880_vm7, %v3119_v44, 0  ;;  %4733 = vmatprep.subr.msk.bf16.mxu0 %vm880_vm7, %v3119_v44  ;;  %2771 = vmax.xlane.f32.xlu1 %v2770_v46  ;;  %v3142_v14 = vsel %vm880_vm7, %v3121_v17, 0 }
 0x9b1   :  { %4460 = vmatpush3.bf16.msra.mxu1 %v2186_v20  ;;  %4566 = vmatpush3.bf16.xpose.msra.mxu0 %v3139_v52  ;;  %v2178_v20 = vpack.c.bf16 %v2172_v47, %v2171_v60 }
 0x9b2   :  { %v4881_v61 = vpop.eup %4880  ;;  %4461 = vmatprep.subr.bf16.mxu1 %v2188_v30  ;;  %4734 = vmatprep.subr.msk.bf16.mxu0 %vm880_vm7, %v3121_v17 }
 0x9b3   :  { %v3123_v58 = vpop.permute.xlu0 %3122  ;;  %v6034_v4 = vpop.f32.mrb[80].mxu0  ;;  %v2174_v24 = vmul.f32 %v4881_v61, %v5968_v28  ;;  %v6052_v28 = vsel %vm266_vm5, %v878_v50, 0 }
 0x9b4   :  { %v6043_v25 = vpop.f32.mrb[81].mxu0  ;;  %2774 = vmax.xlane.f32.xlu1 %v2773_v38  ;;  %v4883_v7 = vpop.eup %4882  ;;  %v3145_v44 = vsel %vm880_vm7, %v3123_v58, 0  ;;  %v2785_v46 = vsel %vm970_vm8, %v6034_v4, -inf }
 0x9b5   :  { %4462 = vmatpush3.bf16.msra.mxu1 %v2188_v30  ;;  %v6045_v12 = vpop.f32.mrb[82].mxu0  ;;  %v2179_v34 = vpack.c.bf16 %v2174_v24, %v2173_v32  ;;  %v4885_v30 = vpop.eup %4884  ;;  %v2176_v2 = vmul.f32 %v4883_v7, %v5962_v48  ;;  %v2779_v43 = vsel %vm970_vm8, %v6043_v25, -inf }
 0x9b6   :  { %v6048_v37 = vpop.f32.mrb[83].mxu0  ;;  %4722 = vmatprep.subr.msk.bf16.mxu1 %vm266_vm5, %v878_v50  ;;  %v2175_v51 = vmul.f32 %v4885_v30, %v5954_v42  ;;  %v3125_v48 = vpop.permute.xlu1 %3124  ;;  %v2788_v42 = vsel %vm970_vm8, %v6045_v12, -inf }
 0x9b7   :  { %v3111_v29 = vpop.permute.xlu0 %3110  ;;  %v2782_v6 = vsel %vm970_vm8, %v6048_v37, -inf  ;;  %v3148_v49 = vsel %vm880_vm7, %v3125_v48, 0 }
 0x9b8   :  { %4464 = vmatmul.mubr.msk.bf16.vlgmr.msra.gmra.mrb[60].mxu1 %vm970_vm8, %v2178_v20  ;;  %4573 = vmatprep.mubr.msk.bf16.mxu0 %vm880_vm7, %v3111_v29  ;;  %v2180_v57 = vpack.c.bf16 %v2176_v2, %v2175_v51 }
 0x9b9   :  { %2777 = vmax.xlane.f32.xlu1 %v2776_v40  ;;  %4467 = vmatprep.mubr.msk.bf16.mxu1 %vm970_vm8, %v2179_v34 }
 0x9ba   :  { %4472 = vmatpush3.bf16.msra.mxu1 %v6052_v28  ;;  %4568 = vmatpush3.bf16.xpose.msra.mxu0 %v3142_v14  ;;  %v3113_v52 = vpop.permute.xlu1 %3112 }
 0x9bb   :  { %4497 = vmatprep.subr.bf16.mxu1 %v5488_v41  ;;  %4735 = vmatprep.subr.msk.bf16.mxu0 %vm880_vm7, %v3123_v58  ;;  %v3115_v27 = vpop.permute.xlu0 %3114 }
 0x9bd   :  { %2780 = vmax.xlane.f32.xlu1 %v2779_v43 }
 0x9c0   :  { %4468 = vmatmul.mubr.msk.bf16.gmra.mrb[64].mxu1 %vm970_vm8, %v2180_v57 }
 0x9c1   :  { %2783 = vmax.xlane.f32.xlu1 %v2782_v6 }
 0x9c2   :  { %4570 = vmatpush3.bf16.xpose.msra.mxu0 %v3145_v44 }
 0x9c3   :  { %4736 = vmatprep.subr.msk.bf16.mxu0 %vm880_vm7, %v3125_v48 }
 0x9c5   :  { %2786 = vmax.xlane.f32.xlu1 %v2785_v46 }
 0x9c9   :  { %2789 = vmax.xlane.f32.xlu1 %v2788_v42 }
 0x9ca   :  { %4572 = vmatpush3.bf16.xpose.msra.mxu0 %v3148_v49 }
 0x9d1   :  { %4574 = vmatmul.mubr.msk.bf16.vlgmr.msra.gmra.mrb[84].mxu0 %vm880_vm7, %v3113_v52 }
 0x9d2   :  { %4577 = vmatprep.mubr.msk.bf16.mxu0 %vm880_vm7, %v3115_v27 }
 0x9e7   :  { %v2483_v17 = vpop.xlane.xlu1 %2482 }
 0x9e8   :  { %v2505_v61 = vsub.f32 %v5811_v5, %v2483_v17 }
 0x9ea   :  { %v2513_v50 = vmul.f32 1.442695, %v2505_v61 }
 0x9eb   :  { %v2489_v47 = vpop.xlane.xlu1 %2488  ;;  %v2486_v58 = vpop.xlane.xlu0 %2485 }
 0x9ec   :  { %v2507_v38 = vsub.f32 %v5809_v54, %v2489_v47  ;;  %v2506_v60 = vsub.f32 %v5815_v1, %v2486_v58 }
 0x9ee   :  { %v2517_v24 = vmul.f32 1.442695, %v2507_v38  ;;  %v2515_v29 = vmul.f32 1.442695, %v2506_v60 }
 0x9ef   :  { %v2492_v32 = vpop.xlane.xlu1 %2491  ;;  %v3117_v20 = vpop.permute.xlu0 %3116 }
 0x9f0   :  { %4886 = vpow2.f32 %v2517_v24  ;;  %v2508_v7 = vsub.f32 %v5813_v59, %v2492_v32  ;;  %4578 = vmatmul.mubr.msk.bf16.gmra.mrb[88].mxu0 %vm880_vm7, %v3117_v20 }
 0x9f1   :  { %4888 = vpow2.f32 %v2513_v50 }
 0x9f2   :  { %v2519_v34 = vmul.f32 1.442695, %v2508_v7 }
 0x9f3   :  { %v2495_v40 = vpop.xlane.xlu1 %2494 }
 0x9f4   :  { %4890 = vpow2.f32 %v2519_v34  ;;  %v2509_v54 = vsub.f32 %v5819_v55, %v2495_v40 }
 0x9f5   :  { %4892 = vpow2.f32 %v2515_v29 }
 0x9f6   :  { %v2521_v51 = vmul.f32 1.442695, %v2509_v54 }
 0x9f7   :  { %v2498_v5 = vpop.xlane.xlu1 %2497 }
 0x9f8   :  { %v2510_v57 = vsub.f32 %v5823_v39, %v2498_v5 }
 0x9fa   :  { %v6084_v30 = vpop.eup %4886 }
 0x9fb   :  { %v2501_v14 = vpop.xlane.xlu1 %2500  ;;  %v2535_v1 = vsel %vm970_vm8, %v6084_v30, 0.0  ;;  %v6089_v2 = vpop.eup %4888 }
 0x9fc   :  { %v2511_v59 = vsub.f32 %v5817_v11, %v2501_v14  ;;  %2536 = vadd.xlane.f32.xlu0 %v2535_v1  ;;  %v2529_v55 = vsel %vm970_vm8, %v6089_v2, 0.0  ;;  %v2523_v11 = vmul.f32 1.442695, %v2510_v57 }
 0x9fe   :  { %v6092_v43 = vpop.eup %4890  ;;  %v2525_v6 = vmul.f32 1.442695, %v2511_v59 }
 0x9ff   :  { %v2504_v44 = vpop.xlane.xlu1 %2503  ;;  %v2538_v48 = vsel %vm970_vm8, %v6092_v43, 0.0  ;;  %v6099_v46 = vpop.eup %4892 }
 0xa00   :  { %4894 = vpow2.f32 %v2525_v6  ;;  %v2512_v42 = vsub.f32 %v5821_v33, %v2504_v44  ;;  %2539 = vadd.xlane.f32.xlu1 %v2538_v48  ;;  %2530 = vadd.xlane.f32.xlu0 %v2529_v55  ;;  %v2532_v39 = vsel %vm970_vm8, %v6099_v46, 0.0 }
 0xa01   :  { %4896 = vpow2.f32 %v2521_v51 }
 0xa02   :  { %v2527_v49 = vmul.f32 1.442695, %v2512_v42 }
 0xa04   :  { %4898 = vpow2.f32 %v2527_v49  ;;  %2533 = vadd.xlane.f32.xlu1 %v2532_v39 }
 0xa05   :  { %4900 = vpow2.f32 %v2523_v11 }
 0xa0a   :  { %v6104_v52 = vpop.eup %4894 }
 0xa0b   :  { %v2547_v27 = vsel %vm970_vm8, %v6104_v52, 0.0  ;;  %v6108_v17 = vpop.eup %4896 }
 0xa0c   :  { %2548 = vadd.xlane.f32.xlu0 %v2547_v27  ;;  %v2541_v61 = vsel %vm970_vm8, %v6108_v17, 0.0 }
 0xa0e   :  { %v6110_v33 = vpop.eup %4898 }
 0xa0f   :  { %v2550_v47 = vsel %vm970_vm8, %v6110_v33, 0.0  ;;  %v6116_v58 = vpop.eup %4900 }
 0xa10   :  { %2542 = vadd.xlane.f32.xlu0 %v2541_v61  ;;  %2551 = vadd.xlane.f32.xlu1 %v2550_v47  ;;  %v2544_v38 = vsel %vm970_vm8, %v6116_v58, 0.0 }
 0xa14   :  { %2545 = vadd.xlane.f32.xlu1 %v2544_v38 }
 0xa3b   :  { %v2769_v50 = vpop.xlane.xlu0 %2768 }
 0xa3c   :  { %v2791_v60 = vsub.f32 %v6019_v10, %v2769_v50 }
 0xa3d   :  { %v2772_v24 = vpop.xlane.xlu1 %2771 }
 0xa3e   :  { %v2799_v7 = vmul.f32 1.442695, %v2791_v60  ;;  %v2792_v34 = vsub.f32 %v6025_v3, %v2772_v24 }
 0xa40   :  { %v2801_v54 = vmul.f32 1.442695, %v2792_v34 }
 0xa41   :  { %v2775_v32 = vpop.xlane.xlu1 %2774 }
 0xa42   :  { %v2793_v20 = vsub.f32 %v6015_v13, %v2775_v32 }
 0xa44   :  { %v2803_v29 = vmul.f32 1.442695, %v2793_v20 }
 0xa46   :  { %4902 = vpow2.f32 %v2803_v29  ;;  %v2778_v40 = vpop.xlane.xlu1 %2777 }
 0xa47   :  { %v2794_v5 = vsub.f32 %v6021_v56, %v2778_v40  ;;  %4904 = vpow2.f32 %v2799_v7 }
 0xa49   :  { %v2805_v14 = vmul.f32 1.442695, %v2794_v5 }
 0xa4a   :  { %v2781_v1 = vpop.xlane.xlu1 %2780 }
 0xa4b   :  { %4906 = vpow2.f32 %v2805_v14  ;;  %v2795_v10 = vsub.f32 %v6043_v25, %v2781_v1 }
 0xa4c   :  { %4908 = vpow2.f32 %v2801_v54 }
 0xa4d   :  { %v2807_v44 = vmul.f32 1.442695, %v2795_v10 }
 0xa4e   :  { %v2784_v59 = vpop.xlane.xlu1 %2783 }
 0xa4f   :  { %v2796_v38 = vsub.f32 %v6048_v37, %v2784_v59 }
 0xa50   :  { %v6124_v51 = vpop.eup %4902 }
 0xa51   :  { %v2821_v13 = vsel %vm970_vm8, %v6124_v51, 0.0  ;;  %v6129_v57 = vpop.eup %4904  ;;  %v2809_v24 = vmul.f32 1.442695, %v2796_v38 }
 0xa52   :  { %v2787_v3 = vpop.xlane.xlu1 %2786  ;;  %2822 = vadd.xlane.f32.xlu0 %v2821_v13  ;;  %v2815_v55 = vsel %vm970_vm8, %v6129_v57, 0.0 }
 0xa53   :  { %v2797_v56 = vsub.f32 %v6034_v4, %v2787_v3 }
 0xa55   :  { %v6132_v6 = vpop.eup %4906  ;;  %v2811_v48 = vmul.f32 1.442695, %v2797_v56 }
 0xa56   :  { %v2824_v42 = vsel %vm970_vm8, %v6132_v6, 0.0  ;;  %2816 = vadd.xlane.f32.xlu0 %v2815_v55  ;;  %v6138_v25 = vpop.eup %4908  ;;  %v2790_v61 = vpop.xlane.xlu1 %2789 }
 0xa57   :  { %4910 = vpow2.f32 %v2811_v48  ;;  %2825 = vadd.xlane.f32.xlu1 %v2824_v42  ;;  %v2818_v11 = vsel %vm970_vm8, %v6138_v25, 0.0  ;;  %v2798_v47 = vsub.f32 %v6045_v12, %v2790_v61 }
 0xa58   :  { %4912 = vpow2.f32 %v2807_v44 }
 0xa59   :  { %v2813_v50 = vmul.f32 1.442695, %v2798_v47 }
 0xa5b   :  { %2819 = vadd.xlane.f32.xlu1 %v2818_v11  ;;  %4914 = vpow2.f32 %v2813_v50 }
 0xa5c   :  { %4916 = vpow2.f32 %v2809_v24 }
 0xa61   :  { %v6142_v4 = vpop.eup %4910 }
 0xa62   :  { %v2833_v49 = vsel %vm970_vm8, %v6142_v4, 0.0  ;;  %v6146_v39 = vpop.eup %4912 }
 0xa63   :  { %2834 = vadd.xlane.f32.xlu0 %v2833_v49  ;;  %v2827_v27 = vsel %vm970_vm8, %v6146_v39, 0.0 }
 0xa67   :  { %2828 = vadd.xlane.f32.xlu0 %v2827_v27 }
 0xa6c   :  { %2865 = vrot.lane.b32.xlu1 %v5486_v18, %s5038_s6 }
 0xa70   :  { %2867 = vrot.lane.b32.xlu1 %v5493_v0, %s5038_s6 }
 0xa7d   :  { %2863 = vrot.lane.b32.xlu0 %v5488_v41, %s5038_s6 }
 0xa81   :  { %3493 = vrot.lane.b32.xlu0 %v5434_v53, %s5040_s28 }
 0xa85   :  { %3497 = vrot.lane.b32.xlu0 %v5458_v22, %s5040_s28  ;;  %v6166_v22 = vpop.eup %4914 }
 0xa86   :  { %v6173_v5 = vpop.eup %4916 }
 0xa87   :  { %v2830_v13 = vsel %vm970_vm8, %v6173_v5, 0.0 }
 0xa89   :  { %3485 = vrot.lane.b32.xlu0 %v5432_v36, %s5040_s28  ;;  %v2537_v60 = vpop.xlane.xlu0 %2536 }
 0xa8b   :  { %v4465_v32 = vpop.f32.mrb[60].mxu1 }
 0xa8c   :  { %v2239_v20 = vpop.f32.mrb[61].mxu1 }
 0xa8d   :  { %v4466_v7 = vpop.f32.mrb[62].mxu1  ;;  %3489 = vrot.lane.b32.xlu0 %v5456_v21, %s5040_s28  ;;  %v2540_v53 = vpop.xlane.xlu1 %2539  ;;  %v2836_v21 = vsel %vm970_vm8, %v6166_v22, 0.0 }
 0xa8e   :  { %v2271_v12 = vpack.c.bf16 %v4466_v7, %v4465_v32  ;;  %v2242_v37 = vpop.f32.mrb[63].mxu1  ;;  %v2531_v29 = vpop.xlane.xlu0 %2530  ;;  %4918 = vrcp.f32 %v2540_v53 }
 0xa8f   :  { %v2270_v34 = vpack.c.bf16 %v2242_v37, %v2239_v20  ;;  %4920 = vrcp.f32 %v2531_v29 }
 0xa90   :  { %4922 = vrcp.f32 %v2537_v60 }
 0xa91   :  { %4473 = vmatprep.mubr.msk.bf16.mxu1 %vm880_vm7, %v2270_v34  ;;  %v2534_v36 = vpop.xlane.xlu1 %2533 }
 0xa92   :  { %4474 = vmatmul.mubr.msk.bf16.vlgmr.msra.gmra.mrb[44].mxu1 %vm880_vm7, %v2271_v12  ;;  %4924 = vrcp.f32 %v2534_v36 }
 0xa93   :  { %4498 = vmatpush3.bf16.msra.mxu1 %v5488_v41  ;;  %v4469_v40 = vpop.f32.mrb[64].mxu1 }
 0xa94   :  { %4499 = vmatprep.subr.bf16.mxu1 %v5486_v18  ;;  %v2255_v54 = vpop.f32.mrb[65].mxu1  ;;  %2837 = vadd.xlane.f32.xlu1 %v2836_v21 }
 0xa95   :  { %v4470_v14 = vpop.f32.mrb[66].mxu1 }
 0xa96   :  { %v2273_v1 = vpack.c.bf16 %v4470_v14, %v4469_v40  ;;  %v2258_v59 = vpop.f32.mrb[67].mxu1 }
 0xa97   :  { %v2272_v10 = vpack.c.bf16 %v2258_v59, %v2255_v54  ;;  %4500 = vmatpush3.bf16.msra.mxu1 %v5486_v18 }
 0xa98   :  { %4501 = vmatprep.subr.bf16.mxu1 %v5493_v0  ;;  %2831 = vadd.xlane.f32.xlu1 %v2830_v13  ;;  %v4919_v3 = vpop.eup %4918 }
 0xa99   :  { %4477 = vmatprep.mubr.msk.bf16.mxu1 %vm880_vm7, %v2272_v10  ;;  %v2549_v56 = vpop.xlane.xlu0 %2548  ;;  %v4921_v44 = vpop.eup %4920  ;;  %v2564_v42 = vmul.f32 %v4919_v3, %v6092_v43 }
 0xa9a   :  { %4478 = vmatmul.mubr.msk.bf16.gmra.mrb[48].mxu1 %vm880_vm7, %v2273_v1  ;;  %v4923_v48 = vpop.eup %4922  ;;  %v2561_v27 = vmul.f32 %v4921_v44, %v6089_v2 }
 0xa9b   :  { %4502 = vmatpush3.bf16.msra.mxu1 %v5493_v0  ;;  %v2563_v47 = vmul.f32 %v4923_v48, %v6084_v30 }
 0xa9c   :  { %v4925_v55 = vpop.eup %4924  ;;  %4503 = vmatprep.subr.bf16.mxu1 %v5491_v63 }
 0xa9d   :  { %v2552_v11 = vpop.xlane.xlu1 %2551  ;;  %v2543_v49 = vpop.xlane.xlu0 %2542  ;;  %v2562_v61 = vmul.f32 %v4925_v55, %v6099_v46  ;;  %v2570_v50 = vpack.c.bf16 %v2564_v42, %v2563_v47 }
 0xa9e   :  { %4926 = vrcp.f32 %v2552_v11 }
 0xa9f   :  { %4504 = vmatpush3.bf16.msra.mxu1 %v5491_v63  ;;  %v2569_v38 = vpack.c.bf16 %v2562_v61, %v2561_v27  ;;  %4928 = vrcp.f32 %v2543_v49 }
 0xaa0   :  { %4930 = vrcp.f32 %v2549_v56 }
 0xaa1   :  { %v2546_v24 = vpop.xlane.xlu1 %2545  ;;  %4505 = vmatprep.mubr.msk.bf16.mxu1 %vm970_vm8, %v2569_v38 }
 0xaa2   :  { %4932 = vrcp.f32 %v2546_v24  ;;  %4506 = vmatmul.mubr.msk.bf16.vlgmr.msra.gmra.mrb[68].mxu1 %vm970_vm8, %v2570_v50 }
 0xaa4   :  { %v6191_v43 = vpop.f32.mrb[84].mxu0 }
 0xaa5   :  { %v6193_v2 = vpop.f32.mrb[85].mxu0  ;;  %v3221_v36 = vsel %vm970_vm8, %v6191_v43, -inf }
 0xaa6   :  { %v6195_v46 = vpop.f32.mrb[86].mxu0  ;;  %v3215_v7 = vsel %vm970_vm8, %v6193_v2, -inf }
 0xaa7   :  { %v6197_v30 = vpop.f32.mrb[87].mxu0 }
 0xaa8   :  { %v4927_v60 = vpop.eup %4926 }
 0xaa9   :  { %2869 = vrot.lane.b32.xlu1 %v5491_v63, %s5038_s6  ;;  %v4929_v32 = vpop.eup %4928  ;;  %v2568_v12 = vmul.f32 %v4927_v60, %v6110_v33 }
 0xaaa   :  { %v4931_v20 = vpop.eup %4930  ;;  %v2565_v37 = vmul.f32 %v4929_v32, %v6108_v17 }
 0xaab   :  { %v2567_v34 = vmul.f32 %v4931_v20, %v6104_v52 }
 0xaac   :  { %v4933_v53 = vpop.eup %4932  ;;  %3216 = vmax.xlane.f32.xlu0 %v3215_v7 }
 0xaad   :  { %3495 = vrot.lane.b32.xlu1 %v5430_v35, %s5040_s28  ;;  %v2566_v29 = vmul.f32 %v4933_v53, %v6116_v58  ;;  %v2572_v21 = vpack.c.bf16 %v2568_v12, %v2567_v34  ;;  %v3224_v35 = vsel %vm970_vm8, %v6195_v46, -inf }
 0xaaf   :  { %v2571_v40 = vpack.c.bf16 %v2566_v29, %v2565_v37  ;;  %v5014_v37 = vld [vmem:[%s6620_s11 + $0x4] sm:$0xf] }
 0xab0   :  { %3222 = vmax.xlane.f32.xlu0 %v3221_v36 }
 0xab1   :  { %3499 = vrot.lane.b32.xlu1 %v5454_v19, %s5040_s28  ;;  %4509 = vmatprep.mubr.msk.bf16.mxu1 %vm970_vm8, %v2571_v40 }
 0xab2   :  { %4510 = vmatmul.mubr.msk.bf16.gmra.mrb[72].mxu1 %vm970_vm8, %v2572_v21 }
 0xab4   :  { %3225 = vmax.xlane.f32.xlu0 %v3224_v35  ;;  %v5015_v35 = vld [vmem:[%s6620_s11] sm:$0xf] }
 0xab5   :  { %3487 = vrot.lane.b32.xlu1 %v5428_v26, %s5040_s28  ;;  %v3218_v26 = vsel %vm970_vm8, %v6197_v30, -inf }
 0xab9   :  { %3491 = vrot.lane.b32.xlu1 %v5452_v15, %s5040_s28 }
 0xac3   :  { %v6221_v52 = vpop.f32.mrb[88].mxu0 }
 0xac4   :  { %v6223_v17 = vpop.f32.mrb[89].mxu0  ;;  %v3233_v54 = vsel %vm970_vm8, %v6221_v52, -inf }
 0xac5   :  { %v6225_v33 = vpop.f32.mrb[90].mxu0  ;;  %v3227_v19 = vsel %vm970_vm8, %v6223_v17, -inf }
 0xac6   :  { %v6229_v58 = vpop.f32.mrb[91].mxu0  ;;  %3228 = vmax.xlane.f32.xlu0 %v3227_v19  ;;  %v3236_v10 = vsel %vm970_vm8, %v6225_v33, -inf }
 0xac7   :  { %v3230_v14 = vsel %vm970_vm8, %v6229_v58, -inf }
 0xaca   :  { %3234 = vmax.xlane.f32.xlu0 %v3233_v54 }
 0xadd   :  { %3219 = vmax.xlane.f32.xlu1 %v3218_v26 }
 0xadf   :  { %v2823_v15 = vpop.xlane.xlu0 %2822 }
 0xae1   :  { %3231 = vmax.xlane.f32.xlu1 %v3230_v14 }
 0xae3   :  { %v2817_v59 = vpop.xlane.xlu0 %2816 }
 0xae4   :  { %v2826_v1 = vpop.xlane.xlu1 %2825  ;;  %4934 = vrcp.f32 %v2817_v59 }
 0xae5   :  { %3237 = vmax.xlane.f32.xlu1 %v3236_v10 }
 0xae8   :  { %v2820_v13 = vpop.xlane.xlu1 %2819 }
 0xae9   :  { %4936 = vrcp.f32 %v2820_v13 }
 0xaea   :  { %4938 = vrcp.f32 %v2826_v1 }
 0xaeb   :  { %4940 = vrcp.f32 %v2823_v15 }
 0xaec   :  { %v2866_v49 = vpop.permute.xlu1 %2865 }
 0xaee   :  { %v4935_v56 = vpop.eup %4934 }
 0xaef   :  { %v2847_v55 = vmul.f32 %v4935_v56, %v6129_v57 }
 0xaf0   :  { %v2835_v3 = vpop.xlane.xlu0 %2834  ;;  %v2868_v38 = vpop.permute.xlu1 %2867 }
 0xaf3   :  { %v4937_v44 = vpop.eup %4936 }
 0xaf4   :  { %v2829_v48 = vpop.xlane.xlu0 %2828  ;;  %v2848_v42 = vmul.f32 %v4937_v44, %v6138_v25  ;;  %v4939_v24 = vpop.eup %4938 }
 0xaf5   :  { %v4941_v32 = vpop.eup %4940  ;;  %v2850_v20 = vmul.f32 %v4939_v24, %v6132_v6  ;;  %v6292_v24 = vld [vmem:[%s6621_s12] ss:$0 sm:$0xff] }
 0xaf6   :  { %v2855_v11 = vpack.c.bf16 %v2848_v42, %v2847_v55  ;;  %v2849_v53 = vmul.f32 %v4941_v32, %v6124_v51 }
 0xaf8   :  { %4537 = vmatprep.mubr.msk.bf16.mxu1 %vm970_vm8, %v2855_v11  ;;  %v2864_v27 = vpop.permute.xlu0 %2863  ;;  %v2856_v12 = vpack.c.bf16 %v2850_v20, %v2849_v53 }
 0xaf9   :  { %4529 = vmatprep.subr.bf16.mxu1 %v2864_v27 }
 0xafa   :  { %4530 = vmatpush3.bf16.msra.mxu1 %v2864_v27 }
 0xafb   :  { %4531 = vmatprep.subr.bf16.mxu1 %v2866_v49 }
 0xafc   :  { %v3494_v61 = vpop.permute.xlu0 %3493 }
 0xafd   :  { %v3514_v47 = vsel %vm880_vm7, %v3494_v61, 0  ;;  %4738 = vmatprep.subr.msk.bf16.mxu0 %vm880_vm7, %v3494_v61 }
 0xafe   :  { %4532 = vmatpush3.bf16.msra.mxu1 %v2866_v49  ;;  %4608 = vmatpush3.bf16.xpose.msra.mxu0 %v3514_v47 }
 0xaff   :  { %4533 = vmatprep.subr.bf16.mxu1 %v2868_v38 }
 0xb00   :  { %v3498_v57 = vpop.permute.xlu0 %3497 }
 0xb01   :  { %v3520_v1 = vsel %vm880_vm7, %v3498_v57, 0 }
 0xb02   :  { %4534 = vmatpush3.bf16.msra.mxu1 %v2868_v38 }
 0xb04   :  { %v3486_v25 = vpop.permute.xlu0 %3485 }
 0xb05   :  { %4615 = vmatprep.mubr.msk.bf16.mxu0 %vm880_vm7, %v3486_v25 }
 0xb21   :  { %v2838_v50 = vpop.xlane.xlu1 %2837 }
 0xb22   :  { %4942 = vrcp.f32 %v2838_v50 }
 0xb23   :  { %4944 = vrcp.f32 %v2829_v48 }
 0xb24   :  { %4946 = vrcp.f32 %v2835_v3 }
 0xb25   :  { %v2832_v60 = vpop.xlane.xlu1 %2831 }
 0xb26   :  { %4948 = vrcp.f32 %v2832_v60 }
 0xb29   :  { %v2870_v7 = vpop.permute.xlu1 %2869 }
 0xb2a   :  { %4535 = vmatprep.subr.bf16.mxu1 %v2870_v7 }
 0xb2b   :  { %4536 = vmatpush3.bf16.msra.mxu1 %v2870_v7 }
 0xb2c   :  { %4731 = vmatprep.subr.msk.bf16.mxu1 %vm266_vm5, %v5014_v37  ;;  %v4943_v29 = vpop.eup %4942 }
 0xb2d   :  { %v3496_v34 = vpop.permute.xlu1 %3495  ;;  %v4945_v36 = vpop.eup %4944  ;;  %v2854_v21 = vmul.f32 %v4943_v29, %v6166_v22 }
 0xb2e   :  { %v3517_v40 = vsel %vm880_vm7, %v3496_v34, 0  ;;  %4538 = vmatmul.mubr.msk.bf16.vlgmr.msra.gmra.mrb[76].mxu1 %vm970_vm8, %v2856_v12  ;;  %4739 = vmatprep.subr.msk.bf16.mxu0 %vm880_vm7, %v3496_v34  ;;  %v4947_v6 = vpop.eup %4946  ;;  %v2851_v19 = vmul.f32 %v4945_v36, %v6146_v39 }
 0xb2f   :  { %4610 = vmatpush3.bf16.xpose.msra.mxu0 %v3517_v40  ;;  %4546 = vmatpush3.bf16.msra.mxu1 %v5700_v23  ;;  %v2853_v26 = vmul.f32 %v4947_v6, %v6142_v4  ;;  %v3490_v23 = vpop.permute.xlu0 %3489 }
 0xb30   :  { %v4949_v51 = vpop.eup %4948  ;;  %4740 = vmatprep.subr.msk.bf16.mxu0 %vm880_vm7, %v3498_v57  ;;  %4732 = vmatprep.subr.msk.bf16.mxu1 %vm266_vm5, %v5015_v35 }
 0xb31   :  { %v2852_v54 = vmul.f32 %v4949_v51, %v6173_v5  ;;  %v2858_v14 = vpack.c.bf16 %v2854_v21, %v2853_v26  ;;  %v3500_v22 = vpop.permute.xlu1 %3499  ;;  %v5017_v21 = vld [vmem:[%s6610_s0] sm:$0xff] }
 0xb32   :  { %v3523_v5 = vsel %vm880_vm7, %v3500_v22, 0 }
 0xb33   :  { %v2857_v15 = vpack.c.bf16 %v2852_v54, %v2851_v19  ;;  %v5018_v54 = vld [vmem:[%s6610_s0 + $0x18] sm:$0xff] }
 0xb35   :  { %4541 = vmatprep.mubr.msk.bf16.mxu1 %vm970_vm8, %v2857_v15  ;;  %v3488_v55 = vpop.permute.xlu1 %3487 }
 0xb36   :  { %4542 = vmatmul.mubr.msk.bf16.gmra.mrb[80].mxu1 %vm970_vm8, %v2858_v14 }
 0xb37   :  { %4612 = vmatpush3.bf16.xpose.msra.mxu0 %v3520_v1 }
 0xb38   :  { %4741 = vmatprep.subr.msk.bf16.mxu0 %vm880_vm7, %v3500_v22 }
 0xb39   :  { %v3217_v59 = vpop.xlane.xlu0 %3216  ;;  %v3492_v42 = vpop.permute.xlu1 %3491 }
 0xb3a   :  { %v3239_v39 = vsub.f32 %v6193_v2, %v3217_v59  ;;  %v6628_v59 = vld [vmem:[#allocation3_spill] sm:$0xff] }
 0xb3c   :  { %v3247_v13 = vmul.f32 1.442695, %v3239_v39 }
 0xb3d   :  { %v3223_v10 = vpop.xlane.xlu0 %3222 }
 0xb3e   :  { %v3241_v4 = vsub.f32 %v6191_v43, %v3223_v10 }
 0xb3f   :  { %4614 = vmatpush3.bf16.xpose.msra.mxu0 %v3523_v5 }
 0xb40   :  { %v3251_v3 = vmul.f32 1.442695, %v3241_v4  ;;  %v6629_v4 = vld [vmem:[#allocation4_spill] sm:$0xff] }
 0xb41   :  { %v3226_v56 = vpop.xlane.xlu0 %3225 }
 0xb42   :  { %4950 = vpow2.f32 %v3251_v3  ;;  %v3242_v44 = vsub.f32 %v6195_v46, %v3226_v56 }
 0xb43   :  { %4952 = vpow2.f32 %v3247_v13 }
 0xb44   :  { %v3253_v48 = vmul.f32 1.442695, %v3242_v44  ;;  %v6630_v44 = vld [vmem:[#allocation5_spill] sm:$0xff] }
 0xb46   :  { %4954 = vpow2.f32 %v3253_v48  ;;  %4616 = vmatmul.mubr.msk.bf16.vlgmr.msra.gmra.mrb[92].mxu0 %vm880_vm7, %v3488_v55 }
 0xb47   :  { %4619 = vmatprep.mubr.msk.bf16.mxu0 %vm880_vm7, %v3490_v23 }
 0xb4c   :  { %v6274_v2 = vpop.eup %4950 }
 0xb4d   :  { %v3269_v43 = vsel %vm970_vm8, %v6274_v2, 0.0  ;;  %v6278_v11 = vpop.eup %4952 }
 0xb4e   :  { %4620 = vmatmul.mubr.msk.bf16.gmra.mrb[96].mxu0 %vm880_vm7, %v3492_v42  ;;  %3270 = vadd.xlane.f32.xlu0 %v3269_v43  ;;  %v3263_v49 = vsel %vm970_vm8, %v6278_v11, 0.0  ;;  %v5021_v43 = vld [vmem:[%s6610_s0 + $0x20] sm:$0xff] }
 0xb50   :  { %v6281_v46 = vpop.eup %4954 }
 0xb51   :  { %v3272_v27 = vsel %vm970_vm8, %v6281_v46, 0.0 }
 0xb52   :  { %3264 = vadd.xlane.f32.xlu0 %v3263_v49  ;;  %3273 = vadd.xlane.f32.xlu1 %v3272_v27 }
 0xb53   :  { %v3229_v61 = vpop.xlane.xlu0 %3228 }
 0xb54   :  { %v3243_v47 = vsub.f32 %v6223_v17, %v3229_v61  ;;  %v5022_v61 = vld [vmem:[%s6610_s0 + $0x38] sm:$0xff] }
 0xb56   :  { %v3255_v25 = vmul.f32 1.442695, %v3243_v47 }
 0xb57   :  { %v3235_v38 = vpop.xlane.xlu0 %3234 }
 0xb58   :  { %v3245_v57 = vsub.f32 %v6221_v52, %v3235_v38  ;;  %v5023_v38 = vld [vmem:[%s6610_s0 + $0x28] sm:$0xff] }
 0xb5a   :  { %v3259_v50 = vmul.f32 1.442695, %v3245_v57 }
 0xb5c   :  { %4956 = vpow2.f32 %v3259_v50 }
 0xb5d   :  { %4958 = vpow2.f32 %v3255_v25 }
 0xb65   :  { %v4475_v60 = vpop.f32.mrb[44].mxu1 }
 0xb66   :  { %v6294_v32 = vpop.eup %4956  ;;  %v4655_v20 = vadd.f32 %v4475_v60, %v5767_v62  ;;  %v2323_v7 = vpop.f32.mrb[45].mxu1  ;;  %v5016_v62 = vld [vmem:[%s6610_s0 + $0x10] sm:$0xff] }
 0xb67   :  { %v4656_v17 = vadd.f32 %v2323_v7, %v5769_v9  ;;  %v4476_v53 = vpop.f32.mrb[46].mxu1  ;;  %v3281_v52 = vsel %vm970_vm8, %v6294_v32, 0.0  ;;  %v6300_v12 = vpop.eup %4958 }
 0xb68   :  { %v2370_v37 = vadd.f32 %v4655_v20, %v6292_v24  ;;  %v4657_v29 = vadd.f32 %v4476_v53, %v5771_v16  ;;  %v2326_v34 = vpop.f32.mrb[47].mxu1  ;;  %3282 = vadd.xlane.f32.xlu0 %v3281_v52 }
 0xb69   :  { %v2368_v36 = vadd.f32 %v4656_v17, %v6292_v24  ;;  %v4658_v40 = vadd.f32 %v2326_v34, %v5773_v8  ;;  %v3275_v8 = vsel %vm970_vm8, %v6300_v12, 0.0 }
 0xb6a   :  { %v2378_v9 = vadd.f32 %v5016_v62, %v2370_v37  ;;  %v2371_v6 = vadd.f32 %v4657_v29, %v6292_v24  ;;  %v3220_v51 = vpop.xlane.xlu1 %3219 }
 0xb6b   :  { %v2376_v35 = vadd.f32 %v5017_v21, %v2368_v36  ;;  %v2369_v16 = vadd.f32 %v4658_v40, %v6292_v24  ;;  %v3240_v19 = vsub.f32 %v6197_v30, %v3220_v51  ;;  %v5019_v30 = vld [vmem:[%s6610_s0 + $0x8] sm:$0xff] }
 0xb6c   :  { %2386 = vst.msk [vmem:[%s6622_s13 + $0x10] sm:$0xff] %vm61_vm0, %v2378_v9  ;;  %v2379_v26 = vadd.f32 %v5018_v54, %v2371_v6  ;;  %3276 = vadd.xlane.f32.xlu0 %v3275_v8 }
 0xb6d   :  { %2384 = vst.msk [vmem:[%s6622_s13] sm:$0xff] %vm61_vm0, %v2376_v35  ;;  %v2377_v15 = vadd.f32 %v5019_v30, %v2369_v16  ;;  %v3249_v14 = vmul.f32 1.442695, %v3240_v19  ;;  %v4479_v23 = vpop.f32.mrb[48].mxu1 }
 0xb6e   :  { %2387 = vst.msk [vmem:[%s6622_s13 + $0x18] sm:$0xff] %vm61_vm0, %v2379_v26  ;;  %v4659_v1 = vadd.f32 %v4479_v23, %v5775_v45  ;;  %v2339_v22 = vpop.f32.mrb[49].mxu1  ;;  %v5020_v45 = vld [vmem:[%s6610_s0 + $0x30] sm:$0xff]  ;;  %v3232_v9 = vpop.xlane.xlu1 %3231 }
 0xb6f   :  { %2385 = vst.msk [vmem:[%s6622_s13 + $0x8] sm:$0xff] %vm61_vm0, %v2377_v15  ;;  %4960 = vpow2.f32 %v3249_v14  ;;  %v4660_v39 = vadd.f32 %v2339_v22, %v6628_v59  ;;  %v4480_v10 = vpop.f32.mrb[50].mxu1  ;;  %v3244_v21 = vsub.f32 %v6229_v58, %v3232_v9 }
 0xb70   :  { %v2374_v5 = vadd.f32 %v4659_v1, %v6292_v24  ;;  %v4661_v13 = vadd.f32 %v4480_v10, %v6629_v4  ;;  %v2342_v3 = vpop.f32.mrb[51].mxu1  ;;  %v6631_v4 = vld [vmem:[#allocation2_spill] sm:$0xff] }
 0xb71   :  { %v2372_v56 = vadd.f32 %v4660_v39, %v6292_v24  ;;  %v4662_v48 = vadd.f32 %v2342_v3, %v6630_v44  ;;  %v3257_v16 = vmul.f32 1.442695, %v3244_v21 }
 0xb72   :  { %v2382_v55 = vadd.f32 %v5020_v45, %v2374_v5  ;;  %v2375_v42 = vadd.f32 %v4661_v13, %v6292_v24  ;;  %v3238_v6 = vpop.xlane.xlu1 %3237 }
 0xb73   :  { %v2380_v49 = vadd.f32 %v5021_v43, %v2372_v56  ;;  %v2373_v27 = vadd.f32 %v4662_v48, %v6292_v24  ;;  %v3246_v51 = vsub.f32 %v6225_v33, %v3238_v6 }
 0xb74   :  { %2390 = vst.msk [vmem:[%s6622_s13 + $0x30] sm:$0xff] %vm61_vm0, %v2382_v55  ;;  %v2383_v47 = vadd.f32 %v5022_v61, %v2375_v42 }
 0xb75   :  { %2388 = vst.msk [vmem:[%s6622_s13 + $0x20] sm:$0xff] %vm61_vm0, %v2380_v49  ;;  %v2381_v57 = vadd.f32 %v5023_v38, %v2373_v27  ;;  %v6367_v25 = vpop.f32.mrb[68].mxu1  ;;  %v3261_v35 = vmul.f32 1.442695, %v3246_v51 }
 0xb76   :  { %2391 = vst.msk [vmem:[%s6622_s13 + $0x38] sm:$0xff] %vm61_vm0, %v2383_v47  ;;  %v2619_v50 = vpop.f32.mrb[69].mxu1 }
 0xb77   :  { %2389 = vst.msk [vmem:[%s6622_s13 + $0x28] sm:$0xff] %vm61_vm0, %v2381_v57  ;;  %v4508_v60 = vpop.f32.mrb[70].mxu1  ;;  %4962 = vpow2.f32 %v3261_v35 }
 0xb78   :  { %v2651_v20 = vpack.c.bf16 %v4508_v60, %v6367_v25  ;;  %v2622_v7 = vpop.f32.mrb[71].mxu1  ;;  %4964 = vpow2.f32 %v3257_v16 }
 0xb79   :  { %v6378_v17 = vpop.eup %4960  ;;  %v2650_v53 = vpack.c.bf16 %v2622_v7, %v2619_v50 }
 0xb7a   :  { %v3266_v52 = vsel %vm970_vm8, %v6378_v17, 0.0 }
 0xb7b   :  { %3267 = vadd.xlane.f32.xlu1 %v3266_v52 }
 0xb81   :  { %v6396_v19 = vpop.eup %4962 }
 0xb82   :  { %3307 = vrot.lane.b32.xlu0 %v5488_v41, %s5039_s10  ;;  %v3284_v8 = vsel %vm970_vm8, %v6396_v19, 0.0  ;;  %v6400_v54 = vpop.eup %4964 }
 0xb83   :  { %v3278_v26 = vsel %vm970_vm8, %v6400_v54, 0.0 }
 0xb85   :  { %v6384_v37 = vpop.f32.mrb[72].mxu1 }
 0xb86   :  { %v2635_v29 = vpop.f32.mrb[73].mxu1 }
 0xb87   :  { %v6386_v34 = vpop.f32.mrb[74].mxu1 }
 0xb88   :  { %v2653_v36 = vpack.c.bf16 %v6386_v34, %v6384_v37  ;;  %v2638_v40 = vpop.f32.mrb[75].mxu1 }
 0xb89   :  { %v2652_v62 = vpack.c.bf16 %v2638_v40, %v2635_v29 }
 0xb8c   :  { %3309 = vrot.lane.b32.xlu1 %v5486_v18, %s5039_s10 }
 0xb90   :  { %3311 = vrot.lane.b32.xlu1 %v5493_v0, %s5039_s10 }
 0xbb4   :  { %3285 = vadd.xlane.f32.xlu1 %v3284_v8 }
 0xbb8   :  { %3279 = vadd.xlane.f32.xlu1 %v3278_v26 }
 0xbc9   :  { %3313 = vrot.lane.b32.xlu1 %v5491_v63, %s5039_s10 }
 0xbdb   :  { %v6406_v33 = vpop.xlane.xlu0 %3270 }
 0xbdf   :  { %v3265_v58 = vpop.xlane.xlu0 %3264  ;;  %v3274_v10 = vpop.xlane.xlu1 %3273 }
 0xbf5   :  { %v6408_v30 = vpop.xlane.xlu0 %3282 }
 0xbf9   :  { %v6410_v23 = vpop.xlane.xlu0 %3276 }
 0xbfd   :  { %v3308_v5 = vpop.permute.xlu0 %3307 }
 0xc01   :  { %v4539_v15 = vpop.f32.mrb[76].mxu1 }
 0xc02   :  { %v2921_v14 = vpop.f32.mrb[77].mxu1 }
 0xc03   :  { %v4540_v1 = vpop.f32.mrb[78].mxu1 }
 0xc04   :  { %v2953_v22 = vpack.c.bf16 %v4540_v1, %v4539_v15  ;;  %v2924_v59 = vpop.f32.mrb[79].mxu1 }
 0xc05   :  { %v2952_v39 = vpack.c.bf16 %v2924_v59, %v2921_v14 }
 0xc07   :  { %4547 = vmatprep.mubr.msk.bf16.mxu1 %vm880_vm7, %v2952_v39 }
 0xc08   :  { %4548 = vmatmul.mubr.msk.bf16.vlgmr.msra.gmra.mrb[84].mxu1 %vm880_vm7, %v2953_v22  ;;  %v3268_v56 = vpop.xlane.xlu1 %3267 }
 0xc09   :  { %4556 = vmatpush3.bf16.msra.mxu1 %v6631_v4  ;;  %v4543_v13 = vpop.f32.mrb[80].mxu1  ;;  %4966 = vrcp.f32 %v3268_v56 }
 0xc0a   :  { %4581 = vmatprep.subr.bf16.mxu1 %v3308_v5  ;;  %v2937_v3 = vpop.f32.mrb[81].mxu1  ;;  %4968 = vrcp.f32 %v3265_v58 }
 0xc0b   :  { %v4544_v44 = vpop.f32.mrb[82].mxu1  ;;  %4970 = vrcp.f32 %v3274_v10 }
 0xc0c   :  { %v2955_v48 = vpack.c.bf16 %v4544_v44, %v4543_v13  ;;  %v2940_v45 = vpop.f32.mrb[83].mxu1  ;;  %v3310_v42 = vpop.permute.xlu1 %3309  ;;  %4972 = vrcp.f32 %v6406_v33  ;;  %v5024_v33 = vld [vmem:[%s6620_s11 + $0x8] sm:$0xf] }
 0xc0d   :  { %v2954_v55 = vpack.c.bf16 %v2940_v45, %v2937_v3 }
 0xc0f   :  { %4551 = vmatprep.mubr.msk.bf16.mxu1 %vm880_vm7, %v2954_v55 }
 0xc10   :  { %4552 = vmatmul.mubr.msk.bf16.gmra.mrb[88].mxu1 %vm880_vm7, %v2955_v48  ;;  %v3312_v50 = vpop.permute.xlu1 %3311 }
 0xc11   :  { %4557 = vmatprep.mubr.msk.bf16.mxu1 %vm880_vm7, %v2650_v53 }
 0xc13   :  { %v4967_v43 = vpop.eup %4966 }
 0xc14   :  { %v4969_v27 = vpop.eup %4968  ;;  %v3296_v57 = vmul.f32 %v4967_v43, %v6378_v17 }
 0xc15   :  { %v4971_v6 = vpop.eup %4970 }
 0xc16   :  { %v4973_v21 = vpop.eup %4972  ;;  %v3298_v35 = vmul.f32 %v4971_v6, %v6281_v46 }
 0xc17   :  { %v3297_v8 = vmul.f32 %v4973_v21, %v6274_v2 }
 0xc18   :  { %4558 = vmatmul.mubr.msk.bf16.vlgmr.msra.gmra.mrb[84].mxu1 %vm880_vm7, %v2651_v20  ;;  %v3295_v20 = vmul.f32 %v4969_v27, %v6278_v11 }
 0xc19   :  { %4582 = vmatpush3.bf16.msra.mxu1 %v3308_v5  ;;  %4561 = vmatprep.mubr.msk.bf16.mxu1 %vm880_vm7, %v2652_v62  ;;  %v6420_v49 = vpop.f32.mrb[92].mxu0  ;;  %v3304_v26 = vpack.c.bf16 %v3298_v35, %v3297_v8 }
 0xc1a   :  { %4583 = vmatprep.subr.bf16.mxu1 %v3310_v42  ;;  %v6422_v61 = vpop.f32.mrb[93].mxu0  ;;  %v3596_v7 = vsel %vm970_vm8, %v6420_v49, -inf  ;;  %v3303_v53 = vpack.c.bf16 %v3296_v57, %v3295_v20 }
 0xc1b   :  { %v6424_v47 = vpop.f32.mrb[94].mxu0  ;;  %v3590_v38 = vsel %vm970_vm8, %v6422_v61, -inf }
 0xc1c   :  { %v6429_v25 = vpop.f32.mrb[95].mxu0  ;;  %3591 = vmax.xlane.f32.xlu0 %v3590_v38  ;;  %v3599_v29 = vsel %vm970_vm8, %v6424_v47, -inf }
 0xc1d   :  { %4584 = vmatpush3.bf16.msra.mxu1 %v3310_v42  ;;  %v3593_v60 = vsel %vm970_vm8, %v6429_v25, -inf }
 0xc1e   :  { %4585 = vmatprep.subr.bf16.mxu1 %v3312_v50  ;;  %3594 = vmax.xlane.f32.xlu1 %v3593_v60 }
 0xc20   :  { %4562 = vmatmul.mubr.msk.bf16.gmra.mrb[88].mxu1 %vm880_vm7, %v2653_v36  ;;  %3597 = vmax.xlane.f32.xlu0 %v3596_v7 }
 0xc21   :  { %4586 = vmatpush3.bf16.msra.mxu1 %v3312_v50  ;;  %4589 = vmatprep.mubr.msk.bf16.mxu1 %vm970_vm8, %v3303_v53  ;;  %v6441_v17 = vpop.f32.mrb[96].mxu0 }
 0xc22   :  { %v6443_v52 = vpop.f32.mrb[97].mxu0  ;;  %v3608_v62 = vsel %vm970_vm8, %v6441_v17, -inf }
 0xc23   :  { %v6445_v11 = vpop.f32.mrb[98].mxu0  ;;  %v3602_v34 = vsel %vm970_vm8, %v6443_v52, -inf }
 0xc24   :  { %v6449_v40 = vpop.f32.mrb[99].mxu0  ;;  %3600 = vmax.xlane.f32.xlu0 %v3599_v29  ;;  %v3611_v36 = vsel %vm970_vm8, %v6445_v11, -inf }
 0xc25   :  { %v3605_v37 = vsel %vm970_vm8, %v6449_v40, -inf }
 0xc26   :  { %3606 = vmax.xlane.f32.xlu1 %v3605_v37 }
 0xc28   :  { %3603 = vmax.xlane.f32.xlu0 %v3602_v34 }
 0xc2a   :  { %3612 = vmax.xlane.f32.xlu1 %v3611_v36 }
 0xc2c   :  { %3609 = vmax.xlane.f32.xlu0 %v3608_v62 }
 0xc41   :  { %v3286_v9 = vpop.xlane.xlu1 %3285 }
 0xc42   :  { %4974 = vrcp.f32 %v3286_v9 }
 0xc43   :  { %4976 = vrcp.f32 %v6410_v23 }
 0xc44   :  { %4978 = vrcp.f32 %v6408_v30 }
 0xc45   :  { %v3280_v51 = vpop.xlane.xlu1 %3279 }
 0xc46   :  { %4980 = vrcp.f32 %v3280_v51 }
 0xc49   :  { %v3314_v16 = vpop.permute.xlu1 %3313 }
 0xc4a   :  { %4587 = vmatprep.subr.bf16.mxu1 %v3314_v16 }
 0xc4b   :  { %4588 = vmatpush3.bf16.msra.mxu1 %v3314_v16 }
 0xc4c   :  { %4737 = vmatprep.subr.msk.bf16.mxu1 %vm266_vm5, %v5024_v33  ;;  %v4975_v58 = vpop.eup %4974 }
 0xc4d   :  { %v4977_v15 = vpop.eup %4976  ;;  %v3302_v14 = vmul.f32 %v4975_v58, %v6396_v19 }
 0xc4e   :  { %4590 = vmatmul.mubr.msk.bf16.vlgmr.msra.gmra.mrb[92].mxu1 %vm970_vm8, %v3304_v26  ;;  %v4979_v30 = vpop.eup %4978  ;;  %v3299_v2 = vmul.f32 %v4977_v15, %v6300_v12 }
 0xc4f   :  { %4598 = vmatpush3.bf16.msra.mxu1 %v5912_v31  ;;  %v3301_v1 = vmul.f32 %v4979_v30, %v6294_v32 }
 0xc50   :  { %v4981_v46 = vpop.eup %4980 }
 0xc51   :  { %v3300_v23 = vmul.f32 %v4981_v46, %v6400_v54  ;;  %v3306_v59 = vpack.c.bf16 %v3302_v14, %v3301_v1 }
 0xc53   :  { %v3305_v22 = vpack.c.bf16 %v3300_v23, %v3299_v2 }
 0xc55   :  { %4593 = vmatprep.mubr.msk.bf16.mxu1 %vm970_vm8, %v3305_v22 }
 0xc56   :  { %4594 = vmatmul.mubr.msk.bf16.gmra.mrb[96].mxu1 %vm970_vm8, %v3306_v59 }
 0xca9   :  { %v3592_v39 = vpop.xlane.xlu0 %3591 }
 0xcaa   :  { %v3614_v10 = vsub.f32 %v6422_v61, %v3592_v39 }
 0xcab   :  { %v3595_v5 = vpop.xlane.xlu1 %3594 }
 0xcac   :  { %v3622_v19 = vmul.f32 1.442695, %v3614_v10  ;;  %v3615_v12 = vsub.f32 %v6429_v25, %v3595_v5 }
 0xcad   :  { %v3598_v31 = vpop.xlane.xlu0 %3597 }
 0xcae   :  { %v3616_v4 = vsub.f32 %v6420_v49, %v3598_v31  ;;  %v3624_v3 = vmul.f32 1.442695, %v3615_v12 }
 0xcb0   :  { %v3626_v13 = vmul.f32 1.442695, %v3616_v4 }
 0xcb1   :  { %v3601_v54 = vpop.xlane.xlu0 %3600 }
 0xcb2   :  { %4982 = vpow2.f32 %v3626_v13  ;;  %v3617_v32 = vsub.f32 %v6424_v47, %v3601_v54 }
 0xcb3   :  { %4984 = vpow2.f32 %v3622_v19 }
 0xcb4   :  { %v3628_v56 = vmul.f32 1.442695, %v3617_v32 }
 0xcb5   :  { %v3604_v44 = vpop.xlane.xlu0 %3603 }
 0xcb6   :  { %4986 = vpow2.f32 %v3628_v56  ;;  %v3618_v48 = vsub.f32 %v6443_v52, %v3604_v44  ;;  %v5025_v44 = vld [vmem:[%s6620_s11 + $0xc] sm:$0xf] }
 0xcb7   :  { %4988 = vpow2.f32 %v3624_v3 }
 0xcb8   :  { %v3630_v43 = vmul.f32 1.442695, %v3618_v48 }
 0xcb9   :  { %v3610_v45 = vpop.xlane.xlu0 %3609 }
 0xcba   :  { %v3620_v55 = vsub.f32 %v6441_v17, %v3610_v45  ;;  %v3607_v17 = vpop.xlane.xlu1 %3606 }
 0xcbb   :  { %v3619_v37 = vsub.f32 %v6449_v40, %v3607_v17 }
 0xcbc   :  { %v6482_v42 = vpop.eup %4982  ;;  %v3634_v49 = vmul.f32 1.442695, %v3620_v55 }
 0xcbd   :  { %v3644_v27 = vsel %vm970_vm8, %v6482_v42, 0.0  ;;  %v6486_v61 = vpop.eup %4984  ;;  %v3632_v36 = vmul.f32 1.442695, %v3619_v37 }
 0xcbe   :  { %4990 = vpow2.f32 %v3634_v49  ;;  %3645 = vadd.xlane.f32.xlu0 %v3644_v27  ;;  %v3638_v38 = vsel %vm970_vm8, %v6486_v61, 0.0  ;;  %v3613_v52 = vpop.xlane.xlu1 %3612 }
 0xcbf   :  { %4992 = vpow2.f32 %v3630_v43  ;;  %v3621_v29 = vsub.f32 %v6445_v11, %v3613_v52 }
 0xcc0   :  { %v6488_v47 = vpop.eup %4986 }
 0xcc1   :  { %v3647_v57 = vsel %vm970_vm8, %v6488_v47, 0.0  ;;  %v4989_v25 = vpop.eup %4988  ;;  %v3636_v34 = vmul.f32 1.442695, %v3621_v29 }
 0xcc2   :  { %3639 = vadd.xlane.f32.xlu0 %v3638_v38  ;;  %3648 = vadd.xlane.f32.xlu1 %v3647_v57  ;;  %v3641_v50 = vsel %vm970_vm8, %v4989_v25, 0.0 }
 0xcc3   :  { %4994 = vpow2.f32 %v3636_v34 }
 0xcc4   :  { %4996 = vpow2.f32 %v3632_v36 }
 0xcc6   :  { %3642 = vadd.xlane.f32.xlu1 %v3641_v50 }
 0xcc8   :  { %v6495_v60 = vpop.eup %4990 }
 0xcc9   :  { %v3656_v20 = vsel %vm970_vm8, %v6495_v60, 0.0  ;;  %v6499_v7 = vpop.eup %4992 }
 0xcca   :  { %3657 = vadd.xlane.f32.xlu0 %v3656_v20  ;;  %v3650_v53 = vsel %vm970_vm8, %v6499_v7, 0.0 }
 0xccd   :  { %v6511_v62 = vpop.eup %4994 }
 0xcce   :  { %3651 = vadd.xlane.f32.xlu0 %v3650_v53  ;;  %v6515_v9 = vpop.eup %4996 }
 0xcd7   :  { %3684 = vrot.lane.b32.xlu1 %v5486_v18, %s5040_s28  ;;  %v3659_v18 = vsel %vm970_vm8, %v6511_v62, 0.0 }
 0xcdb   :  { %3686 = vrot.lane.b32.xlu1 %v5493_v0, %s5040_s28 }
 0xce4   :  { %3682 = vrot.lane.b32.xlu0 %v5488_v41, %s5040_s28  ;;  %v3653_v41 = vsel %vm970_vm8, %v6515_v9, 0.0 }
 0xcff   :  { %3660 = vadd.xlane.f32.xlu1 %v3659_v18 }
 0xd03   :  { %3654 = vadd.xlane.f32.xlu1 %v3653_v41  ;;  %v5026_v41 = vld [vmem:[%s6610_s0 + $0x50] sm:$0xff] }
 0xd14   :  { %3688 = vrot.lane.b32.xlu1 %v5491_v63, %s5040_s28 }
 0xd21   :  { %v4591_v0 = vpop.f32.mrb[92].mxu1 }
 0xd22   :  { %v3365_v11 = vpop.f32.mrb[93].mxu1 }
 0xd23   :  { %v4592_v40 = vpop.f32.mrb[94].mxu1 }
 0xd24   :  { %v3397_v6 = vpack.c.bf16 %v4592_v40, %v4591_v0  ;;  %v3368_v51 = vpop.f32.mrb[95].mxu1 }
 0xd25   :  { %v3396_v21 = vpack.c.bf16 %v3368_v51, %v3365_v11 }
 0xd27   :  { %4599 = vmatprep.mubr.msk.bf16.mxu1 %vm880_vm7, %v3396_v21 }
 0xd28   :  { %4600 = vmatmul.mubr.msk.bf16.vlgmr.msra.gmra.mrb[84].mxu1 %vm880_vm7, %v3397_v6  ;;  %v5027_v6 = vld [vmem:[%s6610_s0 + $0x40] sm:$0xff] }
 0xd29   :  { %v4595_v35 = vpop.f32.mrb[96].mxu1 }
 0xd2a   :  { %v3381_v16 = vpop.f32.mrb[97].mxu1 }
 0xd2b   :  { %v4596_v8 = vpop.f32.mrb[98].mxu1 }
 0xd2c   :  { %v3399_v26 = vpack.c.bf16 %v4596_v8, %v4595_v35  ;;  %v3384_v33 = vpop.f32.mrb[99].mxu1  ;;  %v5028_v35 = vld [vmem:[%s6610_s0 + $0x58] sm:$0xff]  ;;  %v5029_v8 = vld [vmem:[%s6610_s0 + $0x48] sm:$0xff] }
 0xd2d   :  { %v3398_v58 = vpack.c.bf16 %v3384_v33, %v3381_v16 }
 0xd2f   :  { %4603 = vmatprep.mubr.msk.bf16.mxu1 %vm880_vm7, %v3398_v58 }
 0xd30   :  { %4604 = vmatmul.mubr.msk.bf16.gmra.mrb[88].mxu1 %vm880_vm7, %v3399_v26 }
 0xd4b   :  { %v3646_v63 = vpop.xlane.xlu0 %3645 }
 0xd4f   :  { %v3649_v15 = vpop.xlane.xlu1 %3648  ;;  %v3640_v30 = vpop.xlane.xlu0 %3639 }
 0xd50   :  { %4998 = vrcp.f32 %v3640_v30 }
 0xd53   :  { %v3643_v46 = vpop.xlane.xlu1 %3642 }
 0xd54   :  { %5000 = vrcp.f32 %v3643_v46  ;;  %v5030_v46 = vld [vmem:[%s6610_s0 + $0x70] sm:$0xff] }
 0xd55   :  { %5002 = vrcp.f32 %v3649_v15 }
 0xd56   :  { %5004 = vrcp.f32 %v3646_v63 }
 0xd57   :  { %v3658_v14 = vpop.xlane.xlu0 %3657  ;;  %v3685_v22 = vpop.permute.xlu1 %3684 }
 0xd5a   :  { %v4999_v23 = vpop.eup %4998 }
 0xd5b   :  { %v3652_v2 = vpop.xlane.xlu0 %3651  ;;  %v3670_v39 = vmul.f32 %v4999_v23, %v6486_v61  ;;  %v3687_v31 = vpop.permute.xlu1 %3686 }
 0xd5e   :  { %v5001_v1 = vpop.eup %5000 }
 0xd5f   :  { %v3683_v59 = vpop.permute.xlu0 %3682  ;;  %v3671_v10 = vmul.f32 %v5001_v1, %v4989_v25  ;;  %v5003_v19 = vpop.eup %5002  ;;  %v5031_v1 = vld [vmem:[%s6610_s0 + $0x60] sm:$0xff] }
 0xd60   :  { %4623 = vmatprep.subr.bf16.mxu1 %v3683_v59  ;;  %v5005_v13 = vpop.eup %5004  ;;  %v3673_v54 = vmul.f32 %v5003_v19, %v6488_v47 }
 0xd61   :  { %4624 = vmatpush3.bf16.msra.mxu1 %v3683_v59  ;;  %v3678_v5 = vpack.c.bf16 %v3671_v10, %v3670_v39  ;;  %v3672_v3 = vmul.f32 %v5005_v13, %v6482_v42  ;;  %v5032_v39 = vld [vmem:[%s6610_s0 + $0x78] sm:$0xff] }
 0xd62   :  { %4625 = vmatprep.subr.bf16.mxu1 %v3685_v22 }
 0xd63   :  { %4631 = vmatprep.mubr.msk.bf16.mxu1 %vm970_vm8, %v3678_v5  ;;  %v3679_v56 = vpack.c.bf16 %v3673_v54, %v3672_v3  ;;  %v5033_v5 = vld [vmem:[%s6610_s0 + $0x68] sm:$0xff] }
 0xd65   :  { %4626 = vmatpush3.bf16.msra.mxu1 %v3685_v22 }
 0xd66   :  { %4627 = vmatprep.subr.bf16.mxu1 %v3687_v31 }
 0xd69   :  { %4628 = vmatpush3.bf16.msra.mxu1 %v3687_v31 }
 0xd8c   :  { %v3661_v4 = vpop.xlane.xlu1 %3660 }
 0xd8d   :  { %5006 = vrcp.f32 %v3661_v4 }
 0xd8e   :  { %5008 = vrcp.f32 %v3652_v2 }
 0xd8f   :  { %5010 = vrcp.f32 %v3658_v14 }
 0xd90   :  { %v3655_v12 = vpop.xlane.xlu1 %3654 }
 0xd91   :  { %5012 = vrcp.f32 %v3655_v12 }
 0xd94   :  { %v3689_v32 = vpop.permute.xlu1 %3688 }
 0xd95   :  { %4629 = vmatprep.subr.bf16.mxu1 %v3689_v32 }
 0xd96   :  { %4630 = vmatpush3.bf16.msra.mxu1 %v3689_v32 }
 0xd97   :  { %4742 = vmatprep.subr.msk.bf16.mxu1 %vm266_vm5, %v5025_v44  ;;  %v5007_v48 = vpop.eup %5006 }
 0xd98   :  { %v5009_v45 = vpop.eup %5008  ;;  %v3677_v49 = vmul.f32 %v5007_v48, %v6511_v62 }
 0xd99   :  { %4632 = vmatmul.mubr.msk.bf16.vlgmr.msra.gmra.mrb[100].mxu1 %vm970_vm8, %v3679_v56  ;;  %v5011_v55 = vpop.eup %5010  ;;  %v3674_v42 = vmul.f32 %v5009_v45, %v6499_v7 }
 0xd9a   :  { %4640 = vmatpush3.bf16.msra.mxu1 %v6052_v28  ;;  %v3676_v61 = vmul.f32 %v5011_v55, %v6495_v60 }
 0xd9b   :  { %v5013_v43 = vpop.eup %5012 }
 0xd9c   :  { %v3675_v27 = vmul.f32 %v5013_v43, %v6515_v9  ;;  %v3681_v38 = vpack.c.bf16 %v3677_v49, %v3676_v61 }
 0xd9e   :  { %v3680_v47 = vpack.c.bf16 %v3675_v27, %v3674_v42 }
 0xda0   :  { %4635 = vmatprep.mubr.msk.bf16.mxu1 %vm970_vm8, %v3680_v47 }
 0xda1   :  { %4636 = vmatmul.mubr.msk.bf16.gmra.mrb[104].mxu1 %vm970_vm8, %v3681_v38 }
 0xe6c   :  { %v4633_v57 = vpop.f32.mrb[100].mxu1 }
 0xe6d   :  { %v3740_v25 = vpop.f32.mrb[101].mxu1 }
 0xe6e   :  { %v4634_v50 = vpop.f32.mrb[102].mxu1 }
 0xe6f   :  { %v3772_v20 = vpack.c.bf16 %v4634_v50, %v4633_v57  ;;  %v3743_v28 = vpop.f32.mrb[103].mxu1 }
 0xe70   :  { %v3771_v53 = vpack.c.bf16 %v3743_v28, %v3740_v25 }
 0xe72   :  { %4641 = vmatprep.mubr.msk.bf16.mxu1 %vm880_vm7, %v3771_v53 }
 0xe73   :  { %4642 = vmatmul.mubr.msk.bf16.vlgmr.msra.gmra.mrb[84].mxu1 %vm880_vm7, %v3772_v20 }
 0xe74   :  { %v4637_v7 = vpop.f32.mrb[104].mxu1 }
 0xe75   :  { %v3756_v17 = vpop.f32.mrb[105].mxu1 }
 0xe76   :  { %v4638_v52 = vpop.f32.mrb[106].mxu1 }
 0xe77   :  { %v3774_v60 = vpack.c.bf16 %v4638_v52, %v4637_v7  ;;  %v3759_v29 = vpop.f32.mrb[107].mxu1 }
 0xe78   :  { %v3773_v37 = vpack.c.bf16 %v3759_v29, %v3756_v17 }
 0xe7a   :  { %4645 = vmatprep.mubr.msk.bf16.mxu1 %vm880_vm7, %v3773_v37 }
 0xe7b   :  { %4646 = vmatmul.mubr.msk.bf16.gmra.mrb[88].mxu1 %vm880_vm7, %v3774_v60 }
 0xf46   :  { %v4643_v34 = vpop.f32.mrb[84].mxu1 }
 0xf47   :  { %v3862_v36 = vadd.f32 %v4643_v34, %v6292_v24  ;;  %v3821_v62 = vpop.f32.mrb[85].mxu1 }
 0xf48   :  { %v3860_v18 = vadd.f32 %v6292_v24, %v3821_v62  ;;  %v4644_v9 = vpop.f32.mrb[86].mxu1 }
 0xf49   :  { %v3870_v0 = vadd.f32 %v5026_v41, %v3862_v36  ;;  %v3863_v11 = vadd.f32 %v4644_v9, %v6292_v24  ;;  %v3824_v40 = vpop.f32.mrb[87].mxu1 }
 0xf4a   :  { %v3868_v51 = vadd.f32 %v5027_v6, %v3860_v18  ;;  %v3861_v21 = vadd.f32 %v6292_v24, %v3824_v40 }
 0xf4b   :  { %4026 = vst.msk [vmem:[%s6622_s13 + $0x50] sm:$0xff] %vm61_vm0, %v3870_v0  ;;  %v3871_v16 = vadd.f32 %v5028_v35, %v3863_v11 }
 0xf4c   :  { %4024 = vst.msk [vmem:[%s6622_s13 + $0x40] sm:$0xff] %vm61_vm0, %v3868_v51  ;;  %v3869_v26 = vadd.f32 %v5029_v8, %v3861_v21 }
 0xf4d   :  { %4027 = vst.msk [vmem:[%s6622_s13 + $0x58] sm:$0xff] %vm61_vm0, %v3871_v16 }
 0xf4e   :  { %4025 = vst.msk [vmem:[%s6622_s13 + $0x48] sm:$0xff] %vm61_vm0, %v3869_v26  ;;  %v4647_v33 = vpop.f32.mrb[88].mxu1 }
 0xf4f   :  { %v3866_v58 = vadd.f32 %v4647_v33, %v6292_v24  ;;  %v3837_v63 = vpop.f32.mrb[89].mxu1 }
 0xf50   :  { %v3864_v15 = vadd.f32 %v6292_v24, %v3837_v63  ;;  %v4648_v30 = vpop.f32.mrb[90].mxu1 }
 0xf51   :  { %v3874_v14 = vadd.f32 %v5030_v46, %v3866_v58  ;;  %v3867_v2 = vadd.f32 %v4648_v30, %v6292_v24  ;;  %v3840_v23 = vpop.f32.mrb[91].mxu1 }
 0xf52   :  { %v3872_v22 = vadd.f32 %v5031_v1, %v3864_v15  ;;  %v3865_v59 = vadd.f32 %v6292_v24, %v3840_v23 }
 0xf53   :  { %4030 = vst.msk [vmem:[%s6622_s13 + $0x70] sm:$0xff] %vm61_vm0, %v3874_v14  ;;  %v3875_v10 = vadd.f32 %v5032_v39, %v3867_v2 }
 0xf54   :  { %4028 = vst.msk [vmem:[%s6622_s13 + $0x60] sm:$0xff] %vm61_vm0, %v3872_v22  ;;  %v3873_v24 = vadd.f32 %v5033_v5, %v3865_v59 }
 0xf55   :  { %4031 = vst.msk [vmem:[%s6622_s13 + $0x78] sm:$0xff] %vm61_vm0, %v3875_v10 }
 0xf56   :  { %4029 = vst.msk [vmem:[%s6622_s13 + $0x68] sm:$0xff] %vm61_vm0, %v3873_v24 }

</bundles_post_ra>
